<compile_context>
chip_gen: v5e
topology: v5e:2x2
jax: 0.10.0
libtpu: 0.0.40
codegen_flags: <defaults>
</compile_context>

<pallas_src>
import functools
import math

import jax
import jax.numpy as jnp
from jax import lax
from jax.experimental import pallas as pl
from jax.experimental.pallas import tpu as pltpu

# --------------------------------------------------------------------------
# Scaled-down CLIP visual config (stand-in for width 768 / 12 layers)
# --------------------------------------------------------------------------
GRID      = 4                   # spatial size of the incoming feature map
N_PATCH   = GRID * GRID         # 16
SEQ       = N_PATCH + 1         # 17 = CLS + patches
SEQ_P     = SEQ + 1             # 18 = with appended prompt token
SEQ_PAD   = 32                  # padded token axis (multiple of 16 for bf16)
WIDTH     = 128                 # stand-in for the hard-coded 768
HEADS     = 4
HEAD_DIM  = WIDTH // HEADS
MLP_DIM   = 4 * WIDTH
LAYERS    = 12
SELECTED  = (1, 2, 3, 4, 5, 6, 7, 8)   # contiguous: prompt_slot = layer - 1
N_PROMPTS = len(SELECTED)
LN_EPS    = 1e-5
NEG_INF   = -1e30


# --------------------------------------------------------------------------
# Fused 12-layer transformer-stack kernel
#   grid = (B, LAYERS); one grid point = one (batch element, layer) pair.
#   Token state is carried across the layer axis in a VMEM scratch.
# --------------------------------------------------------------------------
def _clip_stack_kernel(x_ref, prompts_ref,
                       ln1_g_ref, ln1_b_ref, wqkv_ref, bqkv_ref,
                       wout_ref, bout_ref,
                       ln2_g_ref, ln2_b_ref, wfc_ref, bfc_ref,
                       wproj_ref, bproj_ref,
                       o_ref, tok_ref, *, scale):
    l = pl.program_id(1)
    is_sel = jnp.logical_and(l >= SELECTED[0], l <= SELECTED[-1])
    n_valid = jnp.where(is_sel, SEQ_P, SEQ)          # valid keys this layer

    # ---- layer 0: load ln_pre'd tokens into the resident VMEM carry ----
    @pl.when(l == 0)
    def _():
        tok_ref[...] = x_ref[...]

    # ---- selected layers: torch.cat((x, prompt)) == overwrite row SEQ ----
    @pl.when(is_sel)
    def _():
        # select prompt row (l - 1) with a masked reduce (no dynamic slice)
        sel = lax.broadcasted_iota(jnp.int32, (N_PROMPTS, WIDTH), 0) == (l - SELECTED[0])
        row = jnp.sum(jnp.where(sel, prompts_ref[...], 0.0),
                      axis=0, keepdims=True)          # (1, WIDTH)
        tok_ref[pl.ds(SEQ, 1), :] = row
    # (After a selected layer the prompt row simply becomes a masked-out,
    #  never-read padded row -> matches x = x[:-1] semantics.)

    x = tok_ref[...].astype(jnp.float32)              # (LP, D)
    lp = x.shape[0]

    def layernorm(v, g_ref, b_ref):
        mu = jnp.mean(v, axis=-1, keepdims=True)
        var = jnp.mean((v - mu) ** 2, axis=-1, keepdims=True)
        return (v - mu) * lax.rsqrt(var + LN_EPS) * g_ref[...] + b_ref[...]

    # ---- attention sub-block: x = x + out_proj(MHA(ln_1(x))) ----
    h = layernorm(x, ln1_g_ref, ln1_b_ref)
    qkv = jnp.dot(h.astype(jnp.bfloat16), wqkv_ref[...],
                  preferred_element_type=jnp.float32) + bqkv_ref[...]   # (LP, 3D)

    # key mask: rows >= n_valid (padding / stale prompt) never contribute
    key_ok = lax.broadcasted_iota(jnp.int32, (lp, lp), 1) < n_valid

    # Per-head attention, accumulated directly through the out-projection
    # (keeps every matmul output full-lane; no (LP, 32) concat relayout).
    attn_proj = jnp.zeros((lp, WIDTH), jnp.float32)
    for hh in range(HEADS):                            # static unroll, H=4
        q = qkv[:, hh * HEAD_DIM:(hh + 1) * HEAD_DIM].astype(jnp.bfloat16)
        k = qkv[:, WIDTH + hh * HEAD_DIM:WIDTH + (hh + 1) * HEAD_DIM
                ].astype(jnp.bfloat16)
        v = qkv[:, 2 * WIDTH + hh * HEAD_DIM:2 * WIDTH + (hh + 1) * HEAD_DIM
                ].astype(jnp.bfloat16)
        # q @ k^T via dot_general contracting last axes (no explicit transpose)
        s = lax.dot_general(q, k, (((1,), (1,)), ((), ())),
                            preferred_element_type=jnp.float32) * scale
        s = jnp.where(key_ok, s, NEG_INF)
        s = s - jnp.max(s, axis=-1, keepdims=True)
        p = jnp.exp(s)
        p = p * pl.reciprocal(jnp.sum(p, axis=-1, keepdims=True), approx=True)
        o_h = jnp.dot(p.astype(jnp.bfloat16), v,
                      preferred_element_type=jnp.float32)               # (LP, HD)
        attn_proj = attn_proj + jnp.dot(
            o_h.astype(jnp.bfloat16),
            wout_ref[pl.ds(hh * HEAD_DIM, HEAD_DIM), :],
            preferred_element_type=jnp.float32)                         # (LP, D)

    x = x + attn_proj + bout_ref[...]

    # ---- MLP sub-block: x = x + c_proj(QuickGELU(c_fc(ln_2(x)))) ----
    h2 = layernorm(x, ln2_g_ref, ln2_b_ref)
    hfc = jnp.dot(h2.astype(jnp.bfloat16), wfc_ref[...],
                  preferred_element_type=jnp.float32) + bfc_ref[...]
    hfc = hfc * jax.nn.sigmoid(1.702 * hfc)            # QuickGELU (CLIP)
    x = x + (jnp.dot(hfc.astype(jnp.bfloat16), wproj_ref[...],
                     preferred_element_type=jnp.float32) + bproj_ref[...])

    tok_ref[...] = x

    # ---- last layer: emit the carried tokens ----
    @pl.when(l == LAYERS - 1)
    def _():
        o_ref[...] = tok_ref[...]


def clip_transformer_stack(x_pad, prompts_f, p):
    """All 12 residual blocks in one pallas_call over grid=(B, LAYERS)."""
    B = x_pad.shape[0]

    tok_spec = pl.BlockSpec((None, SEQ_PAD, WIDTH), lambda b, l: (b, 0, 0))
    prm_spec = pl.BlockSpec((None, N_PROMPTS, WIDTH), lambda b, l: (b, 0, 0))

    def wspec(*shape):
        # one layer's weight tile, re-fetched (double-buffered) per layer step
        return pl.BlockSpec((None,) + shape,
                            lambda b, l, _n=len(shape): (l,) + (0,) * _n)

    kernel = functools.partial(_clip_stack_kernel,
                               scale=1.0 / math.sqrt(HEAD_DIM))
    return pl.pallas_call(
        kernel,
        grid=(B, LAYERS),
        in_specs=[tok_spec, prm_spec,
                  wspec(1, WIDTH), wspec(1, WIDTH),
                  wspec(WIDTH, 3 * WIDTH), wspec(1, 3 * WIDTH),
                  wspec(WIDTH, WIDTH), wspec(1, WIDTH),
                  wspec(1, WIDTH), wspec(1, WIDTH),
                  wspec(WIDTH, MLP_DIM), wspec(1, MLP_DIM),
                  wspec(MLP_DIM, WIDTH), wspec(1, WIDTH)],
        out_specs=tok_spec,
        out_shape=jax.ShapeDtypeStruct((B, SEQ_PAD, WIDTH), jnp.float32),
        scratch_shapes=[pltpu.VMEM((SEQ_PAD, WIDTH), jnp.float32)],
        compiler_params=pltpu.CompilerParams(
            dimension_semantics=("parallel", "arbitrary")),
    )(x_pad, prompts_f,
      p["ln1_g"], p["ln1_b"], p["w_qkv"], p["b_qkv"],
      p["w_out"], p["b_out"],
      p["ln2_g"], p["ln2_b"], p["w_fc"], p["b_fc"],
      p["w_proj"], p["b_proj"])


# --------------------------------------------------------------------------
# CLIP_Mapper forward (tiny prologue / epilogue in plain JAX)
# --------------------------------------------------------------------------
def clip_mapper_forward(img, prompts, params):
    img_dtype = img.dtype
    B = img.shape[0]
    grid = img.shape[-1]

    # x = img.reshape(B, C, -1).permute(0, 2, 1)
    x = img.astype(jnp.float32).reshape(B, WIDTH, grid * grid)
    x = jnp.transpose(x, (0, 2, 1))                          # (B, grid*grid, D)

    # prepend CLS token, add positional embedding
    cls = jnp.broadcast_to(
        params["class_embedding"].astype(jnp.float32).reshape(1, 1, WIDTH),
        (B, 1, WIDTH))
    x = jnp.concatenate([cls, x], axis=1)                    # (B, SEQ, D)
    x = x + params["positional_embedding"].astype(jnp.float32)[None]

    # ln_pre (tiny (B,17,128) op -> plain JAX)
    mu = jnp.mean(x, axis=-1, keepdims=True)
    var = jnp.mean((x - mu) ** 2, axis=-1, keepdims=True)
    x = (x - mu) * lax.rsqrt(var + LN_EPS) * params["ln_pre_g"] + params["ln_pre_b"]

    # pad token axis 17 -> 32 (sublane/bf16 aligned); padded keys are masked
    x_pad = jnp.pad(x, ((0, 0), (0, SEQ_PAD - SEQ), (0, 0)))

    # single fused kernel: all 12 blocks + prompt insertion
    x_out = clip_transformer_stack(x_pad, prompts.astype(jnp.float32), params)

    # x.permute(1,0,2)[:,1:,:].permute(0,2,1).reshape(-1, WIDTH, grid, grid)
    tokens = x_out[:, 1:SEQ, :]                              # drop CLS + padding
    out = jnp.transpose(tokens, (0, 2, 1)).reshape(-1, WIDTH, grid, grid)
    return out.astype(img_dtype)


# --------------------------------------------------------------------------
# Deterministic synthetic parameters (shapes implied by CLIP.visual),
# per-layer weights stacked along a leading LAYERS axis.
# --------------------------------------------------------------------------
def init_params(key):
    ks = iter(jax.random.split(key, 10))

    def w(k, shape, scale=0.02, dtype=jnp.float32):
        return (scale * jax.random.normal(k, shape, jnp.float32)).astype(dtype)

    return {
        "class_embedding": w(next(ks), (WIDTH,)),
        "positional_embedding": w(next(ks), (SEQ, WIDTH)),
        "ln_pre_g": jnp.ones((1, WIDTH), jnp.float32),
        "ln_pre_b": jnp.zeros((1, WIDTH), jnp.float32),
        # per-layer LayerNorm params
        "ln1_g": jnp.ones((LAYERS, 1, WIDTH), jnp.float32),
        "ln1_b": jnp.zeros((LAYERS, 1, WIDTH), jnp.float32),
        "ln2_g": jnp.ones((LAYERS, 1, WIDTH), jnp.float32),
        "ln2_b": jnp.zeros((LAYERS, 1, WIDTH), jnp.float32),
        # matmul weights stored bf16 (MXU-native, halves VMEM/HBM traffic)
        "w_qkv": w(next(ks), (LAYERS, WIDTH, 3 * WIDTH), dtype=jnp.bfloat16),
        "b_qkv": w(next(ks), (LAYERS, 1, 3 * WIDTH)),
        "w_out": w(next(ks), (LAYERS, WIDTH, WIDTH), dtype=jnp.bfloat16),
        "b_out": w(next(ks), (LAYERS, 1, WIDTH)),
        "w_fc": w(next(ks), (LAYERS, WIDTH, MLP_DIM), dtype=jnp.bfloat16),
        "b_fc": w(next(ks), (LAYERS, 1, MLP_DIM)),
        "w_proj": w(next(ks), (LAYERS, MLP_DIM, WIDTH), dtype=jnp.bfloat16),
        "b_proj": w(next(ks), (LAYERS, 1, WIDTH)),
    }


# --------------------------------------------------------------------------
if __name__ == "__main__":
    key = jax.random.PRNGKey(0)
    kp, ki, kpr = jax.random.split(key, 3)
    params = init_params(kp)

    # img is the (B, width, grid, grid) feature map the module's forward expects;
    # prompts is (B, 8, width), one prompt token per selected layer.
    img = jax.random.normal(ki, (2, WIDTH, GRID, GRID), jnp.float32)
    prompts = jax.random.normal(kpr, (2, N_PROMPTS, WIDTH), jnp.float32)

    fwd = jax.jit(clip_mapper_forward)
    out = fwd(img, prompts, params)
    jax.block_until_ready(out)

    assert out.shape == (2, WIDTH, GRID, GRID), out.shape
    assert out.dtype == img.dtype
    assert bool(jnp.all(jnp.isfinite(out)))

    print("KERNEL_OK")
</pallas_src>

<mosaic_0001>
module attributes {stable_mosaic.version = 11 : i64} {
  func.func @_clip_stack_kernel(%arg0: i32, %arg1: i32, %arg2: memref<1x32x128xf32, #tpu.memory_space<vmem>>, %arg3: memref<1x8x128xf32, #tpu.memory_space<vmem>>, %arg4: memref<1x1x128xf32, #tpu.memory_space<vmem>>, %arg5: memref<1x1x128xf32, #tpu.memory_space<vmem>>, %arg6: memref<1x128x384xbf16, #tpu.memory_space<vmem>>, %arg7: memref<1x1x384xf32, #tpu.memory_space<vmem>>, %arg8: memref<1x128x128xbf16, #tpu.memory_space<vmem>>, %arg9: memref<1x1x128xf32, #tpu.memory_space<vmem>>, %arg10: memref<1x1x128xf32, #tpu.memory_space<vmem>>, %arg11: memref<1x1x128xf32, #tpu.memory_space<vmem>>, %arg12: memref<1x128x512xbf16, #tpu.memory_space<vmem>>, %arg13: memref<1x1x512xf32, #tpu.memory_space<vmem>>, %arg14: memref<1x512x128xbf16, #tpu.memory_space<vmem>>, %arg15: memref<1x1x128xf32, #tpu.memory_space<vmem>>, %arg16: memref<1x32x128xf32, #tpu.memory_space<vmem>>, %arg17: memref<32x128xf32, #tpu.memory_space<vmem>>) attributes {dimension_semantics = [#tpu.dimension_semantics<parallel>, #tpu.dimension_semantics<arbitrary>], iteration_bounds = array<i64: 2, 12>, scalar_prefetch = 0 : i64, scratch_operands = 1 : i64, tpu.core_type = #tpu.core_type<tc>, window_params = [{transform_indices = @transform_0, window_bounds = array<i64: 1, 32, 128>}, {transform_indices = @transform_1, window_bounds = array<i64: 1, 8, 128>}, {transform_indices = @transform_2, window_bounds = array<i64: 1, 1, 128>}, {transform_indices = @transform_3, window_bounds = array<i64: 1, 1, 128>}, {transform_indices = @transform_4, window_bounds = array<i64: 1, 128, 384>}, {transform_indices = @transform_5, window_bounds = array<i64: 1, 1, 384>}, {transform_indices = @transform_6, window_bounds = array<i64: 1, 128, 128>}, {transform_indices = @transform_7, window_bounds = array<i64: 1, 1, 128>}, {transform_indices = @transform_8, window_bounds = array<i64: 1, 1, 128>}, {transform_indices = @transform_9, window_bounds = array<i64: 1, 1, 128>}, {transform_indices = @transform_10, window_bounds = array<i64: 1, 128, 512>}, {transform_indices = @transform_11, window_bounds = array<i64: 1, 1, 512>}, {transform_indices = @transform_12, window_bounds = array<i64: 1, 512, 128>}, {transform_indices = @transform_13, window_bounds = array<i64: 1, 1, 128>}, {transform_indices = @transform_14, window_bounds = array<i64: 1, 32, 128>}]} {
    %c1_i32 = arith.constant 1 : i32
    %0 = arith.cmpi sge, %arg1, %c1_i32 : i32
    %c8_i32 = arith.constant 8 : i32
    %1 = arith.cmpi sle, %arg1, %c8_i32 : i32
    %2 = arith.andi %0, %1 : i1
    %c18_i32 = arith.constant 18 : i32
    %c17_i32 = arith.constant 17 : i32
    %3 = arith.select %2, %c18_i32, %c17_i32 : i32
    %c0_i32 = arith.constant 0 : i32
    %4 = arith.cmpi eq, %arg1, %c0_i32 : i32
    %5 = arith.extui %4 : i1 to i32
    %c0_i32_0 = arith.constant 0 : i32
    %6 = arith.cmpi ne, %5, %c0_i32_0 : i32
    scf.if %6 {
      %c0_91 = arith.constant 0 : index
      %c0_92 = arith.constant 0 : index
      %c0_93 = arith.constant 0 : index
      %220 = vector.load %arg2[%c0_91, %c0_92, %c0_93] : memref<1x32x128xf32, #tpu.memory_space<vmem>>, vector<1x32x128xf32>
      %221 = vector.shape_cast %220 : vector<1x32x128xf32> to vector<32x128xf32>
      %c0_94 = arith.constant 0 : index
      %c0_95 = arith.constant 0 : index
      %222 = vector.load %arg17[%c0_94, %c0_95] : memref<32x128xf32, #tpu.memory_space<vmem>>, vector<32x128xf32>
      tpu.vector_store %arg17[%c0_94, %c0_95], %221 {strides = array<i32>} : memref<32x128xf32, #tpu.memory_space<vmem>>, vector<32x128xf32>,
    } else {
    }
    %7 = arith.extui %2 : i1 to i32
    %c0_i32_1 = arith.constant 0 : i32
    %8 = arith.cmpi ne, %7, %c0_i32_1 : i32
    scf.if %8 {
      %220 = tpu.iota {dimensions = array<i32: 0>} : vector<8x128xi32>
      %c1_i32_91 = arith.constant 1 : i32
      %221 = arith.subi %arg1, %c1_i32_91 : i32
      %222 = vector.broadcast %221 : i32 to vector<8x128xi32>
      %223 = arith.cmpi eq, %220, %222 : vector<8x128xi32>
      %c0_92 = arith.constant 0 : index
      %c0_93 = arith.constant 0 : index
      %c0_94 = arith.constant 0 : index
      %224 = vector.load %arg3[%c0_92, %c0_93, %c0_94] : memref<1x8x128xf32, #tpu.memory_space<vmem>>, vector<1x8x128xf32>
      %225 = vector.shape_cast %224 : vector<1x8x128xf32> to vector<8x128xf32>
      %cst_95 = arith.constant 0.000000e+00 : f32
      %226 = vector.broadcast %cst_95 : f32 to vector<8x128xf32>
      %227 = arith.select %223, %225, %226 : vector<8x128xi1>, vector<8x128xf32>
      %cst_96 = arith.constant dense<0.000000e+00> : vector<128xf32>
      %228 = vector.multi_reduction <add>, %227, %cst_96 [0] : vector<8x128xf32> to vector<128xf32>
      %229 = vector.shape_cast %228 : vector<128xf32> to vector<1x128xf32>
      %c17 = arith.constant 17 : index
      %c0_97 = arith.constant 0 : index
      %230 = vector.load %arg17[%c17, %c0_97] : memref<32x128xf32, #tpu.memory_space<vmem>>, vector<1x128xf32>
      tpu.vector_store %arg17[%c17, %c0_97], %229 {strides = array<i32>} : memref<32x128xf32, #tpu.memory_space<vmem>>, vector<1x128xf32>,
    } else {
    }
    %c0 = arith.constant 0 : index
    %c0_2 = arith.constant 0 : index
    %9 = vector.load %arg17[%c0, %c0_2] : memref<32x128xf32, #tpu.memory_space<vmem>>, vector<32x128xf32>
    %cst = arith.constant dense<0.000000e+00> : vector<32xf32>
    %10 = vector.multi_reduction <add>, %9, %cst [1] : vector<32x128xf32> to vector<32xf32>
    %11 = vector.shape_cast %10 : vector<32xf32> to vector<32x1xf32>
    %cst_3 = arith.constant 1.280000e+02 : f32
    %12 = vector.broadcast %cst_3 : f32 to vector<32x1xf32>
    %13 = arith.divf %11, %12 : vector<32x1xf32>
    %14 = vector.broadcast %13 : vector<32x1xf32> to vector<32x128xf32>
    %15 = arith.subf %9, %14 : vector<32x128xf32>
    %16 = arith.mulf %15, %15 : vector<32x128xf32>
    %cst_4 = arith.constant dense<0.000000e+00> : vector<32xf32>
    %17 = vector.multi_reduction <add>, %16, %cst_4 [1] : vector<32x128xf32> to vector<32xf32>
    %18 = vector.shape_cast %17 : vector<32xf32> to vector<32x1xf32>
    %cst_5 = arith.constant 1.280000e+02 : f32
    %19 = vector.broadcast %cst_5 : f32 to vector<32x1xf32>
    %20 = arith.divf %18, %19 : vector<32x1xf32>
    %21 = vector.broadcast %13 : vector<32x1xf32> to vector<32x128xf32>
    %22 = arith.subf %9, %21 : vector<32x128xf32>
    %cst_6 = arith.constant 9.99999974E-6 : f32
    %23 = vector.broadcast %cst_6 : f32 to vector<32x1xf32>
    %24 = arith.addf %20, %23 : vector<32x1xf32>
    %25 = math.rsqrt %24 : vector<32x1xf32>
    %26 = vector.broadcast %25 : vector<32x1xf32> to vector<32x128xf32>
    %27 = arith.mulf %22, %26 : vector<32x128xf32>
    %c0_7 = arith.constant 0 : index
    %c0_8 = arith.constant 0 : index
    %c0_9 = arith.constant 0 : index
    %28 = vector.load %arg4[%c0_7, %c0_8, %c0_9] : memref<1x1x128xf32, #tpu.memory_space<vmem>>, vector<1x1x128xf32>
    %29 = vector.shape_cast %28 : vector<1x1x128xf32> to vector<1x128xf32>
    %30 = vector.broadcast %29 : vector<1x128xf32> to vector<32x128xf32>
    %31 = arith.mulf %27, %30 : vector<32x128xf32>
    %c0_10 = arith.constant 0 : index
    %c0_11 = arith.constant 0 : index
    %c0_12 = arith.constant 0 : index
    %32 = vector.load %arg5[%c0_10, %c0_11, %c0_12] : memref<1x1x128xf32, #tpu.memory_space<vmem>>, vector<1x1x128xf32>
    %33 = vector.shape_cast %32 : vector<1x1x128xf32> to vector<1x128xf32>
    %34 = vector.broadcast %33 : vector<1x128xf32> to vector<32x128xf32>
    %35 = arith.addf %31, %34 : vector<32x128xf32>
    %36 = arith.truncf %35 : vector<32x128xf32> to vector<32x128xbf16>
    %c0_13 = arith.constant 0 : index
    %c0_14 = arith.constant 0 : index
    %c0_15 = arith.constant 0 : index
    %37 = vector.load %arg6[%c0_13, %c0_14, %c0_15] : memref<1x128x384xbf16, #tpu.memory_space<vmem>>, vector<1x128x384xbf16>
    %38 = vector.shape_cast %37 : vector<1x128x384xbf16> to vector<128x384xbf16>
    %cst_16 = arith.constant dense<0.000000e+00> : vector<32x384xf32>
    %39 = tpu.matmul %36, %38, %cst_16 {dimension_numbers = #tpu.dot_dimension_numbers<[1], [0], [0], [1], [0, 0, 1, 1], [], []>} : vector<32x128xbf16>, vector<128x384xbf16>, vector<32x384xf32> -> vector<32x384xf32>
    %c0_17 = arith.constant 0 : index
    %c0_18 = arith.constant 0 : index
    %c0_19 = arith.constant 0 : index
    %40 = vector.load %arg7[%c0_17, %c0_18, %c0_19] : memref<1x1x384xf32, #tpu.memory_space<vmem>>, vector<1x1x384xf32>
    %41 = vector.shape_cast %40 : vector<1x1x384xf32> to vector<1x384xf32>
    %42 = vector.broadcast %41 : vector<1x384xf32> to vector<32x384xf32>
    %43 = arith.addf %39, %42 : vector<32x384xf32>
    %44 = tpu.iota {dimensions = array<i32: 1>} : vector<32x32xi32>
    %45 = vector.broadcast %3 : i32 to vector<32x32xi32>
    %46 = arith.cmpi slt, %44, %45 : vector<32x32xi32>
    %cst_20 = arith.constant 0.000000e+00 : f32
    %47 = vector.broadcast %cst_20 : f32 to vector<32x128xf32>
    %48 = vector.extract_strided_slice %43 {offsets = [0, 0], sizes = [32, 32], strides = [1, 1]} : vector<32x384xf32> to vector<32x32xf32>
    %49 = arith.truncf %48 : vector<32x32xf32> to vector<32x32xbf16>
    %50 = vector.extract_strided_slice %43 {offsets = [0, 128], sizes = [32, 32], strides = [1, 1]} : vector<32x384xf32> to vector<32x32xf32>
    %51 = arith.truncf %50 : vector<32x32xf32> to vector<32x32xbf16>
    %52 = vector.extract_strided_slice %43 {offsets = [0, 256], sizes = [32, 32], strides = [1, 1]} : vector<32x384xf32> to vector<32x32xf32>
    %53 = arith.truncf %52 : vector<32x32xf32> to vector<32x32xbf16>
    %cst_21 = arith.constant dense<0.000000e+00> : vector<32x32xf32>
    %54 = tpu.matmul %49, %51, %cst_21 {dimension_numbers = #tpu.dot_dimension_numbers<[1], [1], [0], [0], [0, 0, 1, 0], [], []>} : vector<32x32xbf16>, vector<32x32xbf16>, vector<32x32xf32> -> vector<32x32xf32>
    %cst_22 = arith.constant 0.176776692 : f32
    %55 = vector.broadcast %cst_22 : f32 to vector<32x32xf32>
    %56 = arith.mulf %54, %55 : vector<32x32xf32>
    %cst_23 = arith.constant -1.000000e+30 : f32
    %57 = vector.broadcast %cst_23 : f32 to vector<32x32xf32>
    %58 = arith.select %46, %56, %57 : vector<32x32xi1>, vector<32x32xf32>
    %cst_24 = arith.constant dense<0xFF800000> : vector<32xf32>
    %59 = vector.multi_reduction <maximumf>, %58, %cst_24 [1] : vector<32x32xf32> to vector<32xf32>
    %60 = vector.shape_cast %59 : vector<32xf32> to vector<32x1xf32>
    %61 = vector.broadcast %60 : vector<32x1xf32> to vector<32x32xf32>
    %62 = arith.subf %58, %61 : vector<32x32xf32>
    %63 = math.exp %62 : vector<32x32xf32>
    %cst_25 = arith.constant dense<0.000000e+00> : vector<32xf32>
    %64 = vector.multi_reduction <add>, %63, %cst_25 [1] : vector<32x32xf32> to vector<32xf32>
    %65 = vector.shape_cast %64 : vector<32xf32> to vector<32x1xf32>
    %66 = tpu.reciprocal %65 {approx = true} : vector<32x1xf32> -> vector<32x1xf32>
    %67 = vector.broadcast %66 : vector<32x1xf32> to vector<32x32xf32>
    %68 = arith.mulf %63, %67 : vector<32x32xf32>
    %69 = arith.truncf %68 : vector<32x32xf32> to vector<32x32xbf16>
    %cst_26 = arith.constant dense<0.000000e+00> : vector<32x32xf32>
    %70 = tpu.matmul %69, %53, %cst_26 {dimension_numbers = #tpu.dot_dimension_numbers<[1], [0], [0], [1], [0, 0, 1, 1], [], []>} : vector<32x32xbf16>, vector<32x32xbf16>, vector<32x32xf32> -> vector<32x32xf32>
    %71 = arith.truncf %70 : vector<32x32xf32> to vector<32x32xbf16>
    %c0_27 = arith.constant 0 : index
    %c0_28 = arith.constant 0 : index
    %c0_29 = arith.constant 0 : index
    %72 = vector.load %arg8[%c0_27, %c0_28, %c0_29] : memref<1x128x128xbf16, #tpu.memory_space<vmem>>, vector<1x32x128xbf16>
    %73 = vector.shape_cast %72 : vector<1x32x128xbf16> to vector<32x128xbf16>
    %cst_30 = arith.constant dense<0.000000e+00> : vector<32x128xf32>
    %74 = tpu.matmul %71, %73, %cst_30 {dimension_numbers = #tpu.dot_dimension_numbers<[1], [0], [0], [1], [0, 0, 1, 1], [], []>} : vector<32x32xbf16>, vector<32x128xbf16>, vector<32x128xf32> -> vector<32x128xf32>
    %75 = arith.addf %47, %74 : vector<32x128xf32>
    %76 = vector.extract_strided_slice %43 {offsets = [0, 32], sizes = [32, 32], strides = [1, 1]} : vector<32x384xf32> to vector<32x32xf32>
    %77 = arith.truncf %76 : vector<32x32xf32> to vector<32x32xbf16>
    %78 = vector.extract_strided_slice %43 {offsets = [0, 160], sizes = [32, 32], strides = [1, 1]} : vector<32x384xf32> to vector<32x32xf32>
    %79 = arith.truncf %78 : vector<32x32xf32> to vector<32x32xbf16>
    %80 = vector.extract_strided_slice %43 {offsets = [0, 288], sizes = [32, 32], strides = [1, 1]} : vector<32x384xf32> to vector<32x32xf32>
    %81 = arith.truncf %80 : vector<32x32xf32> to vector<32x32xbf16>
    %cst_31 = arith.constant dense<0.000000e+00> : vector<32x32xf32>
    %82 = tpu.matmul %77, %79, %cst_31 {dimension_numbers = #tpu.dot_dimension_numbers<[1], [1], [0], [0], [0, 0, 1, 0], [], []>} : vector<32x32xbf16>, vector<32x32xbf16>, vector<32x32xf32> -> vector<32x32xf32>
    %cst_32 = arith.constant 0.176776692 : f32
    %83 = vector.broadcast %cst_32 : f32 to vector<32x32xf32>
    %84 = arith.mulf %82, %83 : vector<32x32xf32>
    %cst_33 = arith.constant -1.000000e+30 : f32
    %85 = vector.broadcast %cst_33 : f32 to vector<32x32xf32>
    %86 = arith.select %46, %84, %85 : vector<32x32xi1>, vector<32x32xf32>
    %cst_34 = arith.constant dense<0xFF800000> : vector<32xf32>
    %87 = vector.multi_reduction <maximumf>, %86, %cst_34 [1] : vector<32x32xf32> to vector<32xf32>
    %88 = vector.shape_cast %87 : vector<32xf32> to vector<32x1xf32>
    %89 = vector.broadcast %88 : vector<32x1xf32> to vector<32x32xf32>
    %90 = arith.subf %86, %89 : vector<32x32xf32>
    %91 = math.exp %90 : vector<32x32xf32>
    %cst_35 = arith.constant dense<0.000000e+00> : vector<32xf32>
    %92 = vector.multi_reduction <add>, %91, %cst_35 [1] : vector<32x32xf32> to vector<32xf32>
    %93 = vector.shape_cast %92 : vector<32xf32> to vector<32x1xf32>
    %94 = tpu.reciprocal %93 {approx = true} : vector<32x1xf32> -> vector<32x1xf32>
    %95 = vector.broadcast %94 : vector<32x1xf32> to vector<32x32xf32>
    %96 = arith.mulf %91, %95 : vector<32x32xf32>
    %97 = arith.truncf %96 : vector<32x32xf32> to vector<32x32xbf16>
    %cst_36 = arith.constant dense<0.000000e+00> : vector<32x32xf32>
    %98 = tpu.matmul %97, %81, %cst_36 {dimension_numbers = #tpu.dot_dimension_numbers<[1], [0], [0], [1], [0, 0, 1, 1], [], []>} : vector<32x32xbf16>, vector<32x32xbf16>, vector<32x32xf32> -> vector<32x32xf32>
    %99 = arith.truncf %98 : vector<32x32xf32> to vector<32x32xbf16>
    %c0_37 = arith.constant 0 : index
    %c32 = arith.constant 32 : index
    %c0_38 = arith.constant 0 : index
    %100 = vector.load %arg8[%c0_37, %c32, %c0_38] : memref<1x128x128xbf16, #tpu.memory_space<vmem>>, vector<1x32x128xbf16>
    %101 = vector.shape_cast %100 : vector<1x32x128xbf16> to vector<32x128xbf16>
    %cst_39 = arith.constant dense<0.000000e+00> : vector<32x128xf32>
    %102 = tpu.matmul %99, %101, %cst_39 {dimension_numbers = #tpu.dot_dimension_numbers<[1], [0], [0], [1], [0, 0, 1, 1], [], []>} : vector<32x32xbf16>, vector<32x128xbf16>, vector<32x128xf32> -> vector<32x128xf32>
    %103 = arith.addf %75, %102 : vector<32x128xf32>
    %104 = vector.extract_strided_slice %43 {offsets = [0, 64], sizes = [32, 32], strides = [1, 1]} : vector<32x384xf32> to vector<32x32xf32>
    %105 = arith.truncf %104 : vector<32x32xf32> to vector<32x32xbf16>
    %106 = vector.extract_strided_slice %43 {offsets = [0, 192], sizes = [32, 32], strides = [1, 1]} : vector<32x384xf32> to vector<32x32xf32>
    %107 = arith.truncf %106 : vector<32x32xf32> to vector<32x32xbf16>
    %108 = vector.extract_strided_slice %43 {offsets = [0, 320], sizes = [32, 32], strides = [1, 1]} : vector<32x384xf32> to vector<32x32xf32>
    %109 = arith.truncf %108 : vector<32x32xf32> to vector<32x32xbf16>
    %cst_40 = arith.constant dense<0.000000e+00> : vector<32x32xf32>
    %110 = tpu.matmul %105, %107, %cst_40 {dimension_numbers = #tpu.dot_dimension_numbers<[1], [1], [0], [0], [0, 0, 1, 0], [], []>} : vector<32x32xbf16>, vector<32x32xbf16>, vector<32x32xf32> -> vector<32x32xf32>
    %cst_41 = arith.constant 0.176776692 : f32
    %111 = vector.broadcast %cst_41 : f32 to vector<32x32xf32>
    %112 = arith.mulf %110, %111 : vector<32x32xf32>
    %cst_42 = arith.constant -1.000000e+30 : f32
    %113 = vector.broadcast %cst_42 : f32 to vector<32x32xf32>
    %114 = arith.select %46, %112, %113 : vector<32x32xi1>, vector<32x32xf32>
    %cst_43 = arith.constant dense<0xFF800000> : vector<32xf32>
    %115 = vector.multi_reduction <maximumf>, %114, %cst_43 [1] : vector<32x32xf32> to vector<32xf32>
    %116 = vector.shape_cast %115 : vector<32xf32> to vector<32x1xf32>
    %117 = vector.broadcast %116 : vector<32x1xf32> to vector<32x32xf32>
    %118 = arith.subf %114, %117 : vector<32x32xf32>
    %119 = math.exp %118 : vector<32x32xf32>
    %cst_44 = arith.constant dense<0.000000e+00> : vector<32xf32>
    %120 = vector.multi_reduction <add>, %119, %cst_44 [1] : vector<32x32xf32> to vector<32xf32>
    %121 = vector.shape_cast %120 : vector<32xf32> to vector<32x1xf32>
    %122 = tpu.reciprocal %121 {approx = true} : vector<32x1xf32> -> vector<32x1xf32>
    %123 = vector.broadcast %122 : vector<32x1xf32> to vector<32x32xf32>
    %124 = arith.mulf %119, %123 : vector<32x32xf32>
    %125 = arith.truncf %124 : vector<32x32xf32> to vector<32x32xbf16>
    %cst_45 = arith.constant dense<0.000000e+00> : vector<32x32xf32>
    %126 = tpu.matmul %125, %109, %cst_45 {dimension_numbers = #tpu.dot_dimension_numbers<[1], [0], [0], [1], [0, 0, 1, 1], [], []>} : vector<32x32xbf16>, vector<32x32xbf16>, vector<32x32xf32> -> vector<32x32xf32>
    %127 = arith.truncf %126 : vector<32x32xf32> to vector<32x32xbf16>
    %c0_46 = arith.constant 0 : index
    %c64 = arith.constant 64 : index
    %c0_47 = arith.constant 0 : index
    %128 = vector.load %arg8[%c0_46, %c64, %c0_47] : memref<1x128x128xbf16, #tpu.memory_space<vmem>>, vector<1x32x128xbf16>
    %129 = vector.shape_cast %128 : vector<1x32x128xbf16> to vector<32x128xbf16>
    %cst_48 = arith.constant dense<0.000000e+00> : vector<32x128xf32>
    %130 = tpu.matmul %127, %129, %cst_48 {dimension_numbers = #tpu.dot_dimension_numbers<[1], [0], [0], [1], [0, 0, 1, 1], [], []>} : vector<32x32xbf16>, vector<32x128xbf16>, vector<32x128xf32> -> vector<32x128xf32>
    %131 = arith.addf %103, %130 : vector<32x128xf32>
    %132 = vector.extract_strided_slice %43 {offsets = [0, 96], sizes = [32, 32], strides = [1, 1]} : vector<32x384xf32> to vector<32x32xf32>
    %133 = arith.truncf %132 : vector<32x32xf32> to vector<32x32xbf16>
    %134 = vector.extract_strided_slice %43 {offsets = [0, 224], sizes = [32, 32], strides = [1, 1]} : vector<32x384xf32> to vector<32x32xf32>
    %135 = arith.truncf %134 : vector<32x32xf32> to vector<32x32xbf16>
    %136 = vector.extract_strided_slice %43 {offsets = [0, 352], sizes = [32, 32], strides = [1, 1]} : vector<32x384xf32> to vector<32x32xf32>
    %137 = arith.truncf %136 : vector<32x32xf32> to vector<32x32xbf16>
    %cst_49 = arith.constant dense<0.000000e+00> : vector<32x32xf32>
    %138 = tpu.matmul %133, %135, %cst_49 {dimension_numbers = #tpu.dot_dimension_numbers<[1], [1], [0], [0], [0, 0, 1, 0], [], []>} : vector<32x32xbf16>, vector<32x32xbf16>, vector<32x32xf32> -> vector<32x32xf32>
    %cst_50 = arith.constant 0.176776692 : f32
    %139 = vector.broadcast %cst_50 : f32 to vector<32x32xf32>
    %140 = arith.mulf %138, %139 : vector<32x32xf32>
    %cst_51 = arith.constant -1.000000e+30 : f32
    %141 = vector.broadcast %cst_51 : f32 to vector<32x32xf32>
    %142 = arith.select %46, %140, %141 : vector<32x32xi1>, vector<32x32xf32>
    %cst_52 = arith.constant dense<0xFF800000> : vector<32xf32>
    %143 = vector.multi_reduction <maximumf>, %142, %cst_52 [1] : vector<32x32xf32> to vector<32xf32>
    %144 = vector.shape_cast %143 : vector<32xf32> to vector<32x1xf32>
    %145 = vector.broadcast %144 : vector<32x1xf32> to vector<32x32xf32>
    %146 = arith.subf %142, %145 : vector<32x32xf32>
    %147 = math.exp %146 : vector<32x32xf32>
    %cst_53 = arith.constant dense<0.000000e+00> : vector<32xf32>
    %148 = vector.multi_reduction <add>, %147, %cst_53 [1] : vector<32x32xf32> to vector<32xf32>
    %149 = vector.shape_cast %148 : vector<32xf32> to vector<32x1xf32>
    %150 = tpu.reciprocal %149 {approx = true} : vector<32x1xf32> -> vector<32x1xf32>
    %151 = vector.broadcast %150 : vector<32x1xf32> to vector<32x32xf32>
    %152 = arith.mulf %147, %151 : vector<32x32xf32>
    %153 = arith.truncf %152 : vector<32x32xf32> to vector<32x32xbf16>
    %cst_54 = arith.constant dense<0.000000e+00> : vector<32x32xf32>
    %154 = tpu.matmul %153, %137, %cst_54 {dimension_numbers = #tpu.dot_dimension_numbers<[1], [0], [0], [1], [0, 0, 1, 1], [], []>} : vector<32x32xbf16>, vector<32x32xbf16>, vector<32x32xf32> -> vector<32x32xf32>
    %155 = arith.truncf %154 : vector<32x32xf32> to vector<32x32xbf16>
    %c0_55 = arith.constant 0 : index
    %c96 = arith.constant 96 : index
    %c0_56 = arith.constant 0 : index
    %156 = vector.load %arg8[%c0_55, %c96, %c0_56] : memref<1x128x128xbf16, #tpu.memory_space<vmem>>, vector<1x32x128xbf16>
    %157 = vector.shape_cast %156 : vector<1x32x128xbf16> to vector<32x128xbf16>
    %cst_57 = arith.constant dense<0.000000e+00> : vector<32x128xf32>
    %158 = tpu.matmul %155, %157, %cst_57 {dimension_numbers = #tpu.dot_dimension_numbers<[1], [0], [0], [1], [0, 0, 1, 1], [], []>} : vector<32x32xbf16>, vector<32x128xbf16>, vector<32x128xf32> -> vector<32x128xf32>
    %159 = arith.addf %131, %158 : vector<32x128xf32>
    %160 = arith.addf %9, %159 : vector<32x128xf32>
    %c0_58 = arith.constant 0 : index
    %c0_59 = arith.constant 0 : index
    %c0_60 = arith.constant 0 : index
    %161 = vector.load %arg9[%c0_58, %c0_59, %c0_60] : memref<1x1x128xf32, #tpu.memory_space<vmem>>, vector<1x1x128xf32>
    %162 = vector.shape_cast %161 : vector<1x1x128xf32> to vector<1x128xf32>
    %163 = vector.broadcast %162 : vector<1x128xf32> to vector<32x128xf32>
    %164 = arith.addf %160, %163 : vector<32x128xf32>
    %cst_61 = arith.constant dense<0.000000e+00> : vector<32xf32>
    %165 = vector.multi_reduction <add>, %164, %cst_61 [1] : vector<32x128xf32> to vector<32xf32>
    %166 = vector.shape_cast %165 : vector<32xf32> to vector<32x1xf32>
    %cst_62 = arith.constant 1.280000e+02 : f32
    %167 = vector.broadcast %cst_62 : f32 to vector<32x1xf32>
    %168 = arith.divf %166, %167 : vector<32x1xf32>
    %169 = vector.broadcast %168 : vector<32x1xf32> to vector<32x128xf32>
    %170 = arith.subf %164, %169 : vector<32x128xf32>
    %171 = arith.mulf %170, %170 : vector<32x128xf32>
    %cst_63 = arith.constant dense<0.000000e+00> : vector<32xf32>
    %172 = vector.multi_reduction <add>, %171, %cst_63 [1] : vector<32x128xf32> to vector<32xf32>
    %173 = vector.shape_cast %172 : vector<32xf32> to vector<32x1xf32>
    %cst_64 = arith.constant 1.280000e+02 : f32
    %174 = vector.broadcast %cst_64 : f32 to vector<32x1xf32>
    %175 = arith.divf %173, %174 : vector<32x1xf32>
    %176 = vector.broadcast %168 : vector<32x1xf32> to vector<32x128xf32>
    %177 = arith.subf %164, %176 : vector<32x128xf32>
    %cst_65 = arith.constant 9.99999974E-6 : f32
    %178 = vector.broadcast %cst_65 : f32 to vector<32x1xf32>
    %179 = arith.addf %175, %178 : vector<32x1xf32>
    %180 = math.rsqrt %179 : vector<32x1xf32>
    %181 = vector.broadcast %180 : vector<32x1xf32> to vector<32x128xf32>
    %182 = arith.mulf %177, %181 : vector<32x128xf32>
    %c0_66 = arith.constant 0 : index
    %c0_67 = arith.constant 0 : index
    %c0_68 = arith.constant 0 : index
    %183 = vector.load %arg10[%c0_66, %c0_67, %c0_68] : memref<1x1x128xf32, #tpu.memory_space<vmem>>, vector<1x1x128xf32>
    %184 = vector.shape_cast %183 : vector<1x1x128xf32> to vector<1x128xf32>
    %185 = vector.broadcast %184 : vector<1x128xf32> to vector<32x128xf32>
    %186 = arith.mulf %182, %185 : vector<32x128xf32>
    %c0_69 = arith.constant 0 : index
    %c0_70 = arith.constant 0 : index
    %c0_71 = arith.constant 0 : index
    %187 = vector.load %arg11[%c0_69, %c0_70, %c0_71] : memref<1x1x128xf32, #tpu.memory_space<vmem>>, vector<1x1x128xf32>
    %188 = vector.shape_cast %187 : vector<1x1x128xf32> to vector<1x128xf32>
    %189 = vector.broadcast %188 : vector<1x128xf32> to vector<32x128xf32>
    %190 = arith.addf %186, %189 : vector<32x128xf32>
    %191 = arith.truncf %190 : vector<32x128xf32> to vector<32x128xbf16>
    %c0_72 = arith.constant 0 : index
    %c0_73 = arith.constant 0 : index
    %c0_74 = arith.constant 0 : index
    %192 = vector.load %arg12[%c0_72, %c0_73, %c0_74] : memref<1x128x512xbf16, #tpu.memory_space<vmem>>, vector<1x128x512xbf16>
    %193 = vector.shape_cast %192 : vector<1x128x512xbf16> to vector<128x512xbf16>
    %cst_75 = arith.constant dense<0.000000e+00> : vector<32x512xf32>
    %194 = tpu.matmul %191, %193, %cst_75 {dimension_numbers = #tpu.dot_dimension_numbers<[1], [0], [0], [1], [0, 0, 1, 1], [], []>} : vector<32x128xbf16>, vector<128x512xbf16>, vector<32x512xf32> -> vector<32x512xf32>
    %c0_76 = arith.constant 0 : index
    %c0_77 = arith.constant 0 : index
    %c0_78 = arith.constant 0 : index
    %195 = vector.load %arg13[%c0_76, %c0_77, %c0_78] : memref<1x1x512xf32, #tpu.memory_space<vmem>>, vector<1x1x512xf32>
    %196 = vector.shape_cast %195 : vector<1x1x512xf32> to vector<1x512xf32>
    %197 = vector.broadcast %196 : vector<1x512xf32> to vector<32x512xf32>
    %198 = arith.addf %194, %197 : vector<32x512xf32>
    %cst_79 = arith.constant 1.702000e+00 : f32
    %199 = vector.broadcast %cst_79 : f32 to vector<32x512xf32>
    %200 = arith.mulf %199, %198 : vector<32x512xf32>
    %201 = arith.negf %200 : vector<32x512xf32>
    %202 = math.exp %201 : vector<32x512xf32>
    %cst_80 = arith.constant 1.000000e+00 : f32
    %203 = vector.broadcast %cst_80 : f32 to vector<32x512xf32>
    %204 = arith.addf %203, %202 : vector<32x512xf32>
    %205 = arith.divf %203, %204 : vector<32x512xf32>
    %206 = arith.mulf %198, %205 : vector<32x512xf32>
    %207 = arith.truncf %206 : vector<32x512xf32> to vector<32x512xbf16>
    %c0_81 = arith.constant 0 : index
    %c0_82 = arith.constant 0 : index
    %c0_83 = arith.constant 0 : index
    %208 = vector.load %arg14[%c0_81, %c0_82, %c0_83] : memref<1x512x128xbf16, #tpu.memory_space<vmem>>, vector<1x512x128xbf16>
    %209 = vector.shape_cast %208 : vector<1x512x128xbf16> to vector<512x128xbf16>
    %cst_84 = arith.constant dense<0.000000e+00> : vector<32x128xf32>
    %210 = tpu.matmul %207, %209, %cst_84 {dimension_numbers = #tpu.dot_dimension_numbers<[1], [0], [0], [1], [0, 0, 1, 1], [], []>} : vector<32x512xbf16>, vector<512x128xbf16>, vector<32x128xf32> -> vector<32x128xf32>
    %c0_85 = arith.constant 0 : index
    %c0_86 = arith.constant 0 : index
    %c0_87 = arith.constant 0 : index
    %211 = vector.load %arg15[%c0_85, %c0_86, %c0_87] : memref<1x1x128xf32, #tpu.memory_space<vmem>>, vector<1x1x128xf32>
    %212 = vector.shape_cast %211 : vector<1x1x128xf32> to vector<1x128xf32>
    %213 = vector.broadcast %212 : vector<1x128xf32> to vector<32x128xf32>
    %214 = arith.addf %210, %213 : vector<32x128xf32>
    %215 = arith.addf %164, %214 : vector<32x128xf32>
    %c0_88 = arith.constant 0 : index
    %c0_89 = arith.constant 0 : index
    %216 = vector.load %arg17[%c0_88, %c0_89] : memref<32x128xf32, #tpu.memory_space<vmem>>, vector<32x128xf32>
    tpu.vector_store %arg17[%c0_88, %c0_89], %215 {strides = array<i32>} : memref<32x128xf32, #tpu.memory_space<vmem>>, vector<32x128xf32>,
    %c11_i32 = arith.constant 11 : i32
    %217 = arith.cmpi eq, %arg1, %c11_i32 : i32
    %218 = arith.extui %217 : i1 to i32
    %c0_i32_90 = arith.constant 0 : i32
    %219 = arith.cmpi ne, %218, %c0_i32_90 : i32
    scf.if %219 {
      %c0_91 = arith.constant 0 : index
      %c0_92 = arith.constant 0 : index
      %220 = vector.load %arg17[%c0_91, %c0_92] : memref<32x128xf32, #tpu.memory_space<vmem>>, vector<32x128xf32>
      %c0_93 = arith.constant 0 : index
      %c0_94 = arith.constant 0 : index
      %c0_95 = arith.constant 0 : index
      %221 = vector.load %arg16[%c0_93, %c0_94, %c0_95] : memref<1x32x128xf32, #tpu.memory_space<vmem>>, vector<1x32x128xf32>
      %222 = vector.shape_cast %221 : vector<1x32x128xf32> to vector<32x128xf32>
      %223 = vector.shape_cast %220 : vector<32x128xf32> to vector<1x32x128xf32>
      tpu.vector_store %arg16[%c0_93, %c0_94, %c0_95], %223 {strides = array<i32>} : memref<1x32x128xf32, #tpu.memory_space<vmem>>, vector<1x32x128xf32>,
    } else {
    }
    return
  }
  func.func @transform_0(%arg0: i32, %arg1: i32) -> (i32, i32, i32) {
    %c0_i32 = arith.constant 0 : i32
    %c0_i32_0 = arith.constant 0 : i32
    %c0_i32_1 = arith.constant 0 : i32
    return %arg0, %c0_i32, %c0_i32_0 : i32, i32, i32
  }
  func.func @transform_1(%arg0: i32, %arg1: i32) -> (i32, i32, i32) {
    %c0_i32 = arith.constant 0 : i32
    %c0_i32_0 = arith.constant 0 : i32
    %c0_i32_1 = arith.constant 0 : i32
    return %arg0, %c0_i32, %c0_i32_0 : i32, i32, i32
  }
  func.func @transform_2(%arg0: i32, %arg1: i32) -> (i32, i32, i32) {
    %c0_i32 = arith.constant 0 : i32
    %c0_i32_0 = arith.constant 0 : i32
    %c0_i32_1 = arith.constant 0 : i32
    return %arg1, %c0_i32, %c0_i32_0 : i32, i32, i32
  }
  func.func @transform_3(%arg0: i32, %arg1: i32) -> (i32, i32, i32) {
    %c0_i32 = arith.constant 0 : i32
    %c0_i32_0 = arith.constant 0 : i32
    %c0_i32_1 = arith.constant 0 : i32
    return %arg1, %c0_i32, %c0_i32_0 : i32, i32, i32
  }
  func.func @transform_4(%arg0: i32, %arg1: i32) -> (i32, i32, i32) {
    %c0_i32 = arith.constant 0 : i32
    %c0_i32_0 = arith.constant 0 : i32
    %c0_i32_1 = arith.constant 0 : i32
    return %arg1, %c0_i32, %c0_i32_0 : i32, i32, i32
  }
  func.func @transform_5(%arg0: i32, %arg1: i32) -> (i32, i32, i32) {
    %c0_i32 = arith.constant 0 : i32
    %c0_i32_0 = arith.constant 0 : i32
    %c0_i32_1 = arith.constant 0 : i32
    return %arg1, %c0_i32, %c0_i32_0 : i32, i32, i32
  }
  func.func @transform_6(%arg0: i32, %arg1: i32) -> (i32, i32, i32) {
    %c0_i32 = arith.constant 0 : i32
    %c0_i32_0 = arith.constant 0 : i32
    %c0_i32_1 = arith.constant 0 : i32
    return %arg1, %c0_i32, %c0_i32_0 : i32, i32, i32
  }
  func.func @transform_7(%arg0: i32, %arg1: i32) -> (i32, i32, i32) {
    %c0_i32 = arith.constant 0 : i32
    %c0_i32_0 = arith.constant 0 : i32
    %c0_i32_1 = arith.constant 0 : i32
    return %arg1, %c0_i32, %c0_i32_0 : i32, i32, i32
  }
  func.func @transform_8(%arg0: i32, %arg1: i32) -> (i32, i32, i32) {
    %c0_i32 = arith.constant 0 : i32
    %c0_i32_0 = arith.constant 0 : i32
    %c0_i32_1 = arith.constant 0 : i32
    return %arg1, %c0_i32, %c0_i32_0 : i32, i32, i32
  }
  func.func @transform_9(%arg0: i32, %arg1: i32) -> (i32, i32, i32) {
    %c0_i32 = arith.constant 0 : i32
    %c0_i32_0 = arith.constant 0 : i32
    %c0_i32_1 = arith.constant 0 : i32
    return %arg1, %c0_i32, %c0_i32_0 : i32, i32, i32
  }
  func.func @transform_10(%arg0: i32, %arg1: i32) -> (i32, i32, i32) {
    %c0_i32 = arith.constant 0 : i32
    %c0_i32_0 = arith.constant 0 : i32
    %c0_i32_1 = arith.constant 0 : i32
    return %arg1, %c0_i32, %c0_i32_0 : i32, i32, i32
  }
  func.func @transform_11(%arg0: i32, %arg1: i32) -> (i32, i32, i32) {
    %c0_i32 = arith.constant 0 : i32
    %c0_i32_0 = arith.constant 0 : i32
    %c0_i32_1 = arith.constant 0 : i32
    return %arg1, %c0_i32, %c0_i32_0 : i32, i32, i32
  }
  func.func @transform_12(%arg0: i32, %arg1: i32) -> (i32, i32, i32) {
    %c0_i32 = arith.constant 0 : i32
    %c0_i32_0 = arith.constant 0 : i32
    %c0_i32_1 = arith.constant 0 : i32
    return %arg1, %c0_i32, %c0_i32_0 : i32, i32, i32
  }
  func.func @transform_13(%arg0: i32, %arg1: i32) -> (i32, i32, i32) {
    %c0_i32 = arith.constant 0 : i32
    %c0_i32_0 = arith.constant 0 : i32
    %c0_i32_1 = arith.constant 0 : i32
    return %arg1, %c0_i32, %c0_i32_0 : i32, i32, i32
  }
  func.func @transform_14(%arg0: i32, %arg1: i32) -> (i32, i32, i32) {
    %c0_i32 = arith.constant 0 : i32
    %c0_i32_0 = arith.constant 0 : i32
    %c0_i32_1 = arith.constant 0 : i32
    return %arg0, %c0_i32, %c0_i32_0 : i32, i32, i32
  }
}

</mosaic_0001>

<bundles_post_ra>
// kernel: clip_mapper_forward.1
= control target key start
LH: loop header
LB: loop body
LE: loop exit
PB: predicated region body
PF: predicated region fallthrough
CT: control target
= control target key end

     0   :  { %s6059_s0 = inlined_call_operand.vmem [shape: f32[2,32,128], index: 0, kind: input, shape index: {}]   ;;  %s6060_s1 = inlined_call_operand.hbm [shape: f32[2,8,128], index: 1, kind: input, shape index: {}]   ;;  %s6061_s2 = inlined_call_operand.hbm [shape: f32[12,1,128], index: 2, kind: input, shape index: {}]   ;;  %s6062_s3 = inlined_call_operand.hbm [shape: f32[12,1,128], index: 3, kind: input, shape index: {}]   ;;  %s6063_s4 = inlined_call_operand.hbm [shape: bf16[12,128,384], index: 4, kind: input, shape index: {}]   ;;  %s6064_s5 = inlined_call_operand.hbm [shape: f32[12,1,384], index: 5, kind: input, shape index: {}]   ;;  %s6065_s6 = inlined_call_operand.hbm [shape: bf16[12,128,128], index: 6, kind: input, shape index: {}]   ;;  %s6066_s7 = inlined_call_operand.hbm [shape: f32[12,1,128], index: 7, kind: input, shape index: {}]   ;;  %s6067_s8 = inlined_call_operand.hbm [shape: f32[12,1,128], index: 8, kind: input, shape index: {}]   ;;  %s6068_s9 = inlined_call_operand.hbm [shape: f32[12,1,128], index: 9, kind: input, shape index: {}]   ;;  %s6069_s10 = inlined_call_operand.hbm [shape: bf16[12,128,512], index: 10, kind: input, shape index: {}]   ;;  %s6070_s11 = inlined_call_operand.hbm [shape: f32[12,1,512], index: 11, kind: input, shape index: {}]   ;;  %s6071_s12 = inlined_call_operand.hbm [shape: bf16[12,512,128], index: 12, kind: input, shape index: {}]   ;;  %s6072_s13 = inlined_call_operand.hbm [shape: f32[12,1,128], index: 13, kind: input, shape index: {}]   ;;  %s6073_s14 = inlined_call_operand.vmem [shape: f32[2,32,128], index: 14, kind: output, shape index: {}]  }
   0x1   :  { %6094 = sst [smem:[#allocation42_spill]] %s6059_s0 }
   0x2   :  { %6095 = sst [smem:[#allocation43_spill]] %s6060_s1 }
   0x3   :  { %6096 = sst [smem:[#allocation44_spill]] %s6061_s2 }
   0x4   :  { %6097 = sst [smem:[#allocation45_spill]] %s6062_s3 }
   0x5   :  { %6098 = sst [smem:[#allocation46_spill]] %s6063_s4 }
   0x6   :  { %6099 = sst [smem:[#allocation47_spill]] %s6068_s9 }
   0x7   :  { %6100 = sst [smem:[#allocation48_spill]] %s6070_s11 }
   0x8   :  { %6101 = sst [smem:[#allocation49_spill]] %s6072_s13 }
   0x9   :  { %6102 = sst [smem:[#allocation50_spill]] %s6073_s14 }
   0xa   :  { %19 = vsyncpa [#allocation4], 0 }
   0xb   :  { %21 = vsyncpa [#allocation4 + $0x1], 0 }
   0xc   :  { %22 = vsyncpa [#allocation6], 0 }
   0xd   :  { %24 = vsyncpa [#allocation6 + $0x1], 0 }
   0xe   :  { %25 = vsyncpa [#allocation9], 0 }
   0xf   :  { %27 = vsyncpa [#allocation9 + $0x1], 0 }
  0x10   :  { %28 = vsyncpa [#allocation12], 0 }
  0x11   :  { %30 = vsyncpa [#allocation12 + $0x1], 0 }
  0x12   :  { %31 = vsyncpa [#allocation15], 0 }
  0x13   :  { %33 = vsyncpa [#allocation15 + $0x1], 0 }
  0x14   :  { %34 = vsyncpa [#allocation18], 0 }
  0x15   :  { %36 = vsyncpa [#allocation18 + $0x1], 0 }
  0x16   :  { %37 = vsyncpa [#allocation21], 0 }
  0x17   :  { %39 = vsyncpa [#allocation21 + $0x1], 0  ;;  %s4828_s29 = smov 0   ;;  %s4830_s30 = smov 0  }
  0x18   :  { %s4832_s15 = smov 0   ;;  %s4834_s16 = smov 0  }
  0x19   :  { %s4836_s17 = smov 0   ;;  %s4838_s18 = smov 0  }
  0x1a   :  { %s4840_s19 = smov 0   ;;  %s4842_s20 = smov 0  }
  0x1b   :  { %s4844_s21 = smov 0   ;;  %s4846_s22 = smov 0  }
  0x1c   :  { %s4848_s23 = smov 0  }
  0x1d LB: > { %6103 = sst [smem:[#allocation30_spill]] %s4705_s30  ;;  %s6074_s24 = sadd.s32 4294967295, %s4741_s23   ;;  %s4741_s23 = sphi %s4848_s23, %s45_s23   ;;  %s4737_s22 = sphi %s4846_s22, %s6198_s22   ;;  %s4733_s21 = sphi %s4844_s21, %s6197_s21   ;;  %s4729_s20 = sphi %s4842_s20, %s6196_s20   ;;  %s4725_s19 = sphi %s4840_s19, %s6195_s19   ;;  %s4721_s18 = sphi %s4838_s18, %s6194_s18   ;;  %s4717_s17 = sphi %s4836_s17, %s6193_s17   ;;  %s4713_s16 = sphi %s4834_s16, %s6189_s16   ;;  %s4709_s15 = sphi %s4832_s15, %s6188_s15   ;;  %s4705_s30 = sphi %s4830_s30, %s6187_s30   ;;  %s4701_s29 = sphi %s4828_s29, %s6186_s29  }
  0x1e   : > { %6104 = sst [smem:[#allocation31_spill]] %s4709_s15  ;;  %s54_s25 = sadd.s32 1, %s4733_s21 }
  0x1f   : > { %6105 = sst [smem:[#allocation32_spill]] %s4717_s17  ;;  %p55_p0 = scmp.ge.s32.totalorder %s54_s25, 12 }
  0x20   : > { %6106 = sst [smem:[#allocation33_spill]] %s4725_s19  ;;  %s57_s26 = sadd.s32 1, %s4737_s22 }
  0x21   : > { %6107 = sst [smem:[#allocation34_spill]] %s4729_s20  ;;  %s90_s27 = sadd.s32 1, %s4721_s18 }
  0x22   : > { %6108 = sst [smem:[#allocation35_spill]] %s4741_s23  ;;  %p97_p1 = scmp.ne.s32.totalorder %s4721_s18, %s4717_s17 }
  0x23   : > { %s6200_s25 = smov (%p55_p0, %s54_s25), 0  ;;  %s6202_s26 = smov (!%p55_p0, %s57_s26), %s4737_s22 }
  0x24   : > { %6109 = sst [smem:[#allocation36_spill]] %s6200_s25  ;;  %p98_p2 = scmp.eq.s32.totalorder %s4741_s23, 0 }
  0x25   : > { %p103_p3 = scmp.ne.s32.totalorder %s4717_s17, %s4713_s16  ;;  %p59_p4 = scmp.ge.s32.totalorder %s6202_s26, 2 }
  0x26   : > { %p4894_p5 = scmp.eq.s32.totalorder %s6074_s24, 0  ;;  %p4900_p6 = por %p98_p2, %p97_p1 }
  0x27   : > { %s113_s0 = ssub.s32 %s4733_s21, %s6200_s25  ;;  %s6204_s26 = smov (%p59_p4, %s6202_s26), 0 }
  0x28   : > { %6112 = sst [smem:[#allocation37_spill]] %s6204_s26  ;;  %p4910_p7 = por %p4894_p5, %p103_p3 }
  0x29   : > { %p114_p8 = scmp.eq.s32.totalorder %s113_s0, 0  ;;  %s87_s24 = ssub.s32 %s4737_s22, %s6204_s26 }
  0x2a   : > { %s6113_s16 = scalar_select %p4910_p7, 1, 0 }
  0x2b   : > { %s116_s19 = sadd.s32 1, %s4709_s15  ;;  %p88_p9 = scmp.eq.s32.totalorder %s87_s24, 0 }
  0x2c   : > { %6114 = sst [smem:[#allocation38_spill]] %s6113_s16  ;;  %p123_p10 = scmp.ne.s32.totalorder %s4709_s15, %s4705_s30 }
  0x2d   : > { %s4920_s20 = scalar_select %p114_p8, %s4709_s15, %s116_s19  }
  0x2e   : > { %s4923_s17 = scalar_select %p88_p9, %s4721_s18, %s90_s27  }
  0x2f   : > { %6115 = sst [smem:[#allocation39_spill]] %s4920_s20  ;;  %p4927_p11 = por %p123_p10, %p98_p2 }
  0x30   : > { %6116 = sst [smem:[#allocation40_spill]] %s4923_s17  ;;  %p129_p12 = scmp.ne.s32.totalorder %s4705_s30, %s4701_s29 }
  0x31   : > { %p3419_p0 = scmp.ge.s32.totalorder %s4741_s23, 24 }
  0x32   : > { %p4935_p13 = por %p129_p12, %p4894_p5  ;;  %s4941_s0 = sand.u32 (!%p3419_p0), 1, %s4741_s23  }
  0x33   : > { %461 = sbr.rel (%p3419_p0) target bundleno = 115 (0x73), region = 16  ;;  %s4944_s19 = sand.u32 (!%p3419_p0), 1, %s4709_s15  }
  0x34   : > { %s6118_s13 = scalar_select %p4935_p13, 1, 0 }
  0x35   : > { %s6120_s2 = sld [smem:[#allocation44_spill]] (!%p3419_p0)  ;;  %s495_s28 = scalar_lea.vmem (!%p3419_p0), [#allocation5], %s4944_s19 }
  0x36   : > { %6119 = sst [smem:[#allocation41_spill]] %s6118_s13  ;;  %s502_s26 = sshll.u32 (!%p3419_p0), %s495_s28, 4  ;;  %s503_s26 = int_to_ptr.vmem [resolvable:$true] %s502_s26 }
  0x37   : > { %s6088_s20 = scalar_lea.sflag (!%p3419_p0), [#allocation6], %s4941_s0  ;;  %s3977_s15 = smul.u32 (!%p3419_p0), 192, %s4944_s19 }
  0x38   : > { %s3978_s13 = smul.u32 192, %s4733_s21  ;;  %s6121_s4 = sld [smem:[#allocation46_spill]] }
  0x39   : > { %s530_s30 = scalar_lea.vmem [#allocation8], %s3977_s15  ;;  %s6090_s23 = scalar_lea.sflag [#allocation9], %s4941_s0 }
  0x3a   : > { %s538_s16 = sshll.u32 %s530_s30, 4  ;;  %s4743_s11 = smov 192   ;;  %s539_s16 = int_to_ptr.vmem [resolvable:$true] %s538_s16 }
  0x3b   : > { %s498_s27 = scalar_lea.hbm %s6120_s2, %s4733_s21  ;;  %s4746_s9 = smov 4  }
  0x3c   : > { %s500_s17 = sshll.u32 %s498_s27, 4  ;;  %s3423_s27 = sshll.u32 %s4944_s19, 6  ;;  %s501_s17 = int_to_ptr.hbm [resolvable:$true] %s500_s17 }
  0x3d   : > { %3984 = dma.hbm_to_vmem [thread:$0]  (%p4927_p11), %s501_s17, 16, %s503_s26, %s6088_s20  }
  0x3e   : > { %s535_s2 = scalar_lea.hbm %s6121_s4, %s3978_s13  ;;  %s4744_s17 = smov 12  }
  0x3f   : > { %s536_s28 = sshll.u32 %s535_s2, 4  ;;  %s3874_s26 = sshll.u32 %s4733_s21, 6  ;;  %s537_s28 = int_to_ptr.hbm [resolvable:$true] %s536_s28 }
  0x40   : > { %3986 = dma.hbm_to_vmem [thread:$0]  (%p4927_p11), %s537_s28, 3072, %s539_s16, %s6090_s23, %s4743_s11, %s4743_s11, %s4744_s17  }
  0x41   : > { %s576_s30 = scalar_lea.hbm %s6065_s6, %s3874_s26  ;;  %s571_s2 = scalar_lea.vmem [#allocation11], %s3423_s27 }
  0x42   : > { %s579_s15 = sshll.u32 %s571_s2, 4  ;;  %s577_s24 = sshll.u32 %s576_s30, 4  ;;  %s580_s15 = int_to_ptr.vmem [resolvable:$true] %s579_s15  ;;  %s578_s24 = int_to_ptr.hbm [resolvable:$true] %s577_s24 }
  0x43   : > { %s6089_s20 = scalar_lea.sflag [#allocation12], %s4941_s0  ;;  %s6092_s4 = smov 64  }
  0x44   : > { %3988 = dma.hbm_to_vmem [thread:$0]  (%p4927_p11), %s578_s24, 1024, %s580_s15, %s6089_s20, %s6092_s4, %s6092_s4, %s4746_s9  }
  0x45   : > { %s612_s28 = scalar_lea.hbm %s6067_s8, %s4733_s21  ;;  %s609_s17 = scalar_lea.vmem [#allocation14], %s4944_s19 }
  0x46   : > { %s614_s27 = sshll.u32 %s612_s28, 4  ;;  %s616_s26 = sshll.u32 %s609_s17, 4  ;;  %s615_s27 = int_to_ptr.hbm [resolvable:$true] %s614_s27  ;;  %s617_s26 = int_to_ptr.vmem [resolvable:$true] %s616_s26 }
  0x47   : > { %s6091_s29 = scalar_lea.sflag [#allocation15], %s4941_s0  ;;  %s3426_s13 = sshll.u32 %s4944_s19, 8 }
  0x48   : > { %3990 = dma.hbm_to_vmem [thread:$0]  (%p4927_p11), %s615_s27, 16, %s617_s26, %s6091_s29  }
  0x49   : > { %s3875_s30 = sshll.u32 %s4733_s21, 8  ;;  %s644_s11 = scalar_lea.vmem [#allocation17], %s3426_s13 }
  0x4a   : > { %s649_s24 = scalar_lea.hbm %s6069_s10, %s3875_s30  ;;  %s652_s16 = sshll.u32 %s644_s11, 4  ;;  %s653_s16 = int_to_ptr.vmem [resolvable:$true] %s652_s16 }
  0x4b   : > { %s650_s28 = sshll.u32 %s649_s24, 4  ;;  %s641_s17 = scalar_lea.sflag [#allocation18], %s4941_s0  ;;  %s651_s28 = int_to_ptr.hbm [resolvable:$true] %s650_s28 }
  0x4c   : > { %s4747_s20 = smov 256   ;;  %s4748_s23 = smov 16  }
  0x4d   : > { %3992 = dma.hbm_to_vmem [thread:$0]  (%p4927_p11), %s651_s28, 4096, %s653_s16, %s641_s17, %s4747_s20, %s4747_s20, %s4748_s23  }
  0x4e   : > { %s690_s2 = scalar_lea.hbm %s6071_s12, %s3875_s30  ;;  %s685_s29 = scalar_lea.vmem [#allocation20], %s3426_s13 }
  0x4f   : > { %s691_s15 = sshll.u32 %s690_s2, 4  ;;  %s693_s4 = sshll.u32 %s685_s29, 4  ;;  %s692_s15 = int_to_ptr.hbm [resolvable:$true] %s691_s15  ;;  %s694_s4 = int_to_ptr.vmem [resolvable:$true] %s693_s4 }
  0x50   : > { %s6093_s24 = scalar_lea.sflag [#allocation21], %s4941_s0  ;;  %s6122_s11 = smov 64  }
  0x51   : > { %3994 = dma.hbm_to_vmem [thread:$0]  (%p4927_p11), %s692_s15, 4096, %s694_s4, %s6093_s24, %s6122_s11, %s6122_s11, %s4746_s9  }
  0x52   : > { %s473_s20 = sand.u32 1, %s4721_s18   ;;  %s3421_s23 = sshll.u32 %s4737_s22, 3 }
  0x53   : > { %s3420_s30 = sshll.u32 %s473_s20, 3  ;;  %s6123_s1 = sld [smem:[#allocation43_spill]] }
  0x54   : > { %s477_s27 = scalar_lea.vmem [#allocation3], %s3420_s30  ;;  %s474_s2 = scalar_lea.sflag [#allocation4], %s473_s20 }
  0x55   : > { %s485_s26 = sshll.u32 %s477_s27, 4  ;;  %s6124_s3 = sld [smem:[#allocation45_spill]]  ;;  %s486_s26 = int_to_ptr.vmem [resolvable:$true] %s485_s26 }
  0x56   : > { %s512_s24 = scalar_lea.vmem [#allocation7], %s4944_s19  ;;  %s3979_s30 = smul.u32 3, %s4944_s19 }
  0x57   : > { %s519_s16 = sshll.u32 %s512_s24, 4  ;;  %s3980_s14 = smul.u32 3, %s4733_s21  ;;  %s520_s16 = int_to_ptr.vmem [resolvable:$true] %s519_s16 }
  0x58   : > { %s6127_s13 = sld [smem:[#allocation47_spill]]  ;;  %s626_s27 = scalar_lea.vmem [#allocation16], %s4944_s19 }
  0x59   : > { %s481_s29 = scalar_lea.hbm %s6123_s1, %s3421_s23  ;;  %s6125_s23 = scalar_lea.sflag [#allocation6], %s4941_s0 }
  0x5a   : > { %s483_s28 = sshll.u32 %s481_s29, 4  ;;  %s595_s29 = scalar_lea.hbm %s6066_s7, %s4733_s21  ;;  %s484_s28 = int_to_ptr.hbm [resolvable:$true] %s483_s28 }
  0x5b   : > { %3983 = dma.hbm_to_vmem [thread:$0]  (%p4900_p6), %s484_s28, 128, %s486_s26, %s474_s2  }
  0x5c   : > { %s515_s15 = scalar_lea.hbm %s6124_s3, %s4733_s21  ;;  %s597_s28 = sshll.u32 %s595_s29, 4  ;;  %s598_s28 = int_to_ptr.hbm [resolvable:$true] %s597_s28 }
  0x5d   : > { %s517_s11 = sshll.u32 %s515_s15, 4  ;;  %s556_s24 = scalar_lea.hbm %s6064_s5, %s3980_s14  ;;  %s518_s11 = int_to_ptr.hbm [resolvable:$true] %s517_s11 }
  0x5e   : > { %3985 = dma.hbm_to_vmem [thread:$0]  (%p4927_p11), %s518_s11, 16, %s520_s16, %s6125_s23  }
  0x5f   : > { %s552_s2 = scalar_lea.vmem [#allocation10], %s3979_s30  ;;  %s558_s9 = sshll.u32 %s556_s24, 4  ;;  %s559_s9 = int_to_ptr.hbm [resolvable:$true] %s558_s9 }
  0x60   : > { %s560_s4 = sshll.u32 %s552_s2, 4  ;;  %s6126_s15 = scalar_lea.sflag [#allocation9], %s4941_s0  ;;  %s561_s4 = int_to_ptr.vmem [resolvable:$true] %s560_s4 }
  0x61   : > { %3987 = dma.hbm_to_vmem [thread:$0]  (%p4927_p11), %s559_s9, 48, %s561_s4, %s6126_s15  }
  0x62   : > { %s592_s11 = scalar_lea.vmem [#allocation13], %s4944_s19  ;;  %s629_s14 = scalar_lea.hbm %s6127_s13, %s4733_s21 }
  0x63   : > { %s599_s16 = sshll.u32 %s592_s11, 4  ;;  %s6128_s30 = scalar_lea.sflag [#allocation12], %s4941_s0  ;;  %s600_s16 = int_to_ptr.vmem [resolvable:$true] %s599_s16 }
  0x64   : > { %3989 = dma.hbm_to_vmem [thread:$0]  (%p4927_p11), %s598_s28, 16, %s600_s16, %s6128_s30  }
  0x65   : > { %s631_s29 = sshll.u32 %s629_s14, 4  ;;  %s633_s26 = sshll.u32 %s626_s27, 4  ;;  %s632_s29 = int_to_ptr.hbm [resolvable:$true] %s631_s29  ;;  %s634_s26 = int_to_ptr.vmem [resolvable:$true] %s633_s26 }
  0x66   : > { %s6129_s24 = scalar_lea.sflag [#allocation15], %s4941_s0  ;;  %s3429_s2 = sshll.u32 %s4944_s19, 2 }
  0x67   : > { %3991 = dma.hbm_to_vmem [thread:$0]  (%p4927_p11), %s632_s29, 16, %s634_s26, %s6129_s24  }
  0x68   : > { %s3430_s4 = sshll.u32 %s4733_s21, 2  ;;  %s6130_s11 = sld [smem:[#allocation48_spill]] }
  0x69   : > { %s666_s28 = scalar_lea.vmem [#allocation19], %s3429_s2  ;;  %s6131_s30 = sld [smem:[#allocation49_spill]] }
  0x6a   : > { %s674_s16 = sshll.u32 %s666_s28, 4  ;;  %s706_s26 = scalar_lea.vmem [#allocation22], %s4944_s19  ;;  %s675_s16 = int_to_ptr.vmem [resolvable:$true] %s674_s16 }
  0x6b   : > { %s713_s24 = sshll.u32 %s706_s26, 4  ;;  %s6132_s9 = scalar_lea.sflag [#allocation21], %s4941_s0  ;;  %s714_s24 = int_to_ptr.vmem [resolvable:$true] %s713_s24 }
  0x6e   : > { %s670_s23 = scalar_lea.hbm %s6130_s11, %s3430_s4 }
  0x6f   : > { %s672_s20 = sshll.u32 %s670_s23, 4  ;;  %s709_s29 = scalar_lea.hbm %s6131_s30, %s4733_s21  ;;  %s673_s20 = int_to_ptr.hbm [resolvable:$true] %s672_s20 }
  0x70   : > { %3993 = dma.hbm_to_vmem [thread:$0]  (%p4927_p11), %s673_s20, 64, %s675_s16, %s641_s17  }
  0x71   : > { %s711_s27 = sshll.u32 %s709_s29, 4  ;;  %s712_s27 = int_to_ptr.hbm [resolvable:$true] %s711_s27 }
  0x72   : > { %3995 = dma.hbm_to_vmem [thread:$0]  (%p4927_p11), %s712_s27, 16, %s714_s24, %s6132_s9  }
  0x73 PF: > { %s6133_s2 = sld [smem:[#allocation35_spill]] }
  0x79   : > { %p3434_p1 = scmp.ge.s32.totalorder %s6133_s2, 1  ;;  %p718_p2 = scmp.lt.s32.totalorder %s6133_s2, 25 }
  0x7b   : > { %p719_p3 = pnand %p3434_p1, %p718_p2 }
  0x7c   : > { %s6134_s17 = sld [smem:[#allocation32_spill]] (!%p719_p3) }
  0x7d   : > { %722 = sbr.rel (%p719_p3) target bundleno = 2559 (0x9ff), region = 76 }
  0x82   : > { %s724_s15 = sand.u32 1, %s6134_s17  }
  0x83   : > { %s5074_s11 = sshll.u32 %s724_s15, 3  ;;  %s725_s19 = scalar_lea.sflag [#allocation4], %s724_s15 }
  0x84   : > { %4672 = dma.done.wait (%p4910_p7), %s725_s19, 128  }
  0x85   : > { %4674 = vsyncadd (%p4910_p7), %s725_s19, 4294967168  ;;  %s6136_s25 = sld [smem:[#allocation35_spill]] }
  0x86   : > { %s6138_s20 = sld [smem:[#allocation30_spill]] }
  0x8b   : > { %s6137_s0 = sadd.s32 4294967295, %s6136_s25  }
  0x8c   : > { %s5083_s16 = sand.u32 1, %s6137_s0   ;;  %s5086_s13 = sand.u32 1, %s6138_s20  }
  0x8d   : > { %s735_s14 = scalar_lea.sflag [#allocation6], %s5083_s16 }
  0x8e   : > { %4676 = dma.done.wait (%p4935_p13), %s735_s14, 32  }
  0x8f   : > { %4678 = vsyncadd (%p4935_p13), %s735_s14, 4294967264  ;;  %s3981_s29 = smul.u32 192, %s5086_s13  ;;  %s753_s26 = scalar_lea.sflag [#allocation9], %s5083_s16 }
  0x91   : > { %s5097_s24 = scalar_lea.vmem [#allocation8], %s3981_s29 }
  0x92   : > { %4680 = dma.done.wait (%p4935_p13), %s753_s26, 3120  }
  0x93   : > { %4682 = vsyncadd (%p4935_p13), %s753_s26, 4294964176  ;;  %s3982_s9 = smul.u32 3, %s5086_s13  ;;  %s3436_s2 = sshll.u32 %s5086_s13, 6 }
  0x94   : > { %s773_s4 = scalar_lea.sflag [#allocation12], %s5083_s16  ;;  %s5108_s15 = scalar_lea.vmem [#allocation11], %s3436_s2 }
  0x95   : > { %s5105_s17 = scalar_lea.vmem [#allocation10], %s3982_s9 }
  0x96   : > { %4684 = dma.done.wait (%p4935_p13), %s773_s4, 1040  }
  0x97   : > { %4686 = vsyncadd (%p4935_p13), %s773_s4, 4294966256  ;;  %s792_s25 = scalar_lea.sflag [#allocation15], %s5083_s16 }
  0x98   : > { %4688 = dma.done.wait (%p4935_p13), %s792_s25, 32  }
  0x99   : > { %4690 = vsyncadd (%p4935_p13), %s792_s25, 4294967264  ;;  %s3437_s20 = sshll.u32 %s5086_s13, 8  ;;  %s810_s29 = scalar_lea.sflag [#allocation18], %s5083_s16 }
  0x9a   : > { %s5124_s26 = scalar_lea.vmem [#allocation17], %s3437_s20 }
  0x9b   : > { %4692 = dma.done.wait (%p4935_p13), %s810_s29, 4160  }
  0x9c   : > { %4694 = vsyncadd (%p4935_p13), %s810_s29, 4294963136  ;;  %s3438_s9 = sshll.u32 %s5086_s13, 2  ;;  %s830_s4 = scalar_lea.sflag [#allocation21], %s5083_s16 }
  0x9d   : > { %s5131_s2 = scalar_lea.vmem [#allocation19], %s3438_s9  ;;  %s5134_s25 = scalar_lea.vmem [#allocation20], %s3437_s20 }
  0x9e   : > { %4696 = dma.done.wait (%p4935_p13), %s830_s4, 4112  }
  0x9f   : > { %4698 = vsyncadd (%p4935_p13), %s830_s4, 4294963184  ;;  %s6140_s14 = sld [smem:[#allocation34_spill]]  ;;  %s842_s3 = scalar_lea.vmem [#allocation22], %s5086_s13 }
  0xa0   : > { %s6141_s0 = sld [smem:[#allocation33_spill]] }
  0xa1   : > { %s6143_s19 = sld [smem:[#allocation42_spill]] }
  0xa2   : > { %s6144_s30 = sld [smem:[#allocation50_spill]] }
  0xa5   : > { %p947_p4 = scmp.lt.s32.totalorder %s6140_s14, 1 }
  0xa6   : > { %p958_p5 = scmp.ge.s32.totalorder %s6141_s0, 1  ;;  %p959_p6 = scmp.le.s32.totalorder %s6141_s0, 8 }
  0xa7   : > { %s6206_s14 = smov (!%p947_p4, %s6140_s14), 1  ;;  %p3445_p8 = scmp.ne.s32.totalorder %s6141_s0, 0 }
  0xa8   : > { %p5144_p7 = pnand %p959_p6, %p958_p5  ;;  %s3877_s16 = sshll.u32 %s6206_s14, 5 }
  0xa9   : > { %s951_s28 = scalar_lea.vmem %s6143_s19, %s3877_s16  ;;  %s5154_s23 = scalar_lea.vmem %s6144_s30, %s3877_s16 }
  0xaa   : > { %s3444_s1 = scalar_select %p5144_p7, 17, 18 }
  0xab   : > { %966 = sbr.rel (%p3445_p8) target bundleno = 181 (0xb5), region = 132 }
  0xb0   : > { %v967_v0 = vld [vmem:[%s951_s28] sm:$0xff]  ;;  %v968_v1 = vld [vmem:[%s951_s28 + $0x8] sm:$0xff]  ;;  %v969_v2 = vld [vmem:[%s951_s28 + $0x10] sm:$0xff] }
  0xb1   : > { %971 = vst [vmem:[#allocation2] sm:$0xff] %v967_v0  ;;  %v970_v3 = vld [vmem:[%s951_s28 + $0x18] sm:$0xff] }
  0xb2   : > { %972 = vst [vmem:[#allocation2 + $0x8] sm:$0xff] %v968_v1 }
  0xb3   : > { %973 = vst [vmem:[#allocation2 + $0x10] sm:$0xff] %v969_v2 }
  0xb4   : > { %974 = vst [vmem:[#allocation2 + $0x18] sm:$0xff] %v970_v3 }
  0xb5 PF: > { %976 = sbr.rel (%p5144_p7) target bundleno = 205 (0xcd), region = 136  ;;  %s6145_s30 = sld [smem:[#allocation33_spill]] (!%p5144_p7) }
  0xb6   : > { %s6146_s19 = scalar_lea.vmem (!%p5144_p7), [#allocation3], %s5074_s11 }
  0xba   : > { %v977_v4 = vlaneseq  ;;  %v982_v7 = vld [vmem:[%s6146_s19] sm:$0xff] }
  0xbb   : > { %s3446_s27 = sadd.s32 4294967295, %s6145_s30 }
  0xbc   : > { %v980_v5 = vstv %s3446_s27  ;;  %v978_v6 = vshrl.u32 %v977_v4, 7 }
  0xbe   : > { %vm981_vm0 = vcmp.eq.s32.totalorder %v978_v6, %v980_v5 }
  0xbf   : > { %v983_v8 = vsel %vm981_vm0, %v982_v7, 0.0 }
  0xc0   : > { %v984_v9 = vrot.slane %v983_v8, 4 }
  0xc2   : > { %v985_v10 = vadd.f32 %v984_v9, %v983_v8 }
  0xc4   : > { %v986_v11 = vrot.slane %v985_v10, 2 }
  0xc6   : > { %v987_v12 = vadd.f32 %v986_v11, %v985_v10 }
  0xc8   : > { %v988_v13 = vrot.slane %v987_v12, 1 }
  0xca   : > { %v989_v14 = vadd.f32 %v988_v13, %v987_v12 }
  0xcc   : > { %990 = vst [vmem:[#allocation2 + $0x11] sm:$0x1] %v989_v14 }
  0xcd PF: > { %v991_v16 = vld [vmem:[#allocation2] sm:$0xff]  ;;  %v992_v18 = vld [vmem:[#allocation2 + $0x8] sm:$0xff]  ;;  %v4749_v19 = vmov 128.0   ;;  %v3533_v42 = vld [vmem:[%s5097_s24 + $0xa8] sm:$0xf]  ;;  %s6147_s11 = scalar_lea.vmem [#allocation5], %s5086_s13 }
  0xce   : > { %995 = vadd.xlane.f32.xlu0 %v991_v16  ;;  %v994_v17 = vld [vmem:[#allocation2 + $0x18] sm:$0xff]  ;;  %4113 = vrcp.f32 %v4749_v19  ;;  %v3901_v43 = vld [vmem:[%s5097_s24 + $0xb0] sm:$0xf0]  ;;  %v3900_v44 = vld [vmem:[%s5097_s24 + $0xac] sm:$0xf]  ;;  %vm1335_vm14 = vcmask 261120  }
  0xcf   : > { %v3534_v45 = vor.u32 %v3901_v43, %v3533_v42  ;;  %v3535_v46 = vld [vmem:[%s5097_s24 + $0xb4] sm:$0xf0]  ;;  %v3541_v47 = vld [vmem:[%s5097_s24 + $0xb0] sm:$0xf]  ;;  %v3902_v48 = vld [vmem:[%s5097_s24 + $0xb8] sm:$0xf0] }
  0xd0   : > { %v3538_v49 = vor.u32 %v3900_v44, %v3535_v46  ;;  %v3542_v50 = vor.u32 %v3902_v48, %v3541_v47  ;;  %v3521_v51 = vld [vmem:[%s5097_s24 + $0x90] sm:$0xf]  ;;  %v3898_v52 = vld [vmem:[%s5097_s24 + $0x98] sm:$0xf0]  ;;  %v3897_v53 = vld [vmem:[%s5097_s24 + $0x94] sm:$0xf] }
  0xd1   : > { %1268 = vmatpush.bf16.msra.mxu0 %v3534_v45  ;;  %v3522_v54 = vor.u32 %v3898_v52, %v3521_v51  ;;  %v3523_v55 = vld [vmem:[%s5097_s24 + $0x9c] sm:$0xf0]  ;;  %v3529_v56 = vld [vmem:[%s5097_s24 + $0x98] sm:$0xf]  ;;  %v3899_v57 = vld [vmem:[%s5097_s24 + $0xa0] sm:$0xf0] }
  0xd2   : > { %1287 = vmatpush.bf16.msra.mxu1 %v3538_v49  ;;  %1306 = vmatpush.bf16.msra.mxu2 %v3542_v50  ;;  %v3526_v58 = vor.u32 %v3897_v53, %v3523_v55  ;;  %v3530_v59 = vor.u32 %v3899_v57, %v3529_v56  ;;  %v3509_v60 = vld [vmem:[%s5097_s24 + $0x78] sm:$0xf]  ;;  %v3895_v61 = vld [vmem:[%s5097_s24 + $0x80] sm:$0xf0]  ;;  %v3894_v62 = vld [vmem:[%s5097_s24 + $0x7c] sm:$0xf] }
  0xd3   : > { %v993_v15 = vld [vmem:[#allocation2 + $0x10] sm:$0xff]  ;;  %v3510_v63 = vor.u32 %v3895_v61, %v3509_v60  ;;  %v3511_v0 = vld [vmem:[%s5097_s24 + $0x84] sm:$0xf0]  ;;  %v3896_v2 = vld [vmem:[%s5097_s24 + $0x88] sm:$0xf0]  ;;  %s4752_s0 = smov 32  }
  0xd4   : > { %999 = vadd.xlane.f32.xlu1 %v993_v15  ;;  %v4114_v20 = vpop.eup %4113  ;;  %v3517_v1 = vld [vmem:[%s5097_s24 + $0x80] sm:$0xf]  ;;  %v3514_v3 = vor.u32 %v3894_v62, %v3511_v0  ;;  %v3892_v6 = vld [vmem:[%s5097_s24 + $0x68] sm:$0xf0]  ;;  %v3891_v7 = vld [vmem:[%s5097_s24 + $0x64] sm:$0xf] }
  0xd5   : > { %v1004_v21 = vmul.f32 128.0, %v4114_v20  ;;  %vm1008_vm1 = vweird.f32 %v4114_v20  ;;  %1269 = vmatpush.bf16.msra.mxu0 %v3522_v54  ;;  %v3518_v4 = vor.u32 %v3896_v2, %v3517_v1  ;;  %v3497_v5 = vld [vmem:[%s5097_s24 + $0x60] sm:$0xf]  ;;  %v3499_v9 = vld [vmem:[%s5097_s24 + $0x6c] sm:$0xf0]  ;;  %s6152_s14 = scalar_lea.vmem [#allocation14], %s5086_s13 }
  0xd6   : > { %997 = vadd.xlane.f32.xlu0 %v992_v18  ;;  %1288 = vmatpush.bf16.msra.mxu1 %v3526_v58  ;;  %v3498_v8 = vor.u32 %v3892_v6, %v3497_v5  ;;  %v3505_v10 = vld [vmem:[%s5097_s24 + $0x68] sm:$0xf]  ;;  %v3893_v11 = vld [vmem:[%s5097_s24 + $0x70] sm:$0xf0]  ;;  %v3502_v12 = vor.u32 %v3891_v7, %v3499_v9  ;;  %v3493_v19 = vld [vmem:[%s5097_s24 + $0x50] sm:$0xf] }
  0xd7   : > { %v1005_v22 = vsub.f32 1.0, %v1004_v21  ;;  %1307 = vmatpush.bf16.msra.mxu2 %v3530_v59  ;;  %v3506_v13 = vor.u32 %v3893_v11, %v3505_v10  ;;  %v3485_v14 = vld [vmem:[%s5097_s24 + $0x48] sm:$0xf]  ;;  %v3469_v42 = vld [vmem:[%s5097_s24 + $0x20] sm:$0xf] }
  0xd8   : > { %v3884_v43 = vld [vmem:[%s5097_s24 + $0x28] sm:$0xf0]  ;;  %v3449_v47 = vld [vmem:[%s5097_s24] sm:$0xf]  ;;  %v3879_v49 = vld [vmem:[%s5097_s24 + $0x4] sm:$0xf] }
  0xd9   : > { %v1006_v23 = vmul.f32 %v4114_v20, %v1005_v22  ;;  %1270 = vmatpush.bf16.msra.mxu0 %v3510_v63  ;;  %v3470_v46 = vor.u32 %v3884_v43, %v3469_v42  ;;  %v3880_v48 = vld [vmem:[%s5097_s24 + $0x8] sm:$0xf0]  ;;  %v3451_v53 = vld [vmem:[%s5097_s24 + $0xc] sm:$0xf0]  ;;  %v3457_v54 = vld [vmem:[%s5097_s24 + $0x8] sm:$0xf] }
  0xda   : > { %1289 = vmatpush.bf16.msra.mxu1 %v3514_v3  ;;  %v3450_v52 = vor.u32 %v3880_v48, %v3449_v47  ;;  %v3881_v55 = vld [vmem:[%s5097_s24 + $0x10] sm:$0xf0]  ;;  %v3454_v56 = vor.u32 %v3879_v49, %v3451_v53 }
  0xdb   : > { %v1007_v24 = vadd.f32 %v4114_v20, %v1006_v23  ;;  %1308 = vmatpush.bf16.msra.mxu2 %v3518_v4  ;;  %v3473_v23 = vld [vmem:[%s5097_s24 + $0x30] sm:$0xf]  ;;  %v3458_v57 = vor.u32 %v3881_v55, %v3457_v54  ;;  %v1132_v55 = vld [vmem:[%s5105_s17] sm:$0x7]  ;;  %s4751_s17 = smov 64  }
  0xdc   : > { %1001 = vadd.xlane.f32.xlu1 %v994_v17 }
  0xdd   : > { %v5165_v25 = vsel %vm1008_vm1, %v4114_v20, %v1007_v24  ;;  %1271 = vmatpush.bf16.msra.mxu0 %v3498_v8  ;;  %v3890_v20 = vld [vmem:[%s5097_s24 + $0x58] sm:$0xf0] }
  0xde   : > { %1290 = vmatpush.bf16.msra.mxu1 %v3502_v12  ;;  %v3494_v22 = vor.u32 %v3890_v20, %v3493_v19  ;;  %v3886_v24 = vld [vmem:[%s5097_s24 + $0x38] sm:$0xf0] }
  0xdf   : > { %1309 = vmatpush.bf16.msra.mxu2 %v3506_v13 }
  0xe3   : > { %1310 = vmatpush.bf16.msra.mxu2 %v3494_v22 }
 0x141   : > { %v996_v27 = vpop.xlane.xlu0 %995 }
 0x142   : > { %v1010_v29 = vmul.f32 %v5165_v25, %v996_v27  ;;  %v3474_v27 = vor.u32 %v3886_v24, %v3473_v23  ;;  %v4107_v23 = vld [vmem:[%s6147_s11] ss:$0 sm:$0xff] }
 0x144   : > { %v5171_v31 = vsub.f32 %v991_v16, %v1010_v29  ;;  %v3888_v16 = vld [vmem:[%s5097_s24 + $0x4c] sm:$0xf]  ;;  %v3481_v29 = vld [vmem:[%s5097_s24 + $0x38] sm:$0xf] }
 0x146   : > { %v1018_v33 = vmul.f32 %v5171_v31, %v5171_v31 }
 0x147   : > { %v1000_v26 = vpop.xlane.xlu1 %999 }
 0x148   : > { %v1012_v28 = vmul.f32 %v5165_v25, %v1000_v26  ;;  %1022 = vadd.xlane.f32.xlu2 %v1018_v33  ;;  %v3885_v26 = vld [vmem:[%s5097_s24 + $0x34] sm:$0xf] }
 0x149   : > { %v998_v35 = vpop.xlane.xlu0 %997 }
 0x14a   : > { %v5169_v30 = vsub.f32 %v993_v15, %v1012_v28  ;;  %v1011_v37 = vmul.f32 %v5165_v25, %v998_v35  ;;  %v3889_v15 = vld [vmem:[%s5097_s24 + $0x50] sm:$0xf0]  ;;  %v3475_v28 = vld [vmem:[%s5097_s24 + $0x3c] sm:$0xf0]  ;;  %v3461_v35 = vld [vmem:[%s5097_s24 + $0x18] sm:$0xf] }
 0x14b   : > { %v3478_v33 = vor.u32 %v3885_v26, %v3475_v28 }
 0x14c   : > { %v1020_v32 = vmul.f32 %v5169_v30, %v5169_v30  ;;  %v5181_v39 = vsub.f32 %v992_v18, %v1011_v37  ;;  %v3487_v18 = vld [vmem:[%s5097_s24 + $0x54] sm:$0xf0]  ;;  %v3882_v37 = vld [vmem:[%s5097_s24 + $0x1c] sm:$0xf] }
 0x14d   : > { %v3490_v21 = vor.u32 %v3888_v16, %v3487_v18 }
 0x14e   : > { %1026 = vadd.xlane.f32.xlu0 %v1020_v32  ;;  %v1019_v41 = vmul.f32 %v5181_v39, %v5181_v39  ;;  %v3887_v32 = vld [vmem:[%s5097_s24 + $0x40] sm:$0xf0] }
 0x14f   : > { %v1002_v34 = vpop.xlane.xlu1 %1001  ;;  %1291 = vmatpush.bf16.msra.mxu1 %v3490_v21 }
 0x150   : > { %v1013_v36 = vmul.f32 %v5165_v25, %v1002_v34  ;;  %1024 = vadd.xlane.f32.xlu2 %v1019_v41  ;;  %v3482_v34 = vor.u32 %v3887_v32, %v3481_v29  ;;  %v3463_v41 = vld [vmem:[%s5097_s24 + $0x24] sm:$0xf0] }
 0x151   : > { %v3466_v45 = vor.u32 %v3882_v37, %v3463_v41 }
 0x152   : > { %v5179_v38 = vsub.f32 %v994_v17, %v1013_v36  ;;  %v3486_v17 = vor.u32 %v3889_v15, %v3485_v14  ;;  %1311 = vmatpush.bf16.msra.mxu2 %v3482_v34  ;;  %v3883_v36 = vld [vmem:[%s5097_s24 + $0x20] sm:$0xf0]  ;;  %s6148_s24 = scalar_lea.vmem [#allocation7], %s5086_s13 }
 0x153   : > { %1292 = vmatpush.bf16.msra.mxu1 %v3478_v33  ;;  %v4108_v33 = vld [vmem:[%s6148_s24] ss:$0 sm:$0xff] }
 0x154   : > { %v1021_v40 = vmul.f32 %v5179_v38, %v5179_v38  ;;  %1272 = vmatpush.bf16.msra.mxu0 %v3486_v17 }
 0x156   : > { %1028 = vadd.xlane.f32.xlu1 %v1021_v40  ;;  %v3462_v40 = vor.u32 %v3883_v36, %v3461_v35  ;;  %1312 = vmatpush.bf16.msra.mxu2 %v3470_v46 }
 0x157   : > { %1293 = vmatpush.bf16.msra.mxu1 %v3466_v45 }
 0x158   : > { %1273 = vmatpush.bf16.msra.mxu0 %v3474_v27 }
 0x15a   : > { %1313 = vmatpush.bf16.msra.mxu2 %v3458_v57  ;;  %v1135_v57 = vperm.slane %v1132_v55, 1 }
 0x15b   : > { %1294 = vmatpush.bf16.msra.mxu1 %v3454_v56 }
 0x15c   : > { %1274 = vmatpush.bf16.msra.mxu0 %v3462_v40 }
 0x160   : > { %1275 = vmatpush.bf16.msra.mxu0 %v3450_v52 }
 0x1bb   : > { %v1023_v44 = vpop.xlane.xlu2 %1022 }
 0x1bc   : > { %v1030_v50 = vmul.f32 %v1023_v44, %v5165_v25 }
 0x1be   : > { %v1034_v58 = vadd.f32 1e-05, %v1030_v50 }
 0x1c0   : > { %4115 = vrsqrt.f32 %v1034_v58  ;;  %vm1044_vm3 = vweird.f32 %v1034_v58 }
 0x1c1   : > { %v1027_v51 = vpop.xlane.xlu0 %1026 }
 0x1c2   : > { %v1032_v59 = vmul.f32 %v1027_v51, %v5165_v25 }
 0x1c3   : > { %v1025_v62 = vpop.xlane.xlu2 %1024 }
 0x1c4   : > { %v1036_v60 = vadd.f32 1e-05, %v1032_v59  ;;  %v1031_v0 = vmul.f32 %v1025_v62, %v5165_v25 }
 0x1c6   : > { %v4116_v1 = vpop.eup %4115  ;;  %v1035_v3 = vadd.f32 1e-05, %v1031_v0  ;;  %4117 = vrsqrt.f32 %v1036_v60  ;;  %vm1064_vm10 = vweird.f32 %v1036_v60  ;;  %v1136_v0 = vperm.slane %v1132_v55, 2 }
 0x1c7   : > { %v1039_v4 = vmul.f32 %v4116_v1, %v1034_v58  ;;  %vm1045_vm2 = vweird.f32 %v4116_v1 }
 0x1c8   : > { %vm1046_vm4 = vmor %vm1044_vm3, %vm1045_vm2  ;;  %vm1054_vm6 = vweird.f32 %v1035_v3 }
 0x1c9   : > { %v1029_v61 = vpop.xlane.xlu1 %1028  ;;  %v1040_v5 = vmul.f32 %v4116_v1, %v1039_v4 }
 0x1ca   : > { %v1033_v63 = vmul.f32 %v1029_v61, %v5165_v25 }
 0x1cb   : > { %v1041_v6 = vmul.f32 0.5, %v1040_v5 }
 0x1cc   : > { %v1037_v2 = vadd.f32 1e-05, %v1033_v63  ;;  %v4118_v7 = vpop.eup %4117 }
 0x1cd   : > { %v1042_v8 = vsub.f32 1.5, %v1041_v6  ;;  %v1059_v13 = vmul.f32 %v4118_v7, %v1036_v60  ;;  %vm1065_vm11 = vweird.f32 %v4118_v7  ;;  %v1134_v6 = vperm.slane %v1132_v55, 0 }
 0x1ce   : > { %4119 = vrsqrt.f32 %v1037_v2  ;;  %vm1074_vm8 = vweird.f32 %v1037_v2  ;;  %vm1066_vm13 = vmor %vm1064_vm10, %vm1065_vm11 }
 0x1cf   : > { %4121 = vrsqrt.f32 %v1035_v3  ;;  %v1043_v12 = vmul.f32 %v4116_v1, %v1042_v8  ;;  %v1060_v18 = vmul.f32 %v4118_v7, %v1059_v13 }
 0x1d1   : > { %v1047_v17 = vsel %vm1046_vm4, %v4116_v1, %v1043_v12  ;;  %v1061_v24 = vmul.f32 0.5, %v1060_v18 }
 0x1d2   : > { %v1078_v22 = vmul.f32 %v1047_v17, %v5171_v31 }
 0x1d3   : > { %v1062_v34 = vsub.f32 1.5, %v1061_v24 }
 0x1d4   : > { %v4120_v9 = vpop.eup %4119  ;;  %v1086_v32 = vmul.f32 %v4107_v23, %v1078_v22  ;;  %v1327_v22 = vstv %s3444_s1  ;;  %s4750_s1 = smov 96  }
 0x1d5   : > { %v4122_v10 = vpop.eup %4121  ;;  %v1069_v11 = vmul.f32 %v4120_v9, %v1037_v2  ;;  %vm1075_vm9 = vweird.f32 %v4120_v9  ;;  %v1063_v40 = vmul.f32 %v4118_v7, %v1062_v34 }
 0x1d6   : > { %v1049_v14 = vmul.f32 %v4122_v10, %v1035_v3  ;;  %vm1055_vm5 = vweird.f32 %v4122_v10  ;;  %vm1076_vm12 = vmor %vm1074_vm8, %vm1075_vm9  ;;  %v1094_v36 = vadd.f32 %v4108_v33, %v1086_v32 }
 0x1d7   : > { %v1070_v15 = vmul.f32 %v4120_v9, %v1069_v11  ;;  %vm1056_vm7 = vmor %vm1054_vm6, %vm1055_vm5 }
 0x1d8   : > { %v1050_v16 = vmul.f32 %v4122_v10, %v1049_v14 }
 0x1d9   : > { %v1071_v20 = vmul.f32 0.5, %v1070_v15 }
 0x1da   : > { %v1051_v19 = vmul.f32 0.5, %v1050_v16 }
 0x1db   : > { %v1072_v27 = vsub.f32 1.5, %v1071_v20  ;;  %v1325_v20 = vlaneseq }
 0x1dc   : > { %v1052_v21 = vsub.f32 1.5, %v1051_v19 }
 0x1dd   : > { %v1073_v31 = vmul.f32 %v4120_v9, %v1072_v27 }
 0x1de   : > { %v1053_v26 = vmul.f32 %v4122_v10, %v1052_v21  ;;  %v1326_v21 = vand.u32 127, %v1325_v20 }
 0x1df   : > { %v1077_v42 = vsel %vm1076_vm12, %v4120_v9, %v1073_v31 }
 0x1e0   : > { %v1057_v28 = vsel %vm1056_vm7, %v4122_v10, %v1053_v26  ;;  %v1081_v43 = vmul.f32 %v1077_v42, %v5179_v38  ;;  %vm5273_vm15 = vcmp.lt.s32.totalorder %v1326_v21, %v1327_v22 }
 0x1e1   : > { %v1079_v29 = vmul.f32 %v1057_v28, %v5181_v39  ;;  %v1067_v39 = vsel %vm1066_vm13, %v4118_v7, %v1063_v40 }
 0x1e2   : > { %v1080_v44 = vmul.f32 %v1067_v39, %v5169_v30  ;;  %v1089_v45 = vmul.f32 %v4107_v23, %v1081_v43 }
 0x1e3   : > { %v1087_v35 = vmul.f32 %v4107_v23, %v1079_v29 }
 0x1e4   : > { %v1088_v46 = vmul.f32 %v4107_v23, %v1080_v44  ;;  %v1097_v47 = vadd.f32 %v4108_v33, %v1089_v45 }
 0x1e5   : > { %v1095_v37 = vadd.f32 %v4108_v33, %v1087_v35 }
 0x1e6   : > { %v1096_v48 = vadd.f32 %v4108_v33, %v1088_v46 }
 0x1e7   : > { %v1098_v41 = vpack.c.bf16 %v1095_v37, %v1094_v36 }
 0x1e8   : > { %v1099_v49 = vpack.c.bf16 %v1097_v47, %v1096_v48 }
 0x1e9   : > { %1276 = vmatmul.bf16.vlgmr.msra.gmra.mxu0 %v1098_v41  ;;  %1295 = vmatmul.bf16.vlgmr.msra.gmra.mxu1 %v1098_v41 }
 0x1ea   : > { %1314 = vmatmul.bf16.vlgmr.msra.gmra.mxu2 %v1098_v41 }
 0x1f9   : > { %1281 = vmatmul.bf16.gmra.mxu0 %v1099_v49  ;;  %1300 = vmatmul.bf16.gmra.mxu1 %v1099_v49 }
 0x1fa   : > { %1319 = vmatmul.bf16.gmra.mxu2 %v1099_v49 }
 0x266   : > { %v1296_v50 = vpop.f32.mrf.mxu1  ;;  %v1277_v56 = vpop.f32.mrf.mxu0 }
 0x267   : > { %v1297_v63 = vadd.f32 %v1296_v50, %v1135_v57  ;;  %v1278_v12 = vadd.f32 %v1277_v56, %v1134_v6 }
 0x26d   : > { %v1315_v51 = vpop.f32.mrf.mxu2 }
 0x26e   : > { %v1298_v52 = vpop.f32.mrf.mxu1  ;;  %v1279_v2 = vpop.f32.mrf.mxu0  ;;  %v1316_v10 = vadd.f32 %v1315_v51, %v1136_v0 }
 0x26f   : > { %v1299_v61 = vadd.f32 %v1298_v52, %v1135_v57  ;;  %v1280_v11 = vadd.f32 %v1279_v2, %v1134_v6 }
 0x271   : > { %v5252_v3 = vpack.c.bf16 %v1299_v61, %v1297_v63  ;;  %v5261_v15 = vpack.c.bf16 %v1280_v11, %v1278_v12 }
 0x273   : > { %v1343_v9 = vsel %vm1335_vm14, %v5252_v3, 0 }
 0x275   : > { %v1317_v53 = vpop.f32.mrf.mxu2 }
 0x276   : > { %v1301_v54 = vpop.f32.mrf.mxu1  ;;  %v1318_v7 = vadd.f32 %v1317_v53, %v1136_v0  ;;  %v1282_v14 = vpop.f32.mrf.mxu0 }
 0x277   : > { %v1302_v59 = vadd.f32 %v1301_v54, %v1135_v57  ;;  %v1283_v18 = vadd.f32 %v1282_v14, %v1134_v6 }
 0x278   : > { %v5259_v13 = vpack.c.bf16 %v1318_v7, %v1316_v10 }
 0x27d   : > { %v1320_v58 = vpop.f32.mrf.mxu2 }
 0x27e   : > { %v1303_v38 = vpop.f32.mrf.mxu1  ;;  %v1321_v5 = vadd.f32 %v1320_v58, %v1136_v0  ;;  %v1284_v16 = vpop.f32.mrf.mxu0 }
 0x27f   : > { %v1304_v30 = vadd.f32 %v1303_v38, %v1135_v57  ;;  %v1285_v17 = vadd.f32 %v1284_v16, %v1134_v6  ;;  %v3903_v6 = vld [vmem:[%s5108_s15] sm:$0xff] }
 0x281   : > { %v5248_v60 = vpack.c.bf16 %v1304_v30, %v1302_v59  ;;  %v5266_v19 = vpack.c.bf16 %v1285_v17, %v1283_v18 }
 0x283   : > { %v1346_v62 = vsel %vm1335_vm14, %v5248_v60, 0 }
 0x284   : > { %1354 = vmatpush.bf16.xpose.msra.mxu3 %v1346_v62 }
 0x285   : > { %v1322_v1 = vpop.f32.mrf.mxu2 }
 0x286   : > { %v1323_v4 = vadd.f32 %v1322_v1, %v1136_v0 }
 0x288   : > { %v5254_v8 = vpack.c.bf16 %v1323_v4, %v1321_v5 }
 0x28c   : > { %1355 = vmatpush.bf16.xpose.msra.mxu3 %v1343_v9 }
 0x293   : > { %3543 = vmatmul.msk.bf16.vlgmr.msra.gmra.mxu3 %vm1335_vm14, %v5261_v15 }
 0x294   : > { %1433 = vmatpush.bf16.msrb.mxu3 %v5254_v8 }
 0x298   : > { %1434 = vmatpush.bf16.msrb.mxu3 %v5259_v13 }
 0x2a3   : > { %3544 = vmatmul.msk.bf16.gmra.mxu3 %vm1335_vm14, %v5266_v19 }
 0x316   : > { %v1357_v23 = vpop.f32.mrf.mxu3 }
 0x317   : > { %v1367_v26 = vmul.f32 0.17677669, %v1357_v23 }
 0x319   : > { %v1371_v27 = vsel %vm5273_vm15, %v1367_v26, -1e+30 }
 0x31a   : > { %v1375_v28 = vsel %vm1335_vm14, %v1371_v27, -inf }
 0x31b   : > { %1376 = vmax.xlane.f32.xlu2 %v1375_v28 }
 0x31e   : > { %v1359_v29 = vpop.f32.mrf.mxu3 }
 0x31f   : > { %v1368_v32 = vmul.f32 0.17677669, %v1359_v29 }
 0x321   : > { %v1372_v33 = vsel %vm5273_vm15, %v1368_v32, -1e+30 }
 0x322   : > { %v1378_v34 = vsel %vm1335_vm14, %v1372_v33, -inf }
 0x323   : > { %1379 = vmax.xlane.f32.xlu0 %v1378_v34 }
 0x326   : > { %v1362_v35 = vpop.f32.mrf.mxu3 }
 0x327   : > { %v1369_v31 = vmul.f32 0.17677669, %v1362_v35 }
 0x329   : > { %v1373_v36 = vsel %vm5273_vm15, %v1369_v31, -1e+30 }
 0x32a   : > { %v1381_v37 = vsel %vm1335_vm14, %v1373_v36, -inf }
 0x32b   : > { %1382 = vmax.xlane.f32.xlu1 %v1381_v37 }
 0x32e   : > { %v1364_v40 = vpop.f32.mrf.mxu3 }
 0x32f   : > { %v1370_v41 = vmul.f32 0.17677669, %v1364_v40 }
 0x331   : > { %v1374_v42 = vsel %vm5273_vm15, %v1370_v41, -1e+30 }
 0x332   : > { %v1384_v39 = vsel %vm1335_vm14, %v1374_v42, -inf }
 0x333   : > { %1385 = vmax.xlane.f32.xlu2 %v1384_v39 }
 0x38e   : > { %v1377_v43 = vpop.xlane.xlu2 %1376 }
 0x38f   : > { %v1387_v44 = vsub.f32 %v1371_v27, %v1377_v43 }
 0x391   : > { %v1391_v45 = vmul.f32 1.442695, %v1387_v44 }
 0x393   : > { %4123 = vpow2.f32 %v1391_v45 }
 0x396   : > { %v1380_v46 = vpop.xlane.xlu0 %1379 }
 0x397   : > { %v1388_v47 = vsub.f32 %v1372_v33, %v1380_v46 }
 0x399   : > { %v4124_v48 = vpop.eup %4123  ;;  %v1393_v49 = vmul.f32 1.442695, %v1388_v47 }
 0x39a   : > { %v1399_v50 = vsel %vm1335_vm14, %v4124_v48, 0.0 }
 0x39b   : > { %4125 = vpow2.f32 %v1393_v49  ;;  %1400 = vadd.xlane.f32.xlu0 %v1399_v50 }
 0x39e   : > { %v1383_v51 = vpop.xlane.xlu1 %1382 }
 0x39f   : > { %v1389_v52 = vsub.f32 %v1373_v36, %v1383_v51 }
 0x3a1   : > { %v4126_v53 = vpop.eup %4125  ;;  %v1395_v54 = vmul.f32 1.442695, %v1389_v52 }
 0x3a2   : > { %v1402_v55 = vsel %vm1335_vm14, %v4126_v53, 0.0 }
 0x3a3   : > { %4127 = vpow2.f32 %v1395_v54  ;;  %1403 = vadd.xlane.f32.xlu1 %v1402_v55 }
 0x3a6   : > { %v1386_v56 = vpop.xlane.xlu2 %1385 }
 0x3a7   : > { %v1390_v57 = vsub.f32 %v1374_v42, %v1386_v56 }
 0x3a9   : > { %v4128_v58 = vpop.eup %4127  ;;  %v1397_v38 = vmul.f32 1.442695, %v1390_v57 }
 0x3aa   : > { %v1405_v59 = vsel %vm1335_vm14, %v4128_v58, 0.0 }
 0x3ab   : > { %4129 = vpow2.f32 %v1397_v38  ;;  %1406 = vadd.xlane.f32.xlu2 %v1405_v59 }
 0x3b1   : > { %v4130_v30 = vpop.eup %4129 }
 0x3b2   : > { %v1408_v61 = vsel %vm1335_vm14, %v4130_v30, 0.0 }
 0x3b3   : > { %1409 = vadd.xlane.f32.xlu0 %v1408_v61 }
 0x3bc   : > { %1462 = vrot.lane.b32.xlu1 %v5248_v60, %s4750_s1 }
 0x3c3   : > { %1460 = vrot.lane.b32.xlu2 %v5252_v3, %s4750_s1 }
 0x3c4   : > { %1668 = vrot.lane.b32.xlu1 %v5248_v60, %s4751_s17 }
 0x3c7   : > { %1454 = vrot.lane.b32.xlu0 %v5261_v15, %s4750_s1 }
 0x3cb   : > { %1456 = vrot.lane.b32.xlu2 %v5266_v19, %s4750_s1 }
 0x3cc   : > { %1837 = vrot.lane.b32.xlu1 %v5252_v3, %s4752_s0 }
 0x3cf   : > { %1839 = vrot.lane.b32.xlu0 %v5248_v60, %s4752_s0  ;;  %v3904_v60 = vld [vmem:[%s5108_s15 + $0x8] sm:$0xff] }
 0x3d0   : > { %1649 = vmatpush.bf16.msra.mxu3 %v3904_v60 }
 0x3d3   : > { %1666 = vrot.lane.b32.xlu2 %v5252_v3, %s4751_s17 }
 0x3d4   : > { %1664 = vrot.lane.b32.xlu1 %v5266_v19, %s4751_s17  ;;  %1650 = vmatpush.bf16.msra.mxu3 %v3903_v6 }
 0x3d7   : > { %1662 = vrot.lane.b32.xlu0 %v5261_v15, %s4751_s17 }
 0x3db   : > { %1833 = vrot.lane.b32.xlu2 %v5261_v15, %s4752_s0 }
 0x3df   : > { %1835 = vrot.lane.b32.xlu0 %v5266_v19, %s4752_s0 }
 0x40e   : > { %v1401_v62 = vpop.xlane.xlu0 %1400 }
 0x40f   : > { %4131 = vrcp.f32 %v1401_v62 }
 0x415   : > { %v4132_v0 = vpop.eup %4131 }
 0x416   : > { %v1404_v63 = vpop.xlane.xlu1 %1403  ;;  %v1415_v2 = vmul.f32 %v4132_v0, %v4124_v48 }
 0x417   : > { %4133 = vrcp.f32 %v1404_v63 }
 0x41d   : > { %v4134_v1 = vpop.eup %4133 }
 0x41e   : > { %v1416_v3 = vmul.f32 %v4134_v1, %v4126_v53  ;;  %v1407_v4 = vpop.xlane.xlu2 %1406 }
 0x41f   : > { %4135 = vrcp.f32 %v1407_v4 }
 0x420   : > { %v1419_v5 = vpack.c.bf16 %v1416_v3, %v1415_v2 }
 0x422   : > { %3545 = vmatmul.msk.bf16.vlgmr.msrb.gmra.mxu3 %vm1335_vm14, %v1419_v5 }
 0x425   : > { %v4136_v10 = vpop.eup %4135 }
 0x426   : > { %v1410_v7 = vpop.xlane.xlu0 %1409  ;;  %v1461_v9 = vpop.permute.xlu2 %1460  ;;  %v1417_v14 = vmul.f32 %v4136_v10, %v4128_v58 }
 0x427   : > { %4137 = vrcp.f32 %v1410_v7  ;;  %v1471_v21 = vsel %vm1335_vm14, %v1461_v9, 0 }
 0x42d   : > { %v4138_v11 = vpop.eup %4137 }
 0x42e   : > { %v1463_v12 = vpop.permute.xlu1 %1462  ;;  %v1418_v15 = vmul.f32 %v4138_v11, %v4130_v30  ;;  %v1457_v18 = vpop.permute.xlu2 %1456 }
 0x42f   : > { %v1474_v16 = vsel %vm1335_vm14, %v1463_v12, 0 }
 0x430   : > { %1482 = vmatpush.bf16.xpose.msrb.mxu0 %v1474_v16  ;;  %3975 = vmatpush.bf16.xpose.msrb.mxu2 %v1474_v16  ;;  %v1420_v17 = vpack.c.bf16 %v1418_v15, %v1417_v14 }
 0x432   : > { %3546 = vmatmul.msk.bf16.gmra.mxu3 %vm1335_vm14, %v1420_v17 }
 0x436   : > { %v1669_v19 = vpop.permute.xlu1 %1668  ;;  %v1667_v23 = vpop.permute.xlu2 %1666 }
 0x437   : > { %v1680_v20 = vsel %vm1335_vm14, %v1669_v19, 0  ;;  %v1677_v26 = vsel %vm1335_vm14, %v1667_v23, 0 }
 0x438   : > { %1483 = vmatpush.bf16.xpose.msrb.mxu0 %v1471_v21  ;;  %3976 = vmatpush.bf16.xpose.msrb.mxu2 %v1471_v21 }
 0x439   : > { %v1455_v22 = vpop.permute.xlu0 %1454 }
 0x43e   : > { %v1838_v29 = vpop.permute.xlu1 %1837  ;;  %v1834_v38 = vpop.permute.xlu2 %1833 }
 0x43f   : > { %3547 = vmatmul.msk.bf16.vlgmr.msrb.gmra.mxu0 %vm1335_vm14, %v1455_v22  ;;  %3548 = vmatmul.msk.bf16.vlgmr.msrb.gmra.mxu2 %vm1335_vm14, %v1457_v18  ;;  %v1848_v32 = vsel %vm1335_vm14, %v1838_v29, 0 }
 0x440   : > { %1688 = vmatpush.bf16.xpose.msra.mxu0 %v1680_v20 }
 0x441   : > { %v1840_v27 = vpop.permute.xlu0 %1839 }
 0x442   : > { %v1851_v28 = vsel %vm1335_vm14, %v1840_v27, 0 }
 0x443   : > { %1859 = vmatpush.bf16.xpose.msrb.mxu3 %v1851_v28 }
 0x446   : > { %v1665_v34 = vpop.permute.xlu1 %1664 }
 0x448   : > { %1689 = vmatpush.bf16.xpose.msra.mxu0 %v1677_v26 }
 0x449   : > { %v1663_v33 = vpop.permute.xlu0 %1662 }
 0x44b   : > { %1860 = vmatpush.bf16.xpose.msrb.mxu3 %v1848_v32 }
 0x44f   : > { %3571 = vmatmul.msk.bf16.vlgmr.msra.gmra.mxu0 %vm1335_vm14, %v1663_v33 }
 0x451   : > { %v1836_v2 = vpop.permute.xlu0 %1835 }
 0x45f   : > { %3572 = vmatmul.msk.bf16.gmra.mxu0 %vm1335_vm14, %v1665_v34 }
 0x4a5   : > { %v1436_v35 = vpop.f32.mrf.mxu3 }
 0x4ad   : > { %v1438_v31 = vpop.f32.mrf.mxu3 }
 0x4ae   : > { %v1446_v36 = vpack.c.bf16 %v1438_v31, %v1436_v35 }
 0x4b0   : > { %3569 = vmatmul.msk.bf16.vlgmr.msra.gmra.mxu3 %vm1335_vm14, %v1446_v36 }
 0x4b5   : > { %v1441_v37 = vpop.f32.mrf.mxu3 }
 0x4bc   : > { %v1485_v40 = vpop.f32.mrf.mxu0 }
 0x4bd   : > { %v1495_v41 = vmul.f32 0.17677669, %v1485_v40  ;;  %v1443_v42 = vpop.f32.mrf.mxu3 }
 0x4be   : > { %v1447_v39 = vpack.c.bf16 %v1443_v42, %v1441_v37 }
 0x4bf   : > { %v1499_v43 = vsel %vm5273_vm15, %v1495_v41, -1e+30 }
 0x4c0   : > { %3570 = vmatmul.msk.bf16.gmra.mxu3 %vm1335_vm14, %v1447_v39  ;;  %v1503_v44 = vsel %vm1335_vm14, %v1499_v43, -inf }
 0x4c1   : > { %1504 = vmax.xlane.f32.xlu2 %v1503_v44 }
 0x4c2   : > { %v1490_v45 = vpop.f32.mrf.mxu2 }
 0x4c3   : > { %v1497_v46 = vmul.f32 0.17677669, %v1490_v45 }
 0x4c4   : > { %v1487_v47 = vpop.f32.mrf.mxu0 }
 0x4c5   : > { %v1496_v48 = vmul.f32 0.17677669, %v1487_v47  ;;  %v1501_v49 = vsel %vm5273_vm15, %v1497_v46, -1e+30 }
 0x4c6   : > { %v1509_v50 = vsel %vm1335_vm14, %v1501_v49, -inf }
 0x4c7   : > { %1510 = vmax.xlane.f32.xlu0 %v1509_v50  ;;  %v1500_v51 = vsel %vm5273_vm15, %v1496_v48, -1e+30 }
 0x4c8   : > { %v1506_v52 = vsel %vm1335_vm14, %v1500_v51, -inf }
 0x4c9   : > { %1507 = vmax.xlane.f32.xlu1 %v1506_v52 }
 0x4ca   : > { %v1492_v53 = vpop.f32.mrf.mxu2 }
 0x4cb   : > { %v1498_v54 = vmul.f32 0.17677669, %v1492_v53 }
 0x4cc   : > { %v1691_v55 = vpop.f32.mrf.mxu0 }
 0x4cd   : > { %v1701_v56 = vmul.f32 0.17677669, %v1691_v55  ;;  %v1502_v57 = vsel %vm5273_vm15, %v1498_v54, -1e+30 }
 0x4ce   : > { %v1512_v58 = vsel %vm1335_vm14, %v1502_v57, -inf }
 0x4cf   : > { %1513 = vmax.xlane.f32.xlu2 %v1512_v58  ;;  %v1705_v59 = vsel %vm5273_vm15, %v1701_v56, -1e+30 }
 0x4d0   : > { %3585 = vmatmul.msk.bf16.vlgmr.msrb.gmra.mxu3 %vm1335_vm14, %v1834_v38  ;;  %v1709_v30 = vsel %vm1335_vm14, %v1705_v59, -inf }
 0x4d1   : > { %1710 = vmax.xlane.f32.xlu1 %v1709_v30 }
 0x4d4   : > { %v1693_v61 = vpop.f32.mrf.mxu0 }
 0x4d5   : > { %v1702_v62 = vmul.f32 0.17677669, %v1693_v61 }
 0x4d7   : > { %v1706_v63 = vsel %vm5273_vm15, %v1702_v62, -1e+30 }
 0x4d8   : > { %v1712_v60 = vsel %vm1335_vm14, %v1706_v63, -inf }
 0x4d9   : > { %1713 = vmax.xlane.f32.xlu0 %v1712_v60 }
 0x4dc   : > { %v1696_v0 = vpop.f32.mrf.mxu0 }
 0x4dd   : > { %v1703_v1 = vmul.f32 0.17677669, %v1696_v0 }
 0x4df   : > { %v5354_v3 = vsel %vm5273_vm15, %v1703_v1, -1e+30 }
 0x4e0   : > { %3586 = vmatmul.msk.bf16.gmra.mxu3 %vm1335_vm14, %v1836_v2  ;;  %v1715_v4 = vsel %vm1335_vm14, %v5354_v3, -inf }
 0x4e1   : > { %1716 = vmax.xlane.f32.xlu0 %v1715_v4 }
 0x4e4   : > { %v1698_v5 = vpop.f32.mrf.mxu0 }
 0x4e5   : > { %v1704_v6 = vmul.f32 0.17677669, %v1698_v5 }
 0x4e7   : > { %v5361_v7 = vsel %vm5273_vm15, %v1704_v6, -1e+30 }
 0x4e8   : > { %v1718_v9 = vsel %vm1335_vm14, %v5361_v7, -inf }
 0x4e9   : > { %1719 = vmax.xlane.f32.xlu2 %v1718_v9 }
 0x4f5   : > { %1553 = vrot.lane.b32.xlu0 %v5254_v8, %s4750_s1 }
 0x501   : > { %1551 = vrot.lane.b32.xlu2 %v5259_v13, %s4750_s1 }
 0x533   : > { %v5369_v10 = vpop.f32.mrf.mxu3 }
 0x534   : > { %v1505_v11 = vpop.xlane.xlu2 %1504 }
 0x535   : > { %v1515_v12 = vsub.f32 %v1499_v43, %v1505_v11 }
 0x537   : > { %v1519_v14 = vmul.f32 1.442695, %v1515_v12 }
 0x539   : > { %4139 = vpow2.f32 %v1519_v14 }
 0x53a   : > { %v1511_v15 = vpop.xlane.xlu0 %1510 }
 0x53b   : > { %v1517_v16 = vsub.f32 %v1501_v49, %v1511_v15  ;;  %v5371_v17 = vpop.f32.mrf.mxu3 }
 0x53c   : > { %v1508_v18 = vpop.xlane.xlu1 %1507 }
 0x53d   : > { %v1523_v19 = vmul.f32 1.442695, %v1517_v16  ;;  %v1516_v20 = vsub.f32 %v1500_v51, %v1508_v18 }
 0x53f   : > { %v5373_v21 = vpop.eup %4139  ;;  %4141 = vpow2.f32 %v1523_v19  ;;  %v1521_v22 = vmul.f32 1.442695, %v1516_v20 }
 0x540   : > { %v1527_v23 = vsel %vm1335_vm14, %v5373_v21, 0.0 }
 0x541   : > { %4143 = vpow2.f32 %v1521_v22  ;;  %1528 = vadd.xlane.f32.xlu1 %v1527_v23 }
 0x542   : > { %v1514_v26 = vpop.xlane.xlu2 %1513 }
 0x543   : > { %v1518_v27 = vsub.f32 %v1502_v57, %v1514_v26  ;;  %v5377_v28 = vpop.f32.mrf.mxu3 }
 0x544   : > { %v1711_v29 = vpop.xlane.xlu1 %1710 }
 0x545   : > { %v5379_v32 = vpop.eup %4141  ;;  %v1525_v33 = vmul.f32 1.442695, %v1518_v27  ;;  %v1721_v34 = vsub.f32 %v1705_v59, %v1711_v29 }
 0x546   : > { %v1533_v37 = vsel %vm1335_vm14, %v5379_v32, 0.0 }
 0x547   : > { %v4144_v35 = vpop.eup %4143  ;;  %4145 = vpow2.f32 %v1525_v33  ;;  %v1725_v31 = vmul.f32 1.442695, %v1721_v34 }
 0x548   : > { %v1530_v36 = vsel %vm1335_vm14, %v4144_v35, 0.0 }
 0x549   : > { %4147 = vpow2.f32 %v1725_v31  ;;  %1531 = vadd.xlane.f32.xlu0 %v1530_v36  ;;  %1534 = vadd.xlane.f32.xlu1 %v1533_v37 }
 0x54b   : > { %v5384_v40 = vpop.f32.mrf.mxu3 }
 0x54c   : > { %v1714_v41 = vpop.xlane.xlu0 %1713 }
 0x54d   : > { %v5386_v42 = vpop.eup %4145  ;;  %v1722_v39 = vsub.f32 %v1706_v63, %v1714_v41 }
 0x54e   : > { %v1536_v46 = vsel %vm1335_vm14, %v5386_v42, 0.0 }
 0x54f   : > { %v5388_v43 = vpop.eup %4147  ;;  %v1727_v44 = vmul.f32 1.442695, %v1722_v39 }
 0x550   : > { %v1733_v45 = vsel %vm1335_vm14, %v5388_v43, 0.0 }
 0x551   : > { %4149 = vpow2.f32 %v1727_v44  ;;  %1734 = vadd.xlane.f32.xlu0 %v1733_v45  ;;  %1537 = vadd.xlane.f32.xlu1 %v1536_v46 }
 0x553   : > { %v1862_v47 = vpop.f32.mrf.mxu3 }
 0x554   : > { %v1872_v48 = vmul.f32 0.17677669, %v1862_v47  ;;  %v1717_v56 = vpop.xlane.xlu0 %1716 }
 0x555   : > { %v1723_v20 = vsub.f32 %v5354_v3, %v1717_v56 }
 0x556   : > { %v1876_v49 = vsel %vm5273_vm15, %v1872_v48, -1e+30 }
 0x557   : > { %v5396_v50 = vpop.eup %4149  ;;  %v1880_v51 = vsel %vm1335_vm14, %v1876_v49, -inf }
 0x558   : > { %1881 = vmax.xlane.f32.xlu2 %v1880_v51  ;;  %v1736_v52 = vsel %vm1335_vm14, %v5396_v50, 0.0 }
 0x559   : > { %1737 = vadd.xlane.f32.xlu1 %v1736_v52 }
 0x55b   : > { %v1864_v53 = vpop.f32.mrf.mxu3 }
 0x55c   : > { %v1873_v54 = vmul.f32 0.17677669, %v1864_v53  ;;  %v1720_v58 = vpop.xlane.xlu2 %1719 }
 0x55d   : > { %v1724_v31 = vsub.f32 %v5361_v7, %v1720_v58 }
 0x55e   : > { %v1877_v55 = vsel %vm5273_vm15, %v1873_v54, -1e+30 }
 0x55f   : > { %v1883_v57 = vsel %vm1335_vm14, %v1877_v55, -inf  ;;  %v1731_v41 = vmul.f32 1.442695, %v1724_v31 }
 0x561   : > { %1884 = vmax.xlane.f32.xlu1 %v1883_v57 }
 0x563   : > { %v1867_v38 = vpop.f32.mrf.mxu3 }
 0x564   : > { %v1874_v59 = vmul.f32 0.17677669, %v1867_v38  ;;  %v1552_v63 = vpop.permute.xlu2 %1551 }
 0x565   : > { %1928 = vrot.lane.b32.xlu0 %v5254_v8, %s4752_s0 }
 0x566   : > { %v5408_v30 = vsel %vm5273_vm15, %v1874_v59, -1e+30 }
 0x567   : > { %v1554_v61 = vpop.permute.xlu0 %1553  ;;  %v1886_v62 = vsel %vm1335_vm14, %v5408_v30, -inf }
 0x568   : > { %1569 = vmatpush.bf16.msrb.mxu1 %v1554_v61  ;;  %1887 = vmax.xlane.f32.xlu2 %v1886_v62 }
 0x56b   : > { %v1869_v60 = vpop.f32.mrf.mxu3 }
 0x56c   : > { %v1875_v0 = vmul.f32 0.17677669, %v1869_v60  ;;  %1570 = vmatpush.bf16.msrb.mxu1 %v1552_v63  ;;  %v3906_v60 = vld [vmem:[%s5108_s15 + $0x18] sm:$0xff] }
 0x56d   : > { %1926 = vrot.lane.b32.xlu0 %v5259_v13, %s4752_s0  ;;  %1612 = vmatpush.bf16.msra.mxu2 %v3906_v60 }
 0x56e   : > { %v1879_v1 = vsel %vm5273_vm15, %v1875_v0, -1e+30  ;;  %v3905_v0 = vld [vmem:[%s5108_s15 + $0x10] sm:$0xff] }
 0x56f   : > { %v1889_v2 = vsel %vm1335_vm14, %v1879_v1, -inf }
 0x570   : > { %1890 = vmax.xlane.f32.xlu1 %v1889_v2 }
 0x571   : > { %1613 = vmatpush.bf16.msra.mxu2 %v3905_v0 }
 0x580   : > { %1757 = vrot.lane.b32.xlu2 %v5254_v8, %s4751_s17 }
 0x589   : > { %1755 = vrot.lane.b32.xlu1 %v5259_v13, %s4751_s17 }
 0x5b4   : > { %v1529_v4 = vpop.xlane.xlu1 %1528 }
 0x5b5   : > { %4151 = vrcp.f32 %v1529_v4 }
 0x5bb   : > { %v4152_v9 = vpop.eup %4151 }
 0x5bc   : > { %v1532_v5 = vpop.xlane.xlu0 %1531  ;;  %v1535_v6 = vpop.xlane.xlu1 %1534  ;;  %v1543_v12 = vmul.f32 %v4152_v9, %v5373_v21  ;;  %v1729_v21 = vmul.f32 1.442695, %v1723_v20 }
 0x5bd   : > { %4153 = vrcp.f32 %v1532_v5 }
 0x5c3   : > { %v4154_v11 = vpop.eup %4153 }
 0x5c4   : > { %v1544_v24 = vmul.f32 %v4154_v11, %v4144_v35  ;;  %v1538_v14 = vpop.xlane.xlu1 %1537  ;;  %v1735_v22 = vpop.xlane.xlu0 %1734 }
 0x5c5   : > { %4155 = vrcp.f32 %v1538_v14 }
 0x5c6   : > { %v1547_v15 = vpack.c.bf16 %v1544_v24, %v1543_v12  ;;  %4157 = vrcp.f32 %v1535_v6  ;;  %v3908_v24 = vld [vmem:[%s5108_s15 + $0x28] sm:$0xff] }
 0x5c7   : > { %1816 = vmatpush.bf16.msrb.mxu2 %v3908_v24 }
 0x5c8   : > { %3549 = vmatmul.msk.bf16.vlgmr.msrb.gmra.mxu1 %vm1335_vm14, %v1547_v15 }
 0x5cb   : > { %v1882_v8 = vpop.xlane.xlu2 %1881  ;;  %v4156_v19 = vpop.eup %4155 }
 0x5cc   : > { %v1892_v16 = vsub.f32 %v1876_v49, %v1882_v8  ;;  %v1738_v18 = vpop.xlane.xlu1 %1737  ;;  %v4158_v23 = vpop.eup %4157  ;;  %v1546_v26 = vmul.f32 %v4156_v19, %v5386_v42 }
 0x5cd   : > { %v1545_v29 = vmul.f32 %v4158_v23, %v5379_v32 }
 0x5ce   : > { %v1896_v13 = vmul.f32 1.442695, %v1892_v16 }
 0x5cf   : > { %v1548_v35 = vpack.c.bf16 %v1546_v26, %v1545_v29 }
 0x5d0   : > { %4159 = vpow2.f32 %v1896_v13 }
 0x5d1   : > { %4161 = vpow2.f32 %v1729_v21 }
 0x5d4   : > { %v1885_v27 = vpop.xlane.xlu1 %1884 }
 0x5d5   : > { %v1893_v33 = vsub.f32 %v1877_v55, %v1885_v27 }
 0x5d6   : > { %v5426_v34 = vpop.eup %4159 }
 0x5d7   : > { %v1898_v36 = vmul.f32 1.442695, %v1893_v33  ;;  %v1929_v37 = vpop.permute.xlu0 %1928  ;;  %v1904_v3 = vsel %vm1335_vm14, %v5426_v34, 0.0  ;;  %v5432_v32 = vpop.eup %4161 }
 0x5d8   : > { %3550 = vmatmul.msk.bf16.gmra.mxu1 %vm1335_vm14, %v1548_v35  ;;  %1944 = vmatpush.bf16.msrb.mxu0 %v1929_v37  ;;  %v1739_v7 = vsel %vm1335_vm14, %v5432_v32, 0.0 }
 0x5d9   : > { %4163 = vpow2.f32 %v1898_v36  ;;  %1905 = vadd.xlane.f32.xlu1 %v1904_v3 }
 0x5da   : > { %4165 = vpow2.f32 %v1731_v41  ;;  %v3910_v41 = vld [vmem:[%s5108_s15 + $0x38] sm:$0xff] }
 0x5db   : > { %v1888_v42 = vpop.xlane.xlu2 %1887 }
 0x5dc   : > { %v1894_v44 = vsub.f32 %v5408_v30, %v1888_v42  ;;  %v3909_v42 = vld [vmem:[%s5108_s15 + $0x30] sm:$0xff] }
 0x5de   : > { %v1900_v47 = vmul.f32 1.442695, %v1894_v44 }
 0x5df   : > { %v4164_v39 = vpop.eup %4163  ;;  %v1927_v45 = vpop.permute.xlu0 %1926 }
 0x5e0   : > { %1945 = vmatpush.bf16.msrb.mxu0 %v1927_v45  ;;  %v1907_v46 = vsel %vm1335_vm14, %v4164_v39, 0.0  ;;  %v4166_v52 = vpop.eup %4165  ;;  %4167 = vpow2.f32 %v1900_v47 }
 0x5e1   : > { %1740 = vadd.xlane.f32.xlu1 %v1739_v7  ;;  %1908 = vadd.xlane.f32.xlu2 %v1907_v46  ;;  %v1742_v54 = vsel %vm1335_vm14, %v4166_v52, 0.0 }
 0x5e3   : > { %v1891_v48 = vpop.xlane.xlu1 %1890  ;;  %v1758_v49 = vpop.permute.xlu2 %1757 }
 0x5e4   : > { %v1895_v51 = vsub.f32 %v1879_v1, %v1891_v48  ;;  %1773 = vmatpush.bf16.msra.mxu1 %v1758_v49 }
 0x5e6   : > { %v1902_v53 = vmul.f32 1.442695, %v1895_v51  ;;  %v4168_v55 = vpop.eup %4167 }
 0x5e7   : > { %v1910_v58 = vsel %vm1335_vm14, %v4168_v55, 0.0 }
 0x5e8   : > { %4169 = vpow2.f32 %v1902_v53 }
 0x5e9   : > { %1743 = vadd.xlane.f32.xlu2 %v1742_v54  ;;  %4171 = vrcp.f32 %v1738_v18 }
 0x5ea   : > { %4173 = vrcp.f32 %v1735_v22  ;;  %v3907_v22 = vld [vmem:[%s5108_s15 + $0x20] sm:$0xff]  ;;  %s6151_s15 = scalar_lea.vmem [#allocation13], %s5086_s13 }
 0x5eb   : > { %1817 = vmatpush.bf16.msrb.mxu2 %v3907_v22 }
 0x5ee   : > { %v4170_v56 = vpop.eup %4169 }
 0x5ef   : > { %v1913_v57 = vsel %vm1335_vm14, %v4170_v56, 0.0  ;;  %v4172_v38 = vpop.eup %4171 }
 0x5f0   : > { %1914 = vadd.xlane.f32.xlu0 %v1913_v57  ;;  %v4174_v59 = vpop.eup %4173  ;;  %v1750_v30 = vmul.f32 %v4172_v38, %v5396_v50 }
 0x5f1   : > { %1911 = vadd.xlane.f32.xlu2 %v1910_v58  ;;  %v1749_v61 = vmul.f32 %v4174_v59, %v5388_v43  ;;  %v4109_v59 = vld [vmem:[%s6151_s15] ss:$0 sm:$0xff] }
 0x5f3   : > { %v1753_v63 = vpack.c.bf16 %v1750_v30, %v1749_v61  ;;  %v4259_v30 = vld [vmem:[#allocation2] sm:$0xff] }
 0x5fb   : > { %v1756_v62 = vpop.permute.xlu1 %1755 }
 0x5fc   : > { %1774 = vmatpush.bf16.msra.mxu1 %v1756_v62 }
 0x5ff   : > { %3573 = vmatmul.msk.bf16.vlgmr.msra.gmra.mxu1 %vm1335_vm14, %v1753_v63 }
 0x600   : > { %1987 = vmatpush.bf16.msrb.mxu1 %v3910_v41 }
 0x604   : > { %1988 = vmatpush.bf16.msrb.mxu1 %v3909_v42  ;;  %v3713_v42 = vld [vmem:[%s5124_s26 + $0xe0] sm:$0xf] }
 0x645   : > { %v1572_v1 = vpop.f32.mrf.mxu1 }
 0x64c   : > { %v1906_v4 = vpop.xlane.xlu1 %1905 }
 0x64d   : > { %v1574_v2 = vpop.f32.mrf.mxu1  ;;  %4175 = vrcp.f32 %v1906_v4  ;;  %v4260_v4 = vld [vmem:[#allocation2 + $0x8] sm:$0xff] }
 0x64e   : > { %v1582_v5 = vpack.c.bf16 %v1574_v2, %v1572_v1 }
 0x650   : > { %3559 = vmatmul.msk.bf16.vlgmr.msra.gmra.mxu2 %vm1335_vm14, %v1582_v5 }
 0x653   : > { %v4176_v9 = vpop.eup %4175 }
 0x654   : > { %v1909_v50 = vpop.xlane.xlu2 %1908  ;;  %v1741_v43 = vpop.xlane.xlu1 %1740  ;;  %v1920_v14 = vmul.f32 %v4176_v9, %v5426_v34 }
 0x655   : > { %v1577_v6 = vpop.f32.mrf.mxu1  ;;  %4177 = vrcp.f32 %v1909_v50 }
 0x656   : > { %4179 = vrcp.f32 %v1741_v43 }
 0x65b   : > { %v4178_v11 = vpop.eup %4177 }
 0x65c   : > { %v1744_v12 = vpop.xlane.xlu2 %1743  ;;  %v1921_v15 = vmul.f32 %v4178_v11, %v4164_v39  ;;  %v4180_v13 = vpop.eup %4179 }
 0x65d   : > { %4181 = vrcp.f32 %v1744_v12  ;;  %v1579_v8 = vpop.f32.mrf.mxu1  ;;  %v1751_v26 = vmul.f32 %v4180_v13, %v5432_v32 }
 0x65e   : > { %v1583_v16 = vpack.c.bf16 %v1579_v8, %v1577_v6  ;;  %v1924_v18 = vpack.c.bf16 %v1921_v15, %v1920_v14 }
 0x660   : > { %3560 = vmatmul.msk.bf16.gmra.mxu2 %vm1335_vm14, %v1583_v16  ;;  %3587 = vmatmul.msk.bf16.vlgmr.msrb.gmra.mxu0 %vm1335_vm14, %v1924_v18  ;;  %v4262_v18 = vld [vmem:[#allocation2 + $0x18] sm:$0xff] }
 0x663   : > { %v4182_v19 = vpop.eup %4181  ;;  %v1915_v20 = vpop.xlane.xlu0 %1914 }
 0x664   : > { %4183 = vrcp.f32 %v1915_v20  ;;  %v1912_v23 = vpop.xlane.xlu2 %1911  ;;  %v1752_v21 = vmul.f32 %v4182_v19, %v4166_v52 }
 0x665   : > { %4185 = vrcp.f32 %v1912_v23 }
 0x666   : > { %v1754_v27 = vpack.c.bf16 %v1752_v21, %v1751_v26 }
 0x668   : > { %3574 = vmatmul.msk.bf16.gmra.mxu1 %vm1335_vm14, %v1754_v27 }
 0x66a   : > { %v4184_v29 = vpop.eup %4183 }
 0x66b   : > { %v4186_v33 = vpop.eup %4185  ;;  %v1923_v34 = vmul.f32 %v4184_v29, %v4170_v56 }
 0x66c   : > { %v1922_v35 = vmul.f32 %v4186_v33, %v4168_v55 }
 0x66e   : > { %v1925_v31 = vpack.c.bf16 %v1923_v34, %v1922_v35 }
 0x670   : > { %3588 = vmatmul.msk.bf16.gmra.mxu0 %vm1335_vm14, %v1925_v31 }
 0x67c   : > { %v1776_v36 = vpop.f32.mrf.mxu1 }
 0x684   : > { %v1778_v37 = vpop.f32.mrf.mxu1 }
 0x685   : > { %v1786_v3 = vpack.c.bf16 %v1778_v37, %v1776_v36 }
 0x687   : > { %3583 = vmatmul.msk.bf16.vlgmr.msrb.gmra.mxu2 %vm1335_vm14, %v1786_v3 }
 0x6d3   : > { %v1615_v51 = vpop.f32.mrf.mxu2 }
 0x6d4   : > { %v1653_v56 = vadd.f32 %v5369_v10, %v1615_v51  ;;  %v3723_v51 = vld [vmem:[%s5124_s26 + $0xf8] sm:$0xf0] }
 0x6db   : > { %v1617_v52 = vpop.f32.mrf.mxu2 }
 0x6dc   : > { %v1655_v63 = vadd.f32 %v5371_v17, %v1617_v52  ;;  %v4261_v17 = vld [vmem:[#allocation2 + $0x10] sm:$0xff] }
 0x6dd   : > { %v1947_v32 = vpop.f32.mrf.mxu0 }
 0x6e3   : > { %v1620_v53 = vpop.f32.mrf.mxu2 }
 0x6e4   : > { %v1658_v10 = vadd.f32 %v5377_v28, %v1620_v53  ;;  %v3697_v53 = vld [vmem:[%s5124_s26 + $0xc0] sm:$0xf] }
 0x6e5   : > { %v1781_v39 = vpop.f32.mrf.mxu1  ;;  %v1949_v44 = vpop.f32.mrf.mxu0 }
 0x6e6   : > { %v1957_v45 = vpack.c.bf16 %v1949_v44, %v1947_v32  ;;  %v3941_v32 = vld [vmem:[%s5124_s26 + $0xec] sm:$0xf0] }
 0x6e7   : > { %v3714_v44 = vor.u32 %v3941_v32, %v3713_v42 }
 0x6e8   : > { %3597 = vmatmul.msk.bf16.vlgmr.msrb.gmra.mxu1 %vm1335_vm14, %v1957_v45  ;;  %v3715_v45 = vld [vmem:[%s5124_s26 + $0xf0] sm:$0xf0] }
 0x6e9   : > { %2316 = vmatpush.bf16.msra.mxu2 %v3714_v44  ;;  %v3659_v44 = vld [vmem:[%s5124_s26 + $0x78] sm:$0xf0] }
 0x6eb   : > { %v1622_v54 = vpop.f32.mrf.mxu2 }
 0x6ec   : > { %v1660_v24 = vadd.f32 %v5384_v40, %v1622_v54  ;;  %v3937_v54 = vld [vmem:[%s5124_s26 + $0xcc] sm:$0xf0] }
 0x6ed   : > { %v1783_v7 = vpop.f32.mrf.mxu1  ;;  %v1952_v47 = vpop.f32.mrf.mxu0 }
 0x6ee   : > { %v1787_v46 = vpack.c.bf16 %v1783_v7, %v1781_v39  ;;  %v3939_v39 = vld [vmem:[%s5124_s26 + $0xe4] sm:$0xf]  ;;  %v3721_v7 = vld [vmem:[%s5124_s26 + $0xe8] sm:$0xf] }
 0x6f0   : > { %3584 = vmatmul.msk.bf16.gmra.mxu2 %vm1335_vm14, %v1787_v46  ;;  %v3942_v46 = vld [vmem:[%s5124_s26 + $0xf4] sm:$0xf0] }
 0x6f5   : > { %v1954_v48 = vpop.f32.mrf.mxu0 }
 0x6f6   : > { %v1958_v49 = vpack.c.bf16 %v1954_v48, %v1952_v47  ;;  %v3718_v47 = vor.u32 %v3939_v39, %v3715_v45  ;;  %v3722_v48 = vor.u32 %v3942_v46, %v3721_v7  ;;  %v3924_v39 = vld [vmem:[%s5124_s26 + $0x6c] sm:$0xf]  ;;  %v3633_v7 = vld [vmem:[%s5124_s26 + $0x40] sm:$0xf]  ;;  %v3921_v46 = vld [vmem:[%s5124_s26 + $0x4c] sm:$0xf0] }
 0x6f7   : > { %v3662_v45 = vor.u32 %v3924_v39, %v3659_v44 }
 0x6f8   : > { %3598 = vmatmul.msk.bf16.gmra.mxu1 %vm1335_vm14, %v1958_v49  ;;  %v3940_v49 = vld [vmem:[%s5124_s26 + $0xec] sm:$0xf]  ;;  %2335 = vmatpush.bf16.msra.mxu3 %v3718_v47  ;;  %v3919_v47 = vld [vmem:[%s5124_s26 + $0x44] sm:$0xf] }
 0x6f9   : > { %v3726_v52 = vor.u32 %v3940_v49, %v3723_v51  ;;  %2354 = vmatpush.bf16.msra.mxu0 %v3722_v48  ;;  %v3634_v48 = vor.u32 %v3921_v46, %v3633_v7  ;;  %v3635_v49 = vld [vmem:[%s5124_s26 + $0x50] sm:$0xf0]  ;;  %v3641_v51 = vld [vmem:[%s5124_s26 + $0x48] sm:$0xf] }
 0x6fb   : > { %2373 = vmatpush.bf16.msra.mxu1 %v3726_v52  ;;  %v3922_v52 = vld [vmem:[%s5124_s26 + $0x54] sm:$0xf0] }
 0x70a   : > { %v1819_v55 = vpop.f32.mrf.mxu2 }
 0x70b   : > { %v1829_v57 = vadd.f32 %v1819_v55, %v1653_v56  ;;  %v3935_v55 = vld [vmem:[%s5124_s26 + $0xc4] sm:$0xf]  ;;  %v3698_v56 = vor.u32 %v3937_v54, %v3697_v53  ;;  %v3638_v53 = vor.u32 %v3919_v47, %v3635_v49  ;;  %v3642_v54 = vor.u32 %v3922_v52, %v3641_v51 }
 0x70d   : > { %2317 = vmatpush.bf16.msra.mxu2 %v3698_v56  ;;  %v3643_v56 = vld [vmem:[%s5124_s26 + $0x58] sm:$0xf0] }
 0x712   : > { %v1821_v62 = vpop.f32.mrf.mxu2 }
 0x713   : > { %v1830_v0 = vadd.f32 %v1821_v62, %v1655_v63  ;;  %v3707_v62 = vld [vmem:[%s5124_s26 + $0xd8] sm:$0xf0] }
 0x765   : > { %v1990_v58 = vpop.f32.mrf.mxu1 }
 0x766   : > { %v2000_v38 = vadd.f32 %v1990_v58, %v1829_v57  ;;  %v3699_v57 = vld [vmem:[%s5124_s26 + $0xd0] sm:$0xf0]  ;;  %v3705_v58 = vld [vmem:[%s5124_s26 + $0xc8] sm:$0xf] }
 0x768   : > { %v2004_v61 = vadd.f32 %v4259_v30, %v2000_v38  ;;  %v3938_v38 = vld [vmem:[%s5124_s26 + $0xd4] sm:$0xf0] }
 0x769   : > { %v3706_v30 = vor.u32 %v3938_v38, %v3705_v58  ;;  %v3617_v58 = vld [vmem:[%s5124_s26 + $0x20] sm:$0xf]  ;;  %v3917_v38 = vld [vmem:[%s5124_s26 + $0x2c] sm:$0xf0] }
 0x76a   : > { %v5465_v60 = vadd.f32 %v4109_v59, %v2004_v61  ;;  %v3936_v61 = vld [vmem:[%s5124_s26 + $0xcc] sm:$0xf] }
 0x76b   : > { %v3710_v63 = vor.u32 %v3936_v61, %v3707_v62  ;;  %2355 = vmatpush.bf16.msra.mxu0 %v3706_v30  ;;  %v3618_v30 = vor.u32 %v3917_v38, %v3617_v58  ;;  %v3619_v61 = vld [vmem:[%s5124_s26 + $0x30] sm:$0xf0]  ;;  %v3625_v62 = vld [vmem:[%s5124_s26 + $0x28] sm:$0xf] }
 0x76c   : > { %2016 = vadd.xlane.f32.xlu2 %v5465_v60 }
 0x76d   : > { %v1992_v1 = vpop.f32.mrf.mxu1  ;;  %2374 = vmatpush.bf16.msra.mxu1 %v3710_v63  ;;  %v3918_v63 = vld [vmem:[%s5124_s26 + $0x34] sm:$0xf0] }
 0x76e   : > { %v2001_v2 = vadd.f32 %v1992_v1, %v1830_v0  ;;  %v3681_v0 = vld [vmem:[%s5124_s26 + $0xa0] sm:$0xf]  ;;  %v3933_v1 = vld [vmem:[%s5124_s26 + $0xac] sm:$0xf0] }
 0x770   : > { %v2005_v5 = vadd.f32 %v4260_v4, %v2001_v2  ;;  %v3931_v2 = vld [vmem:[%s5124_s26 + $0xa4] sm:$0xf]  ;;  %v3682_v4 = vor.u32 %v3933_v1, %v3681_v0  ;;  %v3626_v1 = vor.u32 %v3918_v63, %v3625_v62 }
 0x772   : > { %v5469_v6 = vadd.f32 %v4109_v59, %v2005_v5  ;;  %v3683_v5 = vld [vmem:[%s5124_s26 + $0xb0] sm:$0xf0]  ;;  %2318 = vmatpush.bf16.msra.mxu2 %v3682_v4  ;;  %v3627_v4 = vld [vmem:[%s5124_s26 + $0x38] sm:$0xf0] }
 0x773   : > { %v1824_v50 = vpop.f32.mrf.mxu2 }
 0x774   : > { %v1831_v43 = vadd.f32 %v1824_v50, %v1658_v10  ;;  %2018 = vadd.xlane.f32.xlu2 %v5469_v6  ;;  %v3689_v10 = vld [vmem:[%s5124_s26 + $0xa8] sm:$0xf]  ;;  %v3934_v50 = vld [vmem:[%s5124_s26 + $0xb4] sm:$0xf0] }
 0x775   : > { %v1995_v9 = vpop.f32.mrf.mxu1 }
 0x776   : > { %v2002_v11 = vadd.f32 %v1995_v9, %v1831_v43  ;;  %v3686_v43 = vor.u32 %v3931_v2, %v3683_v5  ;;  %v3690_v9 = vor.u32 %v3934_v50, %v3689_v10  ;;  %v3916_v2 = vld [vmem:[%s5124_s26 + $0x2c] sm:$0xf] }
 0x777   : > { %v3630_v10 = vor.u32 %v3916_v2, %v3627_v4 }
 0x778   : > { %v2006_v12 = vadd.f32 %v4261_v17, %v2002_v11  ;;  %v3932_v11 = vld [vmem:[%s5124_s26 + $0xac] sm:$0xf]  ;;  %v3691_v17 = vld [vmem:[%s5124_s26 + $0xb8] sm:$0xf0]  ;;  %2356 = vmatpush.bf16.msra.mxu0 %v3690_v9  ;;  %v3913_v9 = vld [vmem:[%s5124_s26 + $0xc] sm:$0xf0] }
 0x77a   : > { %v5473_v15 = vadd.f32 %v4109_v59, %v2006_v12  ;;  %v3694_v12 = vor.u32 %v3932_v11, %v3691_v17  ;;  %v3911_v11 = vld [vmem:[%s5124_s26 + $0x4] sm:$0xf] }
 0x77b   : > { %v1826_v14 = vpop.f32.mrf.mxu2 }
 0x77c   : > { %v1832_v8 = vadd.f32 %v1826_v14, %v1660_v24  ;;  %2020 = vadd.xlane.f32.xlu1 %v5473_v15  ;;  %v3665_v24 = vld [vmem:[%s5124_s26 + $0x80] sm:$0xf]  ;;  %v3929_v14 = vld [vmem:[%s5124_s26 + $0x8c] sm:$0xf0]  ;;  %2375 = vmatpush.bf16.msra.mxu1 %v3694_v12  ;;  %v3603_v12 = vld [vmem:[%s5124_s26 + $0x10] sm:$0xf0] }
 0x77d   : > { %v1997_v16 = vpop.f32.mrf.mxu1 }
 0x77e   : > { %v2003_v28 = vadd.f32 %v1997_v16, %v1832_v8  ;;  %v3927_v8 = vld [vmem:[%s5124_s26 + $0x84] sm:$0xf]  ;;  %v3666_v16 = vor.u32 %v3929_v14, %v3665_v24  ;;  %v3609_v24 = vld [vmem:[%s5124_s26 + $0x8] sm:$0xf]  ;;  %v3914_v14 = vld [vmem:[%s5124_s26 + $0x14] sm:$0xf0] }
 0x780   : > { %v2007_v13 = vadd.f32 %v4262_v18, %v2003_v28  ;;  %v3667_v28 = vld [vmem:[%s5124_s26 + $0x90] sm:$0xf0]  ;;  %v3673_v18 = vld [vmem:[%s5124_s26 + $0x88] sm:$0xf]  ;;  %2319 = vmatpush.bf16.msra.mxu2 %v3666_v16  ;;  %v3606_v16 = vor.u32 %v3911_v11, %v3603_v12 }
 0x782   : > { %v5476_v19 = vadd.f32 %v4109_v59, %v2007_v13  ;;  %v3702_v59 = vor.u32 %v3935_v55, %v3699_v57  ;;  %v3930_v13 = vld [vmem:[%s5124_s26 + $0x94] sm:$0xf0]  ;;  %v3920_v55 = vld [vmem:[%s5124_s26 + $0x4c] sm:$0xf] }
 0x783   : > { %v3646_v57 = vor.u32 %v3920_v55, %v3643_v56 }
 0x784   : > { %2022 = vadd.xlane.f32.xlu2 %v5476_v19  ;;  %2336 = vmatpush.bf16.msra.mxu3 %v3702_v59  ;;  %v3915_v59 = vld [vmem:[%s5124_s26 + $0x24] sm:$0xf] }
 0x785   : > { %v3622_v0 = vor.u32 %v3915_v59, %v3619_v61 }
 0x788   : > { %2337 = vmatpush.bf16.msra.mxu3 %v3686_v43  ;;  %v3601_v43 = vld [vmem:[%s5124_s26] sm:$0xf] }
 0x789   : > { %v3602_v17 = vor.u32 %v3913_v9, %v3601_v43 }
 0x7df   : > { %v2017_v20 = vpop.xlane.xlu2 %2016 }
 0x7e0   : > { %v2024_v22 = vmul.f32 %v2017_v20, %v5165_v25  ;;  %v3670_v20 = vor.u32 %v3927_v8, %v3667_v28  ;;  %v3610_v28 = vor.u32 %v3914_v14, %v3609_v24 }
 0x7e2   : > { %v5481_v23 = vsub.f32 %v5465_v60, %v2024_v22  ;;  %v3674_v22 = vor.u32 %v3930_v13, %v3673_v18  ;;  %2338 = vmatpush.bf16.msra.mxu3 %v3670_v20  ;;  %v3912_v18 = vld [vmem:[%s5124_s26 + $0xc] sm:$0xf]  ;;  %v3611_v13 = vld [vmem:[%s5124_s26 + $0x18] sm:$0xf0] }
 0x7e3   : > { %v3614_v20 = vor.u32 %v3912_v18, %v3611_v13 }
 0x7e4   : > { %v2032_v40 = vmul.f32 %v5481_v23, %v5481_v23  ;;  %2357 = vmatpush.bf16.msra.mxu0 %v3674_v22 }
 0x7e6   : > { %2036 = vadd.xlane.f32.xlu1 %v2032_v40  ;;  %v3928_v40 = vld [vmem:[%s5124_s26 + $0x8c] sm:$0xf] }
 0x7e7   : > { %v2019_v26 = vpop.xlane.xlu2 %2018 }
 0x7e8   : > { %v2025_v21 = vmul.f32 %v2019_v26, %v5165_v25  ;;  %v3675_v26 = vld [vmem:[%s5124_s26 + $0x98] sm:$0xf0] }
 0x7ea   : > { %v5487_v27 = vsub.f32 %v5469_v6, %v2025_v21  ;;  %v3678_v21 = vor.u32 %v3928_v40, %v3675_v26 }
 0x7ec   : > { %v2033_v29 = vmul.f32 %v5487_v27, %v5487_v27  ;;  %2376 = vmatpush.bf16.msra.mxu1 %v3678_v21 }
 0x7ee   : > { %2038 = vadd.xlane.f32.xlu2 %v2033_v29  ;;  %v3649_v29 = vld [vmem:[%s5124_s26 + $0x60] sm:$0xf] }
 0x7ef   : > { %v2021_v33 = vpop.xlane.xlu1 %2020 }
 0x7f0   : > { %v2026_v34 = vmul.f32 %v2021_v33, %v5165_v25  ;;  %v3925_v33 = vld [vmem:[%s5124_s26 + $0x6c] sm:$0xf0]  ;;  %2377 = vmatpush.bf16.msra.mxu1 %v3662_v45 }
 0x7f2   : > { %v5493_v35 = vsub.f32 %v5473_v15, %v2026_v34  ;;  %v3923_v34 = vld [vmem:[%s5124_s26 + $0x64] sm:$0xf] }
 0x7f4   : > { %v2034_v31 = vmul.f32 %v5493_v35, %v5493_v35  ;;  %2378 = vmatpush.bf16.msra.mxu1 %v3646_v57 }
 0x7f6   : > { %2040 = vadd.xlane.f32.xlu1 %v2034_v31  ;;  %v3650_v31 = vor.u32 %v3925_v33, %v3649_v29 }
 0x7f7   : > { %v2023_v36 = vpop.xlane.xlu2 %2022 }
 0x7f8   : > { %v2027_v37 = vmul.f32 %v2023_v36, %v5165_v25  ;;  %v3651_v36 = vld [vmem:[%s5124_s26 + $0x70] sm:$0xf0]  ;;  %2320 = vmatpush.bf16.msra.mxu2 %v3650_v31  ;;  %2379 = vmatpush.bf16.msra.mxu1 %v3630_v10 }
 0x7f9   : > { %v3654_v42 = vor.u32 %v3923_v34, %v3651_v36 }
 0x7fa   : > { %v5499_v3 = vsub.f32 %v5476_v19, %v2027_v37  ;;  %v3657_v37 = vld [vmem:[%s5124_s26 + $0x68] sm:$0xf] }
 0x7fb   : > { %2339 = vmatpush.bf16.msra.mxu3 %v3654_v42 }
 0x7fc   : > { %v2035_v41 = vmul.f32 %v5499_v3, %v5499_v3  ;;  %2321 = vmatpush.bf16.msra.mxu2 %v3634_v48  ;;  %2380 = vmatpush.bf16.msra.mxu1 %v3614_v20 }
 0x7fe   : > { %2042 = vadd.xlane.f32.xlu2 %v2035_v41  ;;  %v3926_v41 = vld [vmem:[%s5124_s26 + $0x74] sm:$0xf0]  ;;  %s6153_s26 = scalar_lea.vmem [#allocation16], %s5086_s13 }
 0x7ff   : > { %v3658_v32 = vor.u32 %v3926_v41, %v3657_v37  ;;  %2340 = vmatpush.bf16.msra.mxu3 %v3638_v53  ;;  %v4110_v53 = vld [vmem:[%s6152_s14] ss:$0 sm:$0xff] }
 0x800   : > { %2322 = vmatpush.bf16.msra.mxu2 %v3618_v30 }
 0x801   : > { %2358 = vmatpush.bf16.msra.mxu0 %v3658_v32 }
 0x803   : > { %2341 = vmatpush.bf16.msra.mxu3 %v3622_v0 }
 0x804   : > { %2323 = vmatpush.bf16.msra.mxu2 %v3602_v17 }
 0x805   : > { %2359 = vmatpush.bf16.msra.mxu0 %v3642_v54 }
 0x807   : > { %2342 = vmatpush.bf16.msra.mxu3 %v3606_v16  ;;  %v2146_v16 = vld [vmem:[%s5131_s2] sm:$0xf] }
 0x808   : > { %v5582_v18 = vperm.slane %v2146_v16, 2  ;;  %v5584_v13 = vperm.slane %v2146_v16, 3 }
 0x809   : > { %2360 = vmatpush.bf16.msra.mxu0 %v3626_v1 }
 0x80d   : > { %2361 = vmatpush.bf16.msra.mxu0 %v3610_v28  ;;  %v3966_v28 = vld [vmem:[%s5134_s25 + $0xb8] sm:$0xff] }
 0x811   : > { %3034 = vmatpush.bf16.msrb.mxu0 %v3966_v28 }
 0x859   : > { %v2037_v5 = vpop.xlane.xlu1 %2036 }
 0x85a   : > { %v2044_v50 = vmul.f32 %v2037_v5, %v5165_v25 }
 0x85c   : > { %v2048_v8 = vadd.f32 1e-05, %v2044_v50 }
 0x85e   : > { %4187 = vrsqrt.f32 %v2048_v8  ;;  %vm2058_vm1 = vweird.f32 %v2048_v8 }
 0x861   : > { %v2039_v22 = vpop.xlane.xlu2 %2038 }
 0x862   : > { %v2045_v40 = vmul.f32 %v2039_v22, %v5165_v25 }
 0x864   : > { %v4188_v26 = vpop.eup %4187  ;;  %v2049_v21 = vadd.f32 1e-05, %v2045_v40 }
 0x865   : > { %v2053_v29 = vmul.f32 %v4188_v26, %v2048_v8  ;;  %vm2059_vm0 = vweird.f32 %v4188_v26 }
 0x866   : > { %4189 = vrsqrt.f32 %v2049_v21  ;;  %vm2060_vm2 = vmor %vm2058_vm1, %vm2059_vm0  ;;  %vm2068_vm4 = vweird.f32 %v2049_v21 }
 0x867   : > { %v2054_v33 = vmul.f32 %v4188_v26, %v2053_v29 }
 0x869   : > { %v2055_v34 = vmul.f32 0.5, %v2054_v33  ;;  %v2041_v31 = vpop.xlane.xlu1 %2040 }
 0x86a   : > { %v2046_v36 = vmul.f32 %v2041_v31, %v5165_v25 }
 0x86b   : > { %v2056_v37 = vsub.f32 1.5, %v2055_v34 }
 0x86c   : > { %v4190_v41 = vpop.eup %4189  ;;  %v2050_v42 = vadd.f32 1e-05, %v2046_v36 }
 0x86d   : > { %v2057_v32 = vmul.f32 %v4188_v26, %v2056_v37  ;;  %v2063_v39 = vmul.f32 %v4190_v41, %v2049_v21  ;;  %vm2069_vm3 = vweird.f32 %v4190_v41  ;;  %v5594_v21 = vperm.slane %v2146_v16, 1 }
 0x86e   : > { %4191 = vrsqrt.f32 %v2050_v42  ;;  %vm2070_vm5 = vmor %vm2068_vm4, %vm2069_vm3  ;;  %vm2078_vm7 = vweird.f32 %v2050_v42 }
 0x86f   : > { %v2064_v44 = vmul.f32 %v4190_v41, %v2063_v39  ;;  %v2061_v45 = vsel %vm2060_vm2, %v4188_v26, %v2057_v32  ;;  %v5592_v26 = vperm.slane %v2146_v16, 0 }
 0x870   : > { %v2092_v51 = vmul.f32 %v2061_v45, %v5481_v23  ;;  %v3958_v45 = vld [vmem:[%s5134_s25 + $0x78] sm:$0xff] }
 0x871   : > { %v2065_v7 = vmul.f32 0.5, %v2064_v44  ;;  %v2043_v46 = vpop.xlane.xlu2 %2042  ;;  %v3950_v44 = vld [vmem:[%s5134_s25 + $0x38] sm:$0xff]  ;;  %3015 = vmatpush.bf16.msrb.mxu3 %v3958_v45  ;;  %v3948_v45 = vld [vmem:[%s5134_s25 + $0x28] sm:$0xff] }
 0x872   : > { %v2047_v47 = vmul.f32 %v2043_v46, %v5165_v25  ;;  %v2100_v38 = vmul.f32 %v4110_v53, %v2092_v51  ;;  %v4111_v25 = vld [vmem:[%s6153_s26] ss:$0 sm:$0xff]  ;;  %2996 = vmatpush.bf16.msrb.mxu2 %v3950_v44 }
 0x873   : > { %v2066_v48 = vsub.f32 1.5, %v2065_v7 }
 0x874   : > { %v4192_v49 = vpop.eup %4191  ;;  %v2051_v52 = vadd.f32 1e-05, %v2047_v47  ;;  %v2108_v23 = vadd.f32 %v4111_v25, %v2100_v38 }
 0x875   : > { %v2067_v54 = vmul.f32 %v4190_v41, %v2066_v48  ;;  %v2073_v55 = vmul.f32 %v4192_v49, %v2050_v42  ;;  %vm2079_vm6 = vweird.f32 %v4192_v49  ;;  %v3973_v42 = vld [vmem:[%s5134_s25 + $0xf0] sm:$0xff] }
 0x876   : > { %4193 = vrsqrt.f32 %v2051_v52  ;;  %vm2080_vm8 = vmor %vm2078_vm7, %vm2079_vm6  ;;  %vm2088_vm10 = vweird.f32 %v2051_v52 }
 0x877   : > { %v2071_v56 = vsel %vm2070_vm5, %v4190_v41, %v2067_v54  ;;  %v2074_v57 = vmul.f32 %v4192_v49, %v2073_v55  ;;  %v3965_v41 = vld [vmem:[%s5134_s25 + $0xb0] sm:$0xff] }
 0x878   : > { %v2093_v58 = vmul.f32 %v2071_v56, %v5487_v27  ;;  %3035 = vmatpush.bf16.msrb.mxu0 %v3965_v41  ;;  %v3964_v56 = vld [vmem:[%s5134_s25 + $0xa8] sm:$0xff] }
 0x879   : > { %v2075_v59 = vmul.f32 0.5, %v2074_v57  ;;  %v3972_v57 = vld [vmem:[%s5134_s25 + $0xe8] sm:$0xff] }
 0x87a   : > { %v2101_v30 = vmul.f32 %v4110_v53, %v2093_v58 }
 0x87b   : > { %v2076_v61 = vsub.f32 1.5, %v2075_v59 }
 0x87c   : > { %v4194_v62 = vpop.eup %4193  ;;  %v2109_v63 = vadd.f32 %v4111_v25, %v2101_v30  ;;  %3036 = vmatpush.bf16.msrb.mxu0 %v3964_v56 }
 0x87d   : > { %v2077_v0 = vmul.f32 %v4192_v49, %v2076_v61  ;;  %v2083_v1 = vmul.f32 %v4194_v62, %v2051_v52  ;;  %vm2089_vm9 = vweird.f32 %v4194_v62 }
 0x87e   : > { %v2112_v2 = vpack.c.bf16 %v2109_v63, %v2108_v23  ;;  %vm2090_vm11 = vmor %vm2088_vm10, %vm2089_vm9 }
 0x87f   : > { %v2084_v4 = vmul.f32 %v4194_v62, %v2083_v1  ;;  %v2081_v5 = vsel %vm2080_vm8, %v4192_v49, %v2077_v0 }
 0x880   : > { %2324 = vmatmul.bf16.vlgmr.msra.gmra.mxu2 %v2112_v2  ;;  %2343 = vmatmul.bf16.vlgmr.msra.gmra.mxu3 %v2112_v2  ;;  %v2094_v50 = vmul.f32 %v2081_v5, %v5493_v35  ;;  %v3974_v35 = vld [vmem:[%s5134_s25 + $0xf8] sm:$0xff] }
 0x881   : > { %v2085_v27 = vmul.f32 0.5, %v2084_v4  ;;  %2362 = vmatmul.bf16.vlgmr.msra.gmra.mxu0 %v2112_v2  ;;  %2381 = vmatmul.bf16.vlgmr.msra.gmra.mxu1 %v2112_v2 }
 0x882   : > { %v2102_v17 = vmul.f32 %v4110_v53, %v2094_v50  ;;  %3053 = vmatpush.bf16.msrb.mxu1 %v3974_v35 }
 0x883   : > { %v2086_v10 = vsub.f32 1.5, %v2085_v27 }
 0x884   : > { %v2110_v24 = vadd.f32 %v4111_v25, %v2102_v17  ;;  %v3949_v17 = vld [vmem:[%s5134_s25 + $0x30] sm:$0xff] }
 0x885   : > { %v2087_v43 = vmul.f32 %v4194_v62, %v2086_v10  ;;  %2997 = vmatpush.bf16.msrb.mxu2 %v3949_v17 }
 0x886   : > { %3054 = vmatpush.bf16.msrb.mxu1 %v3973_v42 }
 0x887   : > { %v2091_v9 = vsel %vm2090_vm11, %v4194_v62, %v2087_v43 }
 0x888   : > { %v2095_v11 = vmul.f32 %v2091_v9, %v5499_v3 }
 0x889   : > { %2998 = vmatpush.bf16.msrb.mxu2 %v3948_v45 }
 0x88a   : > { %v2103_v12 = vmul.f32 %v4110_v53, %v2095_v11  ;;  %3055 = vmatpush.bf16.msrb.mxu1 %v3972_v57 }
 0x88c   : > { %v2111_v14 = vadd.f32 %v4111_v25, %v2103_v12  ;;  %v3957_v12 = vld [vmem:[%s5134_s25 + $0x70] sm:$0xff] }
 0x88d   : > { %3016 = vmatpush.bf16.msrb.mxu3 %v3957_v12 }
 0x88e   : > { %v2113_v8 = vpack.c.bf16 %v2111_v14, %v2110_v24 }
 0x890   : > { %2329 = vmatmul.bf16.gmra.mxu2 %v2113_v8  ;;  %2348 = vmatmul.bf16.gmra.mxu3 %v2113_v8 }
 0x891   : > { %2367 = vmatmul.bf16.gmra.mxu0 %v2113_v8  ;;  %2386 = vmatmul.bf16.gmra.mxu1 %v2113_v8 }
 0x8fe   : > { %v2363_v3 = vpop.f32.mrf.mxu0  ;;  %v2382_v20 = vpop.f32.mrf.mxu1 }
 0x8ff   : > { %v5587_v22 = vadd.f32 %v2363_v3, %v5582_v18  ;;  %v5590_v40 = vadd.f32 %v2382_v20, %v5584_v13 }
 0x901   : > { %v3729_v29 = vmul.f32 -1.702, %v5587_v22  ;;  %v3730_v33 = vmul.f32 -1.702, %v5590_v40 }
 0x903   : > { %v2428_v34 = vmul.f32 1.442695, %v3729_v29  ;;  %v2430_v31 = vmul.f32 1.442695, %v3730_v33  ;;  %v2325_v36 = vpop.f32.mrf.mxu2  ;;  %v2344_v37 = vpop.f32.mrf.mxu3  ;;  %v3963_v29 = vld [vmem:[%s5134_s25 + $0xa0] sm:$0xff] }
 0x904   : > { %v5601_v32 = vadd.f32 %v2325_v36, %v5592_v26  ;;  %v5604_v39 = vadd.f32 %v2344_v37, %v5594_v21  ;;  %v3971_v33 = vld [vmem:[%s5134_s25 + $0xe0] sm:$0xff]  ;;  %3037 = vmatpush.bf16.msrb.mxu0 %v3963_v29 }
 0x905   : > { %4195 = vpow2.f32 %v2428_v34  ;;  %3056 = vmatpush.bf16.msrb.mxu1 %v3971_v33 }
 0x906   : > { %4197 = vpow2.f32 %v2430_v31  ;;  %v3727_v7 = vmul.f32 -1.702, %v5601_v32  ;;  %v3728_v46 = vmul.f32 -1.702, %v5604_v39  ;;  %v2365_v47 = vpop.f32.mrf.mxu0  ;;  %v2384_v48 = vpop.f32.mrf.mxu1 }
 0x907   : > { %v5611_v49 = vadd.f32 %v2365_v47, %v5582_v18  ;;  %v5614_v51 = vadd.f32 %v2384_v48, %v5584_v13 }
 0x908   : > { %v2424_v52 = vmul.f32 1.442695, %v3727_v7  ;;  %v2426_v53 = vmul.f32 1.442695, %v3728_v46  ;;  %v3956_v7 = vld [vmem:[%s5134_s25 + $0x68] sm:$0xff] }
 0x909   : > { %v3733_v54 = vmul.f32 -1.702, %v5611_v49  ;;  %v3734_v55 = vmul.f32 -1.702, %v5614_v51  ;;  %3017 = vmatpush.bf16.msrb.mxu3 %v3956_v7 }
 0x90a   : > { %4199 = vpow2.f32 %v2424_v52 }
 0x90b   : > { %v4196_v58 = vpop.eup %4195  ;;  %4201 = vpow2.f32 %v2426_v53  ;;  %v2436_v38 = vmul.f32 1.442695, %v3733_v54  ;;  %v2327_v25 = vpop.f32.mrf.mxu2  ;;  %v2438_v61 = vmul.f32 1.442695, %v3734_v55 }
 0x90c   : > { %v4198_v59 = vpop.eup %4197  ;;  %v5620_v30 = vadd.f32 1.0, %v4196_v58  ;;  %v5623_v62 = vadd.f32 %v2327_v25, %v5592_v26  ;;  %v2346_v5 = vpop.f32.mrf.mxu3 }
 0x90d   : > { %v5625_v23 = vadd.f32 1.0, %v4198_v59  ;;  %4203 = vpow2.f32 %v2436_v38  ;;  %v5642_v11 = vadd.f32 %v2346_v5, %v5594_v21 }
 0x90e   : > { %4205 = vrcp.f32 %v5620_v30  ;;  %v3731_v0 = vmul.f32 -1.702, %v5623_v62  ;;  %v2511_v14 = vand.u32 2147483647, %v5620_v30  ;;  %v2513_v8 = vand.u32 2147483648, %v5620_v30  ;;  %v2368_v20 = vpop.f32.mrf.mxu0  ;;  %v2387_v36 = vpop.f32.mrf.mxu1 }
 0x90f   : > { %4207 = vrcp.f32 %v5625_v23  ;;  %v2528_v35 = vand.u32 2147483648, %v5625_v23  ;;  %vm2507_vm12 = vweird.f32 %v5620_v30  ;;  %v2526_v34 = vand.u32 2147483647, %v5625_v23 }
 0x910   : > { %v4200_v63 = vpop.eup %4199  ;;  %4209 = vpow2.f32 %v2438_v61  ;;  %v2432_v50 = vmul.f32 1.442695, %v3731_v0  ;;  %v3732_v44 = vmul.f32 -1.702, %v5642_v11  ;;  %vm5667_vm13 = vcmp.eq.f32.partialorder %v2511_v14, 8.507059e+37 }
 0x911   : > { %v4202_v1 = vpop.eup %4201  ;;  %v5630_v2 = vadd.f32 1.0, %v4200_v63  ;;  %v2514_v47 = vor.u32 1.1754944e-38, %v2513_v8  ;;  %v5673_v52 = vadd.f32 %v2368_v20, %v5582_v18  ;;  %vm2522_vm14 = vweird.f32 %v5625_v23 }
 0x912   : > { %v5632_v4 = vadd.f32 1.0, %v4202_v1  ;;  %v5676_v53 = vor.u32 1.1754944e-38, %v2528_v35  ;;  %v5682_v56 = vadd.f32 %v2387_v36, %v5584_v13  ;;  %v2434_v0 = vmul.f32 1.442695, %v3732_v44 }
 0x913   : > { %v4204_v27 = vpop.eup %4203  ;;  %4211 = vrcp.f32 %v5630_v2  ;;  %v2483_v48 = vand.u32 2147483648, %v5630_v2  ;;  %v2330_v25 = vpop.f32.mrf.mxu2  ;;  %v2481_v61 = vand.u32 2147483647, %v5630_v2  ;;  %vm5716_vm2 = vcmp.eq.f32.partialorder %v2526_v34, 8.507059e+37 }
 0x914   : > { %v5635_v10 = vpop.eup %4205  ;;  %4213 = vrcp.f32 %v5632_v4  ;;  %v5652_v3 = vadd.f32 1.0, %v4204_v27  ;;  %v2498_v55 = vand.u32 2147483648, %v5632_v4  ;;  %v2496_v27 = vand.u32 2147483647, %v5632_v4 }
 0x915   : > { %v5637_v43 = vpop.eup %4207  ;;  %v2503_v9 = vmul.f32 %v5635_v10, %v5620_v30  ;;  %4215 = vpow2.f32 %v2432_v50  ;;  %vm2508_vm15 = vweird.f32 %v5635_v10  ;;  %v5694_v5 = vor.u32 1.1754944e-38, %v2483_v48 }
 0x916   : > { %v4210_v24 = vpop.eup %4209  ;;  %v2518_v16 = vmul.f32 %v5637_v43, %v5625_v23  ;;  %4217 = vrcp.f32 %v5652_v3  ;;  %v2571_v38 = vand.u32 2147483647, %v5652_v3  ;;  %v2573_v63 = vand.u32 2147483648, %v5652_v3  ;;  %vm5702_vm1 = vmor %vm2507_vm12, %vm2508_vm15 }
 0x917   : > { %v2504_v28 = vsub.f32 1.0, %v2503_v9  ;;  %v5658_v31 = vadd.f32 1.0, %v4210_v24  ;;  %vm2523_vm0 = vweird.f32 %v5637_v43  ;;  %v3737_v50 = vmul.f32 -1.702, %v5673_v52 }
 0x918   : > { %v2519_v42 = vsub.f32 1.0, %v2518_v16  ;;  %v5708_v14 = vor.u32 1.1754944e-38, %v2498_v55  ;;  %v5711_v8 = vadd.f32 %v2330_v25, %v5592_v26  ;;  %vm2477_vm3 = vweird.f32 %v5630_v2  ;;  %vm5746_vm7 = vmor %vm2522_vm14, %vm2523_vm0 }
 0x919   : > { %v5660_v37 = vpop.eup %4211  ;;  %v2505_v41 = vmul.f32 %v5635_v10, %v2504_v28  ;;  %4219 = vrcp.f32 %v5658_v31  ;;  %vm2567_vm4 = vweird.f32 %v5652_v3  ;;  %vm5724_vm5 = vcmp.eq.f32.partialorder %v2571_v38, 8.507059e+37 }
 0x91a   : > { %v2473_v54 = vmul.f32 %v5660_v37, %v5630_v2  ;;  %v5684_v57 = vpop.eup %4213  ;;  %v2520_v59 = vmul.f32 %v5637_v43, %v2519_v42  ;;  %v2574_v29 = vor.u32 1.1754944e-38, %v2573_v63  ;;  %4221 = vpow2.f32 %v2434_v0  ;;  %v3962_v42 = vld [vmem:[%s5134_s25 + $0x98] sm:$0xff] }
 0x91b   : > { %v2506_v58 = vadd.f32 %v5635_v10, %v2505_v41  ;;  %v4216_v1 = vpop.eup %4215  ;;  %v2488_v24 = vmul.f32 %v5684_v57, %v5632_v4  ;;  %vm2478_vm6 = vweird.f32 %v5660_v37  ;;  %v2444_v36 = vmul.f32 1.442695, %v3737_v50  ;;  %3038 = vmatpush.bf16.msrb.mxu0 %v3962_v42 }
 0x91c   : > { %v5698_v9 = vpop.eup %4217  ;;  %v2474_v12 = vsub.f32 1.0, %v2473_v54  ;;  %v2521_v20 = vadd.f32 %v5637_v43, %v2520_v59  ;;  %v3738_v41 = vmul.f32 -1.702, %v5682_v56  ;;  %v3970_v54 = vld [vmem:[%s5134_s25 + $0xd8] sm:$0xff]  ;;  %vm2493_vm8 = vweird.f32 %v5684_v57  ;;  %vm5794_vm15 = vmor %vm2477_vm3, %vm2478_vm6 }
 0x91d   : > { %v2510_v16 = vsel %vm5702_vm1, %v5635_v10, %v2506_v58  ;;  %v2563_v28 = vmul.f32 %v5698_v9, %v5652_v3  ;;  %v5729_v10 = vadd.f32 1.0, %v4216_v1  ;;  %v2489_v7 = vsub.f32 1.0, %v2488_v24  ;;  %v3955_v58 = vld [vmem:[%s5134_s25 + $0x60] sm:$0xff]  ;;  %3057 = vmatpush.bf16.msrb.mxu1 %v3970_v54 }
 0x91e   : > { %v2515_v44 = vsel %vm5667_vm13, %v2514_v47, %v2510_v16  ;;  %v2475_v45 = vmul.f32 %v5660_v37, %v2474_v12  ;;  %vm2568_vm9 = vweird.f32 %v5698_v9  ;;  %vm2582_vm10 = vweird.f32 %v5658_v31  ;;  %v3947_v47 = vld [vmem:[%s5134_s25 + $0x20] sm:$0xff]  ;;  %3018 = vmatpush.bf16.msrb.mxu3 %v3955_v58  ;;  %v2349_v16 = vpop.f32.mrf.mxu3 }
 0x91f   : > { %v5731_v33 = vpop.eup %4219  ;;  %v2564_v34 = vsub.f32 1.0, %v2563_v28  ;;  %4223 = vrcp.f32 %v5729_v10  ;;  %v2525_v23 = vsel %vm5746_vm7, %v5637_v43, %v2521_v20  ;;  %vm5760_vm11 = vcmp.eq.f32.partialorder %v2481_v61, 8.507059e+37  ;;  %2999 = vmatpush.bf16.msrb.mxu2 %v3947_v47  ;;  %v3961_v43 = vld [vmem:[%s5134_s25 + $0x90] sm:$0xff]  ;;  %vm2569_vm13 = vmor %vm2567_vm4, %vm2568_vm9  ;;  %v2370_v47 = vpop.f32.mrf.mxu0 }
 0x920   : > { %v2578_v48 = vmul.f32 %v5731_v33, %v5658_v31  ;;  %v2586_v59 = vand.u32 2147483647, %v5658_v31  ;;  %v2588_v63 = vand.u32 2147483648, %v5658_v31  ;;  %v5767_v0 = vmul.f32 %v2515_v44, %v5587_v22  ;;  %v3969_v61 = vld [vmem:[%s5134_s25 + $0xd0] sm:$0xff]  ;;  %v4222_v17 = vpop.eup %4221  ;;  %3039 = vmatpush.bf16.msrb.mxu0 %v3961_v43  ;;  %v3968_v31 = vld [vmem:[%s5134_s25 + $0xc8] sm:$0xff]  ;;  %v2389_v43 = vpop.f32.mrf.mxu1 }
 0x921   : > { %v2565_v46 = vmul.f32 %v5698_v9, %v2564_v34  ;;  %vm2492_vm12 = vweird.f32 %v5632_v4  ;;  %4225 = vpow2.f32 %v2444_v36  ;;  %v2446_v50 = vmul.f32 1.442695, %v3738_v41  ;;  %v3946_v36 = vld [vmem:[%s5134_s25 + $0x18] sm:$0xff]  ;;  %3058 = vmatpush.bf16.msrb.mxu1 %v3969_v61 }
 0x922   : > { %v2579_v25 = vsub.f32 1.0, %v2578_v48  ;;  %v2476_v12 = vadd.f32 %v5660_v37, %v2475_v45  ;;  %vm2583_vm14 = vweird.f32 %v5731_v33  ;;  %v3735_v24 = vmul.f32 -1.702, %v5711_v8  ;;  %v3954_v41 = vld [vmem:[%s5134_s25 + $0x58] sm:$0xff]  ;;  %vm5862_vm3 = vmor %vm2492_vm12, %vm2493_vm8 }
 0x923   : > { %v2566_v1 = vadd.f32 %v5698_v9, %v2565_v46  ;;  %v2490_v28 = vmul.f32 %v5684_v57, %v2489_v7  ;;  %v5783_v34 = vadd.f32 1.0, %v4222_v17  ;;  %4227 = vpow2.f32 %v2446_v50  ;;  %vm5807_vm0 = vmor %vm2582_vm10, %vm2583_vm14  ;;  %3000 = vmatpush.bf16.msrb.mxu2 %v3946_v36  ;;  %3019 = vmatpush.bf16.msrb.mxu3 %v3954_v41  ;;  %v3952_v41 = vld [vmem:[%s5134_s25 + $0x48] sm:$0xff] }
 0x924   : > { %v2580_v22 = vmul.f32 %v5731_v33, %v2579_v25  ;;  %v2530_v3 = vsel %vm5716_vm2, %v5676_v53, %v2525_v23  ;;  %v2440_v45 = vmul.f32 1.442695, %v3735_v24  ;;  %vm5811_vm1 = vcmp.eq.f32.partialorder %v2586_v59, 8.507059e+37  ;;  %v3967_v24 = vld [vmem:[%s5134_s25 + $0xc0] sm:$0xff] }
 0x925   : > { %v2570_v20 = vsel %vm2569_vm13, %v5698_v9, %v2566_v1  ;;  %v5801_v7 = vpop.eup %4223  ;;  %v2589_v30 = vor.u32 1.1754944e-38, %v2588_v63  ;;  %4229 = vrcp.f32 %v5783_v34  ;;  %v5817_v35 = vadd.f32 %v2349_v16, %v5594_v21  ;;  %3059 = vmatpush.bf16.msrb.mxu1 %v3968_v31 }
 0x926   : > { %v2575_v9 = vsel %vm5724_vm5, %v2574_v29, %v2570_v20  ;;  %v2581_v44 = vadd.f32 %v5731_v33, %v2580_v22  ;;  %v3960_v29 = vld [vmem:[%s5134_s25 + $0x88] sm:$0xff]  ;;  %v2480_v48 = vsel %vm5794_vm15, %v5660_v37, %v2476_v12  ;;  %v2533_v46 = vmul.f32 %v5801_v7, %v5729_v10  ;;  %v3953_v37 = vld [vmem:[%s5134_s25 + $0x50] sm:$0xff] }
 0x927   : > { %v2718_v54 = vmul.f32 %v2575_v9, %v5611_v49  ;;  %v4226_v58 = vpop.eup %4225  ;;  %v2715_v23 = vmul.f32 %v2530_v3, %v5590_v40  ;;  %v5832_v25 = vadd.f32 %v5684_v57, %v2490_v28  ;;  %4231 = vpow2.f32 %v2440_v45  ;;  %3040 = vmatpush.bf16.msrb.mxu0 %v3960_v29  ;;  %v3945_v49 = vld [vmem:[%s5134_s25 + $0x10] sm:$0xff]  ;;  %3020 = vmatpush.bf16.msrb.mxu3 %v3953_v37 }
 0x928   : > { %v2585_v55 = vsel %vm5807_vm0, %v5731_v33, %v2581_v44  ;;  %vm5840_vm2 = vcmp.eq.f32.partialorder %v2496_v27, 8.507059e+37  ;;  %v2534_v63 = vsub.f32 1.0, %v2533_v46  ;;  %v2541_v1 = vand.u32 2147483647, %v5729_v10  ;;  %3001 = vmatpush.bf16.msrb.mxu2 %v3945_v49 }
 0x929   : > { %v2590_v59 = vsel %vm5811_vm1, %v2589_v30, %v2585_v55  ;;  %v5846_v50 = vadd.f32 1.0, %v4226_v58  ;;  %v4228_v61 = vpop.eup %4227  ;;  %v2485_v17 = vsel %vm5760_vm11, %v5694_v5, %v2480_v48  ;;  %v2543_v12 = vand.u32 2147483648, %v5729_v10  ;;  %3060 = vmatpush.bf16.msrb.mxu1 %v3967_v24  ;;  %v2332_v58 = vpop.f32.mrf.mxu2 }
 0x92a   : > { %v2719_v40 = vmul.f32 %v2590_v59, %v5614_v51  ;;  %v3736_v27 = vmul.f32 -1.702, %v5817_v35  ;;  %v5854_v22 = vadd.f32 %v2370_v47, %v5582_v18  ;;  %v3959_v51 = vld [vmem:[%s5134_s25 + $0x80] sm:$0xff]  ;;  %v2730_v5 = vpack.c.bf16 %v2718_v54, %v5767_v0  ;;  %v3944_v0 = vld [vmem:[%s5134_s25 + $0x8] sm:$0xff] }
 0x92b   : > { %v2535_v16 = vmul.f32 %v5801_v7, %v2534_v63  ;;  %vm2538_vm4 = vweird.f32 %v5801_v7  ;;  %4233 = vrcp.f32 %v5846_v50  ;;  %v4230_v18 = vpop.eup %4229  ;;  %v2495_v28 = vsel %vm5862_vm3, %v5684_v57, %v5832_v25  ;;  %3041 = vmatpush.bf16.msrb.mxu0 %v3959_v51  ;;  %3021 = vmatpush.bf16.msrb.mxu3 %v3952_v41  ;;  %v3943_v54 = vld [vmem:[%s5134_s25] sm:$0xff] }
 0x92c   : > { %v2731_v20 = vpack.c.bf16 %v2719_v40, %v2715_v23  ;;  %v5874_v4 = vadd.f32 1.0, %v4228_v61  ;;  %v5877_v36 = vadd.f32 %v2389_v43, %v5584_v13  ;;  %vm2537_vm5 = vweird.f32 %v5729_v10  ;;  %3002 = vmatpush.bf16.msrb.mxu2 %v3944_v0  ;;  %v3951_v23 = vld [vmem:[%s5134_s25 + $0x40] sm:$0xff] }
 0x92d   : > { %v2536_v3 = vadd.f32 %v5801_v7, %v2535_v16  ;;  %v2548_v42 = vmul.f32 %v4230_v18, %v5783_v34  ;;  %v3741_v9 = vmul.f32 -1.702, %v5854_v22  ;;  %v4232_v44 = vpop.eup %4231  ;;  %vm2539_vm6 = vmor %vm2537_vm5, %vm2538_vm4  ;;  %vm2542_vm7 = vcmp.eq.f32.partialorder %v2541_v1, 8.507059e+37 }
 0x92e   : > { %v2544_v13 = vor.u32 1.1754944e-38, %v2543_v12  ;;  %4235 = vrcp.f32 %v5874_v4  ;;  %v2442_v57 = vmul.f32 1.442695, %v3736_v27  ;;  %v2556_v53 = vand.u32 2147483647, %v5783_v34  ;;  %3042 = vmatmul.bf16.vlgmr.msrb.gmra.mxu0 %v2730_v5  ;;  %3061 = vmatmul.bf16.vlgmr.msrb.gmra.mxu1 %v2731_v20  ;;  %v2351_v27 = vpop.f32.mrf.mxu3 }
 0x92f   : > { %v2540_v45 = vsel %vm2539_vm6, %v5801_v7, %v2536_v3  ;;  %v2549_v10 = vsub.f32 1.0, %v2548_v42  ;;  %v2558_v2 = vand.u32 2147483648, %v5783_v34  ;;  %v2712_v30 = vmul.f32 %v2485_v17, %v5601_v32  ;;  %3022 = vmatpush.bf16.msrb.mxu3 %v3951_v23 }
 0x930   : > { %v2545_v29 = vsel %vm2542_vm7, %v2544_v13, %v2540_v45  ;;  %v2452_v31 = vmul.f32 1.442695, %v3741_v9  ;;  %v3742_v48 = vmul.f32 -1.702, %v5877_v36  ;;  %vm2553_vm8 = vweird.f32 %v4230_v18  ;;  %3003 = vmatpush.bf16.msrb.mxu2 %v3943_v54 }
 0x931   : > { %v5894_v55 = vpop.eup %4233  ;;  %v2716_v46 = vmul.f32 %v2545_v29, %v5623_v62  ;;  %v2550_v7 = vmul.f32 %v4230_v18, %v2549_v10  ;;  %v5897_v47 = vadd.f32 1.0, %v4232_v44  ;;  %v2500_v32 = vsel %vm5840_vm2, %v5708_v14, %v2495_v28 }
 0x932   : > { %4237 = vpow2.f32 %v2442_v57  ;;  %vm2552_vm9 = vweird.f32 %v5783_v34  ;;  %v2559_v49 = vor.u32 1.1754944e-38, %v2558_v2  ;;  %v2623_v62 = vmul.f32 %v5894_v55, %v5846_v50 }
 0x933   : > { %v2728_v25 = vpack.c.bf16 %v2716_v46, %v2712_v30  ;;  %v2551_v59 = vadd.f32 %v4230_v18, %v2550_v7  ;;  %vm2554_vm10 = vmor %vm2552_vm9, %vm2553_vm8  ;;  %4239 = vpow2.f32 %v2452_v31  ;;  %v2454_v40 = vmul.f32 1.442695, %v3742_v48 }
 0x934   : > { %v5904_v37 = vpop.eup %4235  ;;  %v5909_v63 = vadd.f32 %v2332_v58, %v5592_v26  ;;  %vm2557_vm11 = vcmp.eq.f32.partialorder %v2556_v53, 8.507059e+37  ;;  %4241 = vrcp.f32 %v5897_v47  ;;  %v2713_v34 = vmul.f32 %v2500_v32, %v5604_v39 }
 0x935   : > { %v2555_v14 = vsel %vm2554_vm10, %v4230_v18, %v2551_v59  ;;  %3004 = vmatmul.bf16.vlgmr.msrb.gmra.mxu2 %v2728_v25  ;;  %v2638_v43 = vmul.f32 %v5904_v37, %v5874_v4  ;;  %v2624_v17 = vsub.f32 1.0, %v2623_v62  ;;  %4243 = vpow2.f32 %v2454_v40 }
 0x936   : > { %v2560_v33 = vsel %vm2557_vm11, %v2559_v49, %v2555_v14  ;;  %v3739_v12 = vmul.f32 -1.702, %v5909_v63  ;;  %v5925_v18 = vadd.f32 %v2351_v27, %v5594_v21  ;;  %v2631_v0 = vand.u32 2147483647, %v5846_v50 }
 0x937   : > { %v2717_v1 = vmul.f32 %v2560_v33, %v5642_v11  ;;  %v2639_v5 = vsub.f32 1.0, %v2638_v43  ;;  %v2625_v11 = vmul.f32 %v5894_v55, %v2624_v17  ;;  %vm2628_vm12 = vweird.f32 %v5894_v55 }
 0x938   : > { %v4238_v61 = vpop.eup %4237  ;;  %v2448_v24 = vmul.f32 1.442695, %v3739_v12  ;;  %v3740_v21 = vmul.f32 -1.702, %v5925_v18  ;;  %v2633_v9 = vand.u32 2147483648, %v5846_v50  ;;  %vm2627_vm13 = vweird.f32 %v5846_v50 }
 0x939   : > { %v2729_v26 = vpack.c.bf16 %v2717_v1, %v2713_v34  ;;  %v4240_v51 = vpop.eup %4239  ;;  %v5919_v16 = vadd.f32 1.0, %v4238_v61  ;;  %v2640_v41 = vmul.f32 %v5904_v37, %v2639_v5  ;;  %v2626_v3 = vadd.f32 %v5894_v55, %v2625_v11  ;;  %vm5943_vm14 = vmor %vm2627_vm13, %vm2628_vm12 }
 0x93a   : > { %v5917_v38 = vpop.eup %4241  ;;  %v5921_v39 = vadd.f32 1.0, %v4240_v51  ;;  %4245 = vpow2.f32 %v2448_v24  ;;  %v2646_v44 = vand.u32 2147483647, %v5874_v4  ;;  %v2648_v57 = vand.u32 2147483648, %v5874_v4 }
 0x93b   : > { %3023 = vmatmul.bf16.vlgmr.msrb.gmra.mxu3 %v2729_v26  ;;  %v4244_v28 = vpop.eup %4243  ;;  %v2593_v20 = vmul.f32 %v5917_v38, %v5897_v47  ;;  %v2641_v53 = vadd.f32 %v5904_v37, %v2640_v41  ;;  %vm2643_vm15 = vweird.f32 %v5904_v37  ;;  %v2630_v50 = vsel %vm5943_vm14, %v5894_v55, %v2626_v3 }
 0x93c   : > { %4247 = vrcp.f32 %v5921_v39  ;;  %v5935_v42 = vadd.f32 1.0, %v4244_v28  ;;  %vm2632_vm0 = vcmp.eq.f32.partialorder %v2631_v0, 8.507059e+37  ;;  %v2450_v29 = vmul.f32 1.442695, %v3740_v21 }
 0x93d   : > { %4249 = vrcp.f32 %v5919_v16  ;;  %v2594_v45 = vsub.f32 1.0, %v2593_v20  ;;  %v2634_v48 = vor.u32 1.1754944e-38, %v2633_v9  ;;  %vm2642_vm1 = vweird.f32 %v5874_v4 }
 0x93e   : > { %4251 = vrcp.f32 %v5935_v42  ;;  %vm5957_vm2 = vcmp.eq.f32.partialorder %v2646_v44, 8.507059e+37  ;;  %vm5962_vm3 = vmor %vm2642_vm1, %vm2643_vm15  ;;  %v2649_v58 = vor.u32 1.1754944e-38, %v2648_v57  ;;  %vm2597_vm4 = vweird.f32 %v5897_v47 }
 0x93f   : > { %v2595_v55 = vmul.f32 %v5917_v38, %v2594_v45  ;;  %v2635_v23 = vsel %vm2632_vm0, %v2634_v48, %v2630_v50  ;;  %v2645_v4 = vsel %vm5962_vm3, %v5904_v37, %v2641_v53  ;;  %v2601_v59 = vand.u32 2147483647, %v5897_v47 }
 0x940   : > { %v4246_v13 = vpop.eup %4245  ;;  %v2691_v62 = vand.u32 2147483647, %v5921_v39  ;;  %v2693_v40 = vand.u32 2147483648, %v5921_v39  ;;  %v2603_v14 = vand.u32 2147483648, %v5897_v47  ;;  %v2722_v37 = vmul.f32 %v2635_v23, %v5673_v52 }
 0x941   : > { %v5949_v2 = vadd.f32 1.0, %v4246_v13  ;;  %v2650_v1 = vsel %vm5957_vm2, %v2649_v58, %v2645_v4  ;;  %v2596_v43 = vadd.f32 %v5917_v38, %v2595_v55  ;;  %vm2598_vm6 = vweird.f32 %v5917_v38 }
 0x942   : > { %v4248_v30 = vpop.eup %4247  ;;  %vm2687_vm7 = vweird.f32 %v5921_v39  ;;  %v2706_v12 = vand.u32 2147483647, %v5935_v42  ;;  %vm2692_vm9 = vcmp.eq.f32.partialorder %v2691_v62, 8.507059e+37  ;;  %v2694_v51 = vor.u32 1.1754944e-38, %v2693_v40  ;;  %vm5989_vm10 = vmor %vm2597_vm4, %vm2598_vm6 }
 0x943   : > { %v5954_v31 = vpop.eup %4249  ;;  %v2683_v46 = vmul.f32 %v4248_v30, %v5921_v39  ;;  %4253 = vrcp.f32 %v5949_v2  ;;  %vm2688_vm5 = vweird.f32 %v4248_v30  ;;  %v2708_v52 = vand.u32 2147483648, %v5935_v42 }
 0x944   : > { %4255 = vpow2.f32 %v2450_v29  ;;  %v4252_v25 = vpop.eup %4251  ;;  %v2608_v49 = vmul.f32 %v5954_v31, %v5919_v16  ;;  %vm2689_vm8 = vmor %vm2687_vm7, %vm2688_vm5  ;;  %v2600_v20 = vsel %vm5989_vm10, %v5917_v38, %v2596_v43  ;;  %vm2702_vm12 = vweird.f32 %v5935_v42  ;;  %v4112_v43 = vld [vmem:[%s842_s3] ss:$0 sm:$0xff]  ;;  %s6184_s3 = sld [smem:[#allocation33_spill]] }
 0x945   : > { %v2684_v32 = vsub.f32 1.0, %v2683_v46  ;;  %v2698_v34 = vmul.f32 %v4252_v25, %v5935_v42  ;;  %vm2703_vm11 = vweird.f32 %v4252_v25  ;;  %vm2707_vm13 = vcmp.eq.f32.partialorder %v2706_v12, 8.507059e+37 }
 0x946   : > { %v2609_v27 = vsub.f32 1.0, %v2608_v49  ;;  %vm2704_vm14 = vmor %vm2702_vm12, %vm2703_vm11  ;;  %v2709_v9 = vor.u32 1.1754944e-38, %v2708_v52  ;;  %v2661_v44 = vand.u32 2147483647, %v5949_v2  ;;  %v2663_v13 = vand.u32 2147483648, %v5949_v2 }
 0x947   : > { %v2685_v33 = vmul.f32 %v4248_v30, %v2684_v32  ;;  %v2699_v17 = vsub.f32 1.0, %v2698_v34  ;;  %v2723_v10 = vmul.f32 %v2650_v1, %v5682_v56  ;;  %vm2602_vm0 = vcmp.eq.f32.partialorder %v2601_v59, 8.507059e+37 }
 0x948   : > { %v2604_v42 = vor.u32 1.1754944e-38, %v2603_v14  ;;  %vm2657_vm1 = vweird.f32 %v5949_v2  ;;  %v2664_v48 = vor.u32 1.1754944e-38, %v2663_v13  ;;  %vm2662_vm3 = vcmp.eq.f32.partialorder %v2661_v44, 8.507059e+37 }
 0x949   : > { %v2686_v61 = vadd.f32 %v4248_v30, %v2685_v33  ;;  %v4254_v26 = vpop.eup %4253  ;;  %v2700_v28 = vmul.f32 %v4252_v25, %v2699_v17  ;;  %vm2613_vm4 = vweird.f32 %v5954_v31  ;;  %vm2612_vm5 = vweird.f32 %v5919_v16 }
 0x94a   : > { %v4256_v24 = vpop.eup %4255  ;;  %v2653_v39 = vmul.f32 %v4254_v26, %v5949_v2  ;;  %vm2658_vm15 = vweird.f32 %v4254_v26  ;;  %v2605_v29 = vsel %vm2602_vm0, %v2604_v42, %v2600_v20  ;;  %v2618_v2 = vand.u32 2147483648, %v5919_v16  ;;  %vm2614_vm6 = vmor %vm2612_vm5, %vm2613_vm4  ;;  %p3871_p9 = scmp.ne.s32.totalorder %s6184_s3, 11 }
 0x94b   : > { %v2690_v11 = vsel %vm2689_vm8, %v4248_v30, %v2686_v61  ;;  %v2469_v41 = vadd.f32 1.0, %v4256_v24  ;;  %v2701_v47 = vadd.f32 %v4252_v25, %v2700_v28  ;;  %vm2659_vm2 = vmor %vm2657_vm1, %vm2658_vm15  ;;  %v2720_v58 = vmul.f32 %v2605_v29, %v5711_v8 }
 0x94c   : > { %v2695_v0 = vsel %vm2692_vm9, %v2694_v51, %v2690_v11  ;;  %v2654_v21 = vsub.f32 1.0, %v2653_v39  ;;  %v2616_v4 = vand.u32 2147483647, %v5919_v16 }
 0x94d   : > { %v2726_v3 = vmul.f32 %v2695_v0, %v5854_v22  ;;  %4257 = vrcp.f32 %v2469_v41  ;;  %v2705_v57 = vsel %vm2704_vm14, %v4252_v25, %v2701_v47  ;;  %v2610_v22 = vmul.f32 %v5954_v31, %v2609_v27 }
 0x94e   : > { %v2655_v45 = vmul.f32 %v4254_v26, %v2654_v21  ;;  %v2710_v53 = vsel %vm2707_vm13, %v2709_v9, %v2705_v57  ;;  %v2678_v59 = vand.u32 2147483648, %v2469_v41  ;;  %v2676_v8 = vand.u32 2147483647, %v2469_v41 }
 0x94f   : > { %v2734_v38 = vpack.c.bf16 %v2726_v3, %v2722_v37  ;;  %v2727_v30 = vmul.f32 %v2710_v53, %v5877_v36  ;;  %v2611_v55 = vadd.f32 %v5954_v31, %v2610_v22  ;;  %vm2617_vm8 = vcmp.eq.f32.partialorder %v2616_v4, 8.507059e+37 }
 0x950   : > { %v2656_v50 = vadd.f32 %v4254_v26, %v2655_v45  ;;  %vm2672_vm9 = vweird.f32 %v2469_v41  ;;  %v2679_v33 = vor.u32 1.1754944e-38, %v2678_v59  ;;  %vm2677_vm11 = vcmp.eq.f32.partialorder %v2676_v8, 8.507059e+37 }
 0x951   : > { %3047 = vmatmul.bf16.gmra.mxu0 %v2734_v38  ;;  %v2735_v46 = vpack.c.bf16 %v2727_v30, %v2723_v10  ;;  %v2615_v49 = vsel %vm2614_vm6, %v5954_v31, %v2611_v55 }
 0x952   : > { %v2660_v54 = vsel %vm2659_vm2, %v4254_v26, %v2656_v50 }
 0x953   : > { %v4258_v7 = vpop.eup %4257  ;;  %v2665_v56 = vsel %vm2662_vm3, %v2664_v48, %v2660_v54  ;;  %3066 = vmatmul.bf16.gmra.mxu1 %v2735_v46 }
 0x954   : > { %v2724_v36 = vmul.f32 %v2665_v56, %v5909_v63  ;;  %v2668_v23 = vmul.f32 %v4258_v7, %v2469_v41  ;;  %vm2673_vm7 = vweird.f32 %v4258_v7  ;;  %v2619_v63 = vor.u32 1.1754944e-38, %v2618_v2 }
 0x955   : > { %vm2674_vm10 = vmor %vm2672_vm9, %vm2673_vm7 }
 0x956   : > { %v2669_v32 = vsub.f32 1.0, %v2668_v23  ;;  %v2732_v25 = vpack.c.bf16 %v2724_v36, %v2720_v58  ;;  %v2620_v14 = vsel %vm2617_vm8, %v2619_v63, %v2615_v49 }
 0x957   : > { %v2721_v37 = vmul.f32 %v2620_v14, %v5817_v35 }
 0x958   : > { %v2670_v62 = vmul.f32 %v4258_v7, %v2669_v32  ;;  %3009 = vmatmul.bf16.gmra.mxu2 %v2732_v25 }
 0x95a   : > { %v2671_v40 = vadd.f32 %v4258_v7, %v2670_v62 }
 0x95c   : > { %v2675_v34 = vsel %vm2674_vm10, %v4258_v7, %v2671_v40 }
 0x95d   : > { %v2680_v16 = vsel %vm2677_vm11, %v2679_v33, %v2675_v34 }
 0x95e   : > { %v2725_v1 = vmul.f32 %v2680_v16, %v5925_v18 }
 0x960   : > { %v2733_v31 = vpack.c.bf16 %v2725_v1, %v2721_v37 }
 0x962   : > { %3028 = vmatmul.bf16.gmra.mxu3 %v2733_v31 }
 0x9ab   : > { %v3043_v12 = vpop.f32.mrf.mxu0  ;;  %v3062_v51 = vpop.f32.mrf.mxu1 }
 0x9b3   : > { %v3045_v18 = vpop.f32.mrf.mxu0  ;;  %v3064_v0 = vpop.f32.mrf.mxu1 }
 0x9b8   : > { %v3005_v61 = vpop.f32.mrf.mxu2 }
 0x9b9   : > { %v3006_v17 = vadd.f32 %v4112_v43, %v3005_v61 }
 0x9be   : > { %v3024_v26 = vpop.f32.mrf.mxu3 }
 0x9bf   : > { %v3025_v27 = vadd.f32 %v3024_v26, %v3006_v17 }
 0x9c0   : > { %v3007_v52 = vpop.f32.mrf.mxu2 }
 0x9c1   : > { %v3044_v24 = vadd.f32 %v3043_v12, %v3025_v27  ;;  %v3008_v11 = vadd.f32 %v4112_v43, %v3007_v52 }
 0x9c3   : > { %v3063_v5 = vadd.f32 %v3062_v51, %v3044_v24 }
 0x9c5   : > { %v3072_v28 = vadd.f32 %v3063_v5, %v5465_v60 }
 0x9c6   : > { %v3026_v39 = vpop.f32.mrf.mxu3 }
 0x9c7   : > { %3076 = vst [vmem:[#allocation2] sm:$0xff] %v3072_v28  ;;  %v3027_v35 = vadd.f32 %v3026_v39, %v3008_v11 }
 0x9c9   : > { %v3046_v20 = vadd.f32 %v3045_v18, %v3027_v35 }
 0x9cb   : > { %v3065_v41 = vadd.f32 %v3064_v0, %v3046_v20 }
 0x9cd   : > { %v3073_v3 = vadd.f32 %v3065_v41, %v5469_v6 }
 0x9ce   : > { %v3048_v9 = vpop.f32.mrf.mxu0 }
 0x9cf   : > { %3077 = vst [vmem:[#allocation2 + $0x8] sm:$0xff] %v3073_v3 }
 0x9d0   : > { %v3067_v57 = vpop.f32.mrf.mxu1 }
 0x9d6   : > { %v3050_v30 = vpop.f32.mrf.mxu0 }
 0x9d8   : > { %v3069_v29 = vpop.f32.mrf.mxu1 }
 0x9db   : > { %v3010_v47 = vpop.f32.mrf.mxu2 }
 0x9dc   : > { %v3011_v21 = vadd.f32 %v4112_v43, %v3010_v47 }
 0x9e3   : > { %v3012_v45 = vpop.f32.mrf.mxu2 }
 0x9e4   : > { %v3013_v60 = vadd.f32 %v4112_v43, %v3012_v45 }
 0x9e5   : > { %v3029_v44 = vpop.f32.mrf.mxu3 }
 0x9e6   : > { %v3030_v13 = vadd.f32 %v3029_v44, %v3011_v21 }
 0x9e8   : > { %v3049_v38 = vadd.f32 %v3048_v9, %v3030_v13 }
 0x9ea   : > { %v3068_v10 = vadd.f32 %v3067_v57, %v3049_v38 }
 0x9ec   : > { %v3074_v42 = vadd.f32 %v3068_v10, %v5473_v15 }
 0x9ed   : > { %v3031_v53 = vpop.f32.mrf.mxu3 }
 0x9ee   : > { %3078 = vst [vmem:[#allocation2 + $0x10] sm:$0xff] %v3074_v42  ;;  %v3032_v22 = vadd.f32 %v3031_v53, %v3013_v60 }
 0x9f0   : > { %v3051_v50 = vadd.f32 %v3050_v30, %v3032_v22 }
 0x9f2   : > { %v3070_v6 = vadd.f32 %v3069_v29, %v3051_v50  ;;  %3083 = sbr.rel (%p3871_p9) target bundleno = 2559 (0x9ff), region = 140 }
 0x9f4   : > { %v3075_v48 = vadd.f32 %v3070_v6, %v5476_v19 }
 0x9f6   : > { %3079 = vst [vmem:[#allocation2 + $0x18] sm:$0xff] %v3075_v48 }
 0x9f7   : > { %v3084_v54 = vld [vmem:[#allocation2] sm:$0xff]  ;;  %v3085_v46 = vld [vmem:[#allocation2 + $0x8] sm:$0xff]  ;;  %v3086_v15 = vld [vmem:[#allocation2 + $0x10] sm:$0xff] }
 0x9f8   : > { %3088 = vst [vmem:[%s5154_s23] sm:$0xff] %v3084_v54 }
 0x9f9   : > { %3089 = vst [vmem:[%s5154_s23 + $0x8] sm:$0xff] %v3085_v46 }
 0x9fa   : > { %3090 = vst [vmem:[%s5154_s23 + $0x10] sm:$0xff] %v3086_v15 }
 0x9fd   : > { %v3087_v7 = vld [vmem:[#allocation2 + $0x18] sm:$0xff] }
 0x9fe   : > { %3091 = vst [vmem:[%s5154_s23 + $0x18] sm:$0xff] %v3087_v7 }
 0x9ff PF: > { %s6185_s13 = sld [smem:[#allocation35_spill]]  ;;  %s6193_s17 = smov %s4721_s18 }
 0xa00   : > { %s6186_s29 = sld [smem:[#allocation30_spill]]  ;;  %s6195_s19 = smov %s4733_s21 }
 0xa01   : > { %s6187_s30 = sld [smem:[#allocation31_spill]]  ;;  %s6196_s20 = smov %s4737_s22 }
 0xa02   : > { %s6188_s15 = sld [smem:[#allocation39_spill]] }
 0xa03   : > { %s6189_s16 = sld [smem:[#allocation32_spill]] }
 0xa04   : > { %s6190_s2 = sld [smem:[#allocation40_spill]] }
 0xa05   : > { %s45_s23 = sadd.s32 1, %s6185_s13   ;;  %s6191_s25 = sld [smem:[#allocation36_spill]] }
 0xa06   : > { %p42_p10 = scmp.ge.s32.totalorder %s45_s23, 26   ;;  %s6192_s9 = sld [smem:[#allocation37_spill]] }
 0xa08   :  { %44 = sbr.rel (!%p42_p10) target bundleno = 29 (0x1d), region = 275 }
 0xa0a   : > { %s6194_s18 = smov %s6190_s2 }
 0xa0b   : > { %s6197_s21 = smov %s6191_s25 }
 0xa0c   : > { %s6198_s22 = smov %s6192_s9 }
 0xa0d   :  { %3113 = vsyncpa [#allocation4], 1 }
 0xa0e   :  { %3115 = vsyncpa [#allocation4 + $0x1], 1 }
 0xa0f   :  { %3116 = vsyncpa [#allocation6], 1 }
 0xa10   :  { %3118 = vsyncpa [#allocation6 + $0x1], 1 }
 0xa11   :  { %3119 = vsyncpa [#allocation9], 1 }
 0xa12   :  { %3121 = vsyncpa [#allocation9 + $0x1], 1 }
 0xa13   :  { %3122 = vsyncpa [#allocation12], 1 }
 0xa14   :  { %3124 = vsyncpa [#allocation12 + $0x1], 1 }
 0xa15   :  { %3125 = vsyncpa [#allocation15], 1 }
 0xa16   :  { %3127 = vsyncpa [#allocation15 + $0x1], 1 }
 0xa17   :  { %3128 = vsyncpa [#allocation18], 1 }
 0xa18   :  { %3130 = vsyncpa [#allocation18 + $0x1], 1 }
 0xa19   :  { %3131 = vsyncpa [#allocation21], 1 }
 0xa1a   :  { %3133 = vsyncpa [#allocation21 + $0x1], 1 }

</bundles_post_ra>
